<compile_context>
chip_gen: v7x
topology: tpu7x:2x2x1
jax: 0.10.0
libtpu: 0.0.40
codegen_flags: <defaults>
</compile_context>

<pallas_src>
import numpy as np
import jax
import jax.numpy as jnp
from jax import lax
from jax.experimental import pallas as pl
from jax.experimental.pallas import tpu as pltpu

# ---------------- static demo configuration (small, consistent with the module) ------
B = 2
IMG = 32          # input image H = W
PATCH = 16        # default ConvPatchEmbed branch -> 4 conv stages
IN_CH = 3         # conv3x3(3, ...) hard-codes 3 input channels
EMBED = 128       # embedding dim -> stage channels 16, 32, 64, 128
BN_EPS = 1e-5
_SQRT_2 = 1.4142135623730951


def _stage_channels(patch_size, embed_dim):
    if patch_size == 16:
        return [IN_CH, embed_dim // 8, embed_dim // 4, embed_dim // 2, embed_dim]
    if patch_size == 8:
        return [IN_CH, embed_dim // 4, embed_dim // 2, embed_dim]
    raise ValueError("For convolutional projection, patch size has to be in [8, 16]")


def _padded_cin(cin, img):
    """Pad the stage-1 channel count so the flattened W*C lane width is a multiple of 128."""
    if (img * cin) % 128 == 0:
        return cin
    for extra in range(1, 16):
        if (img * (cin + extra)) % 128 == 0:
            return cin + extra
    return cin


# ------------------------------- in-kernel helpers ------------------------------------
def _erf(x):
    # Abramowitz & Stegun 7.1.26 polynomial approximation of erf (|err| < 1.5e-7).
    a1, a2, a3, a4, a5 = 0.254829592, -0.284496736, 1.421413741, -1.453152027, 1.061405429
    p = 0.3275911
    sgn = jnp.where(x >= 0.0, 1.0, -1.0)
    ax = jnp.abs(x)
    t = 1.0 / (1.0 + p * ax)
    poly = ((((a5 * t + a4) * t + a3) * t + a2) * t + a1) * t
    return sgn * (1.0 - poly * jnp.exp(-ax * ax))


def _gelu(x):
    # exact (erf-based) GELU, matching torch.nn.GELU() default
    return 0.5 * x * (1.0 + _erf(x / _SQRT_2))


def _full_spec(shape):
    nd = len(shape)
    return pl.BlockSpec(shape, lambda *_args, _nd=nd: (0,) * _nd)


# --------------------------------- fused kernel ---------------------------------------
def _make_kernel(stage_dims, batch_tile):
    """stage_dims[s] = (h_in, h_out, lane_in, k_out) with k_out = W_out * C_out."""
    n_stage = len(stage_dims)

    def kernel(x_ref, *args):
        o_ref = args[-1]
        prm = args[:-1]                      # n_stage * (Mcat_bf16, shift_f32, sel_f32)
        x = x_ref[...]                       # (TB*H_in, W_in*C_in) bf16, image b in rows [b*H, (b+1)*H)
        for s in range(n_stage):
            m_ref = prm[3 * s]               # (W_in*C_in, 3*K) bf16
            sh_ref = prm[3 * s + 1]          # (1, K) f32           BN shift, tiled over W_out
            sel_ref = prm[3 * s + 2]         # (TB*H_out, TB*H_in) f32  stride-2 row selector
            h_in, h_out, _, k = stage_dims[s]
            r_in = batch_tile * h_in
            # ONE wide bf16 MXU matmul: kx taps + channel mixing + BN scale, f32 accumulation.
            y = jnp.dot(x, m_ref[...], preferred_element_type=jnp.float32)   # (R_in, 3K)
            y0, y1, y2 = y[:, :k], y[:, k:2 * k], y[:, 2 * k:]
            # ky taps via sublane rolls (XLU) instead of matmuls:
            #   z0[r] = y0[r-1], z2[r] = y2[r+1]
            z0 = pltpu.roll(y0, shift=1, axis=0)
            z2 = pltpu.roll(y2, shift=r_in - 1, axis=0)
            # zero rows where the roll wrapped across an image boundary (conv zero padding in H);
            # the z2 wrap only lands on odd rows, which the even-row selector never picks.
            row = lax.broadcasted_iota(jnp.int32, (r_in, 1), 0)
            z0 = jnp.where(row % h_in == 0, 0.0, z0)
            o_full = z0 + y1 + z2                                           # (R_in, K) f32
            # stride-2 row decimation: one tiny exact 0/1 selector matmul (f32).
            o = jnp.dot(sel_ref[...], o_full, preferred_element_type=jnp.float32)
            o = o + sh_ref[...]              # BatchNorm (eval) shift
            if s < n_stage - 1:
                x = _gelu(o).astype(jnp.bfloat16)   # GELU in f32, feed next MXU stage in bf16
            else:
                x = o                               # final stage: no activation, keep f32
        hp = stage_dims[-1][1]
        for t in range(batch_tile):          # (TB*Hp, Wp*E) -> per-image (Hp, Wp*E) stores
            o_ref[t] = x[t * hp:(t + 1) * hp, :]

    return kernel


# ----------------------------- parameter generation / packing -------------------------
def build_params(key, patch_size=PATCH, img_size=IMG, embed_dim=EMBED, batch_tile=B):
    """Generates conv/BN parameters and packs them into the matmul form used by the kernel.

    Returns:
      packed: flat list [Mcat_1(bf16), shift_1(f32), sel_1(f32), Mcat_2, ...]
      raw:    [(w_oihw, gamma, beta, running_mean, running_var), ...]  (pure-f32 reference)
      folded: [bf16(w * bn_scale), ...]  (bf16-consistent reference weights)
      meta:   static dims
    """
    chans = _stage_channels(patch_size, embed_dim)
    n_stage = len(chans) - 1
    cin_pad = _padded_cin(chans[0], img_size)
    keys = jax.random.split(key, 5 * n_stage)
    packed, raw, folded, stage_dims = [], [], [], []
    h = img_size
    for s in range(n_stage):
        cin, cout = chans[s], chans[s + 1]
        cin_eff = cin_pad if s == 0 else cin
        kw, kg, kb, km, kv = keys[5 * s: 5 * s + 5]
        w = jax.random.normal(kw, (cout, cin, 3, 3), jnp.float32) * np.float32(
            np.sqrt(1.0 / (9.0 * cin)))
        gamma = 1.0 + 0.1 * jax.random.normal(kg, (cout,), jnp.float32)
        beta = 0.1 * jax.random.normal(kb, (cout,), jnp.float32)
        rmean = 0.1 * jax.random.normal(km, (cout,), jnp.float32)
        rvar = 0.5 + jax.random.uniform(kv, (cout,), jnp.float32)
        raw.append((w, gamma, beta, rmean, rvar))

        assert h % 2 == 0
        h_in = w_in = h
        h_out = w_out = h // 2
        wn = np.asarray(w)
        scale = np.asarray(gamma) / np.sqrt(np.asarray(rvar) + BN_EPS)     # (cout,)
        shift = np.asarray(beta) - np.asarray(rmean) * scale               # (cout,)
        wsc = wn * scale[:, None, None, None]                              # BN scale folded, f32
        folded.append(jnp.asarray(wsc).astype(jnp.bfloat16))               # bf16 reference weights
        wsc_pad = np.zeros((cout, cin_eff, 3, 3), np.float32)
        wsc_pad[:, :cin] = wsc

        k_out = w_out * cout
        # Mcat[(w*cin_eff+ci), dy*K + ox*cout + co] = W[co,ci,dy,dx]*scale[co] with w = 2*ox+dx-1;
        # out-of-range w rows are never written -> conv zero padding along W.
        mcat = np.zeros((w_in * cin_eff, 3 * k_out), np.float32)
        for dy in range(3):
            base = dy * k_out
            for dx in range(3):
                blk = wsc_pad[:, :, dy, dx].T                              # (cin_eff, cout)
                for ox in range(w_out):
                    wc = 2 * ox + dx - 1
                    if 0 <= wc < w_in:
                        mcat[wc * cin_eff:(wc + 1) * cin_eff,
                             base + ox * cout: base + (ox + 1) * cout] = blk
        # stride-2 row decimation over the batch-folded slab: sel[i, 2*i] = 1
        # (per-image even rows coincide with global even rows since h_in is even).
        r_in, r_out = batch_tile * h_in, batch_tile * h_out
        sel = np.zeros((r_out, r_in), np.float32)
        sel[np.arange(r_out), 2 * np.arange(r_out)] = 1.0
        shift_row = np.tile(shift.astype(np.float32), w_out).reshape(1, k_out)

        packed += [jnp.asarray(mcat).astype(jnp.bfloat16),
                   jnp.asarray(shift_row), jnp.asarray(sel)]
        stage_dims.append((h_in, h_out, w_in * cin_eff, k_out))
        h = h_out
    meta = dict(chans=chans, img=img_size, cin_pad=cin_pad, hp=h, wp=h,
                stage_dims=stage_dims, embed=chans[-1], n_stage=n_stage,
                batch_tile=batch_tile)
    return packed, raw, folded, meta


# --------------------------------- wrapper ---------------------------------------------
def make_forward(packed, meta):
    img, cin, cin_pad = meta["img"], meta["chans"][0], meta["cin_pad"]
    hp, wp, embed = meta["hp"], meta["wp"], meta["embed"]
    tb = meta["batch_tile"]
    stage_dims = meta["stage_dims"]
    kernel = _make_kernel(stage_dims, tb)

    in_specs = [pl.BlockSpec((tb * img, img * cin_pad), lambda b: (b, 0))]
    in_specs += [_full_spec(tuple(a.shape)) for a in packed]
    out_spec = pl.BlockSpec((tb, hp, wp * embed), lambda b: (b, 0, 0))

    # Advisory cost estimate (per image), scaled by the batch at call time.
    flops_img, trans_img = 0, 0
    for s, (h_in, h_out, lane_in, k) in enumerate(stage_dims):
        flops_img += 2 * h_in * lane_in * (3 * k)      # wide (taps + mix + BN-scale) matmul
        flops_img += 2 * h_out * h_in * k              # stride-2 row-selection matmul
        if s < len(stage_dims) - 1:
            trans_img += h_out * k                     # one exp per GELU element

    param_bytes = sum(int(np.prod(a.shape)) * a.dtype.itemsize for a in packed)
    in_block_bytes = tb * img * img * cin_pad * 2      # bf16 input block
    out_block_bytes = tb * hp * wp * embed * 4         # f32 output block
    # double-buffered params + activation blocks + slack for in-kernel temporaries
    vmem_bytes = int(2 * param_bytes + 4 * (in_block_bytes + out_block_bytes) + (8 << 20))

    @jax.jit
    def forward(x_nchw, *params):
        bsz = x_nchw.shape[0]
        assert bsz % tb == 0, "batch must be a multiple of the batch tile"
        n_tiles = bsz // tb
        # NCHW -> NHWC, zero-pad channels (3 -> 4), fold W onto lanes, cast to bf16.
        # Pure layout plumbing done by XLA outside the kernel.
        x_nhwc = jnp.transpose(x_nchw, (0, 2, 3, 1))
        if cin_pad > cin:
            x_nhwc = jnp.pad(x_nhwc, ((0, 0), (0, 0), (0, 0), (0, cin_pad - cin)))
        x_r = x_nhwc.reshape(bsz * img, img * cin_pad).astype(jnp.bfloat16)

        out = pl.pallas_call(
            kernel,
            out_shape=jax.ShapeDtypeStruct((bsz, hp, wp * embed), jnp.float32),
            grid=(n_tiles,),
            in_specs=in_specs,
            out_specs=out_spec,
            compiler_params=pltpu.CompilerParams(
                dimension_semantics=("parallel",) if n_tiles > 1 else ("arbitrary",),
                vmem_limit_bytes=vmem_bytes),
            cost_estimate=pl.CostEstimate(
                flops=bsz * flops_img,
                transcendentals=bsz * trans_img,
                bytes_accessed=param_bytes
                + bsz * (img * img * cin_pad * 2 + hp * wp * embed * 4)),
        )(x_r, *params)
        # (B, Hp, Wp*C) -> (B, Hp*Wp, C): exactly torch's flatten(2).transpose(1, 2) order
        tokens = out.reshape(bsz, hp * wp, embed)
        return tokens, (hp, wp)

    return forward


# --------------------------- pure-JAX references (for checking) ------------------------
def reference_forward(x_nchw, raw, folded=None):
    """folded=None: pure f32 conv + eval-mode BN fold.
    folded=list of bf16 (w*bn_scale): mirrors the kernel's bf16 weight/activation rounding
    with f32 accumulation, for a tight structural check of the kernel."""
    x = x_nchw
    n_stage = len(raw)
    for s, (w, gamma, beta, rmean, rvar) in enumerate(raw):
        scale = gamma / jnp.sqrt(rvar + BN_EPS)
        shift = beta - rmean * scale
        if folded is None:
            y = lax.conv_general_dilated(
                x, w, window_strides=(2, 2), padding=((1, 1), (1, 1)),
                dimension_numbers=("NCHW", "OIHW", "NCHW"))
            y = y * scale[None, :, None, None] + shift[None, :, None, None]
        else:
            y = lax.conv_general_dilated(
                x.astype(jnp.bfloat16), folded[s], window_strides=(2, 2),
                padding=((1, 1), (1, 1)),
                dimension_numbers=("NCHW", "OIHW", "NCHW"),
                preferred_element_type=jnp.float32)
            y = y + shift[None, :, None, None]
        x = jax.nn.gelu(y, approximate=False) if s < n_stage - 1 else y
    bsz, c, hp, wp = x.shape
    tokens = jnp.transpose(x.reshape(bsz, c, hp * wp), (0, 2, 1))
    return tokens, (hp, wp)


if __name__ == "__main__":
    key = jax.random.PRNGKey(0)
    kx, kp = jax.random.split(key)
    x = jax.random.normal(kx, (B, IN_CH, IMG, IMG), jnp.float32)   # NCHW, like the torch module
    packed, raw, folded, meta = build_params(kp, PATCH, IMG, EMBED, batch_tile=B)
    forward = make_forward(packed, meta)

    tokens, (hp, wp) = forward(x, *packed)
    jax.block_until_ready(tokens)
    assert tokens.shape == (B, hp * wp, EMBED)
    assert (hp, wp) == (IMG // PATCH, IMG // PATCH)

    # (1) tight structural check against a reference with the SAME bf16 weight/activation
    #     rounding (isolates kernel bugs from quantization); (2) bf16-level semantic check
    #     against the pure-f32 reference.
    ref_bf16, _ = reference_forward(x, raw, folded=folded)
    ref_f32, _ = reference_forward(x, raw)
    scale = 1.0 + float(jnp.max(jnp.abs(ref_f32)))
    err_tight = float(jnp.max(jnp.abs(tokens - ref_bf16)))
    err_loose = float(jnp.max(jnp.abs(tokens - ref_f32)))
    assert err_tight < 2e-3 * scale, f"bf16-consistent max abs err {err_tight} (tol {2e-3 * scale})"
    assert err_loose < 2e-2 * scale, f"f32-reference max abs err {err_loose} (tol {2e-2 * scale})"
    print("KERNEL_OK")
</pallas_src>

<mosaic_0001>
module attributes {stable_mosaic.version = 11 : i64} {
  func.func @kernel(%arg0: i32, %arg1: memref<64x128xbf16, #tpu.memory_space<vmem>>, %arg2: memref<128x768xbf16, #tpu.memory_space<vmem>>, %arg3: memref<1x256xf32, #tpu.memory_space<vmem>>, %arg4: memref<32x64xf32, #tpu.memory_space<vmem>>, %arg5: memref<256x768xbf16, #tpu.memory_space<vmem>>, %arg6: memref<1x256xf32, #tpu.memory_space<vmem>>, %arg7: memref<16x32xf32, #tpu.memory_space<vmem>>, %arg8: memref<256x768xbf16, #tpu.memory_space<vmem>>, %arg9: memref<1x256xf32, #tpu.memory_space<vmem>>, %arg10: memref<8x16xf32, #tpu.memory_space<vmem>>, %arg11: memref<256x768xbf16, #tpu.memory_space<vmem>>, %arg12: memref<1x256xf32, #tpu.memory_space<vmem>>, %arg13: memref<4x8xf32, #tpu.memory_space<vmem>>, %arg14: memref<2x2x256xf32, #tpu.memory_space<vmem>>) attributes {dimension_semantics = [#tpu.dimension_semantics<arbitrary>], iteration_bounds = array<i64: 1>, scalar_prefetch = 0 : i64, scratch_operands = 0 : i64, tpu.core_type = #tpu.core_type<tc>, window_params = [{transform_indices = @transform_0, window_bounds = array<i64: 64, 128>}, {pipeline_mode = #tpu.pipeline_mode<synchronous>, transform_indices = @transform_1, window_bounds = array<i64: 128, 768>}, {pipeline_mode = #tpu.pipeline_mode<synchronous>, transform_indices = @transform_2, window_bounds = array<i64: 1, 256>}, {pipeline_mode = #tpu.pipeline_mode<synchronous>, transform_indices = @transform_3, window_bounds = array<i64: 32, 64>}, {pipeline_mode = #tpu.pipeline_mode<synchronous>, transform_indices = @transform_4, window_bounds = array<i64: 256, 768>}, {pipeline_mode = #tpu.pipeline_mode<synchronous>, transform_indices = @transform_5, window_bounds = array<i64: 1, 256>}, {pipeline_mode = #tpu.pipeline_mode<synchronous>, transform_indices = @transform_6, window_bounds = array<i64: 16, 32>}, {pipeline_mode = #tpu.pipeline_mode<synchronous>, transform_indices = @transform_7, window_bounds = array<i64: 256, 768>}, {pipeline_mode = #tpu.pipeline_mode<synchronous>, transform_indices = @transform_8, window_bounds = array<i64: 1, 256>}, {pipeline_mode = #tpu.pipeline_mode<synchronous>, transform_indices = @transform_9, window_bounds = array<i64: 8, 16>}, {pipeline_mode = #tpu.pipeline_mode<synchronous>, transform_indices = @transform_10, window_bounds = array<i64: 256, 768>}, {pipeline_mode = #tpu.pipeline_mode<synchronous>, transform_indices = @transform_11, window_bounds = array<i64: 1, 256>}, {pipeline_mode = #tpu.pipeline_mode<synchronous>, transform_indices = @transform_12, window_bounds = array<i64: 4, 8>}, {transform_indices = @transform_13, window_bounds = array<i64: 2, 2, 256>}]} {
    %c0 = arith.constant 0 : index
    %c0_0 = arith.constant 0 : index
    %0 = vector.load %arg1[%c0, %c0_0] : memref<64x128xbf16, #tpu.memory_space<vmem>>, vector<64x128xbf16>
    %c0_1 = arith.constant 0 : index
    %c0_2 = arith.constant 0 : index
    %1 = vector.load %arg2[%c0_1, %c0_2] : memref<128x768xbf16, #tpu.memory_space<vmem>>, vector<128x768xbf16>
    %cst = arith.constant dense<0.000000e+00> : vector<64x768xf32>
    %2 = tpu.matmul %0, %1, %cst {dimension_numbers = #tpu.dot_dimension_numbers<[1], [0], [0], [1], [0, 0, 1, 1], [], []>} : vector<64x128xbf16>, vector<128x768xbf16>, vector<64x768xf32> -> vector<64x768xf32>
    %3 = vector.extract_strided_slice %2 {offsets = [0, 0], sizes = [64, 256], strides = [1, 1]} : vector<64x768xf32> to vector<64x256xf32>
    %4 = vector.extract_strided_slice %2 {offsets = [0, 256], sizes = [64, 256], strides = [1, 1]} : vector<64x768xf32> to vector<64x256xf32>
    %5 = vector.extract_strided_slice %2 {offsets = [0, 512], sizes = [64, 256], strides = [1, 1]} : vector<64x768xf32> to vector<64x256xf32>
    %c1_i32 = arith.constant 1 : i32
    %6 = tpu.dynamic_rotate %3 by %c1_i32 dim 0 : vector<64x256xf32>, i32 -> vector<64x256xf32>
    %c63_i32 = arith.constant 63 : i32
    %7 = tpu.dynamic_rotate %5 by %c63_i32 dim 0 : vector<64x256xf32>, i32 -> vector<64x256xf32>
    %8 = tpu.iota {dimensions = array<i32: 0>} : vector<64x1xi32>
    %c32_i32 = arith.constant 32 : i32
    %c0_i32 = arith.constant 0 : i32
    %9 = arith.cmpi eq, %c32_i32, %c0_i32 : i32
    %c1_i32_3 = arith.constant 1 : i32
    %10 = arith.select %9, %c1_i32_3, %c32_i32 : i32
    %11 = vector.broadcast %10 : i32 to vector<64x1xi32>
    %12 = arith.remsi %8, %11 : vector<64x1xi32>
    %c0_i32_4 = arith.constant 0 : i32
    %13 = vector.broadcast %c0_i32_4 : i32 to vector<64x1xi32>
    %14 = arith.cmpi ne, %12, %13 : vector<64x1xi32>
    %c0_i32_5 = arith.constant 0 : i32
    %15 = vector.broadcast %c0_i32_5 : i32 to vector<64x1xi32>
    %16 = arith.cmpi slt, %12, %15 : vector<64x1xi32>
    %c0_i32_6 = arith.constant 0 : i32
    %17 = arith.cmpi slt, %10, %c0_i32_6 : i32
    %18 = vector.broadcast %17 : i1 to vector<64x1xi1>
    %19 = vector.broadcast %18 : vector<64x1xi1> to vector<64x1xi1>
    %20 = arith.xori %16, %19 : vector<64x1xi1>
    %21 = arith.andi %20, %14 : vector<64x1xi1>
    %22 = vector.broadcast %10 : i32 to vector<64x1xi32>
    %23 = arith.addi %12, %22 : vector<64x1xi32>
    %24 = arith.select %21, %23, %12 : vector<64x1xi1>, vector<64x1xi32>
    %c0_i32_7 = arith.constant 0 : i32
    %25 = vector.broadcast %c0_i32_7 : i32 to vector<64x1xi32>
    %26 = arith.cmpi eq, %24, %25 : vector<64x1xi32>
    %cst_8 = arith.constant 0.000000e+00 : f32
    %27 = vector.shape_cast %26 : vector<64x1xi1> to vector<64x1xi1>
    %28 = vector.broadcast %27 : vector<64x1xi1> to vector<64x256xi1>
    %29 = vector.broadcast %cst_8 : f32 to vector<64x256xf32>
    %30 = arith.select %28, %29, %6 : vector<64x256xi1>, vector<64x256xf32>
    %31 = arith.addf %30, %4 : vector<64x256xf32>
    %32 = arith.addf %31, %7 : vector<64x256xf32>
    %c0_9 = arith.constant 0 : index
    %c0_10 = arith.constant 0 : index
    %33 = vector.load %arg4[%c0_9, %c0_10] : memref<32x64xf32, #tpu.memory_space<vmem>>, vector<32x64xf32>
    %cst_11 = arith.constant dense<0.000000e+00> : vector<32x256xf32>
    %34 = tpu.matmul %33, %32, %cst_11 {dimension_numbers = #tpu.dot_dimension_numbers<[1], [0], [0], [1], [0, 0, 1, 1], [], []>} : vector<32x64xf32>, vector<64x256xf32>, vector<32x256xf32> -> vector<32x256xf32>
    %c0_12 = arith.constant 0 : index
    %c0_13 = arith.constant 0 : index
    %35 = vector.load %arg3[%c0_12, %c0_13] : memref<1x256xf32, #tpu.memory_space<vmem>>, vector<1x256xf32>
    %36 = vector.broadcast %35 : vector<1x256xf32> to vector<32x256xf32>
    %37 = arith.addf %34, %36 : vector<32x256xf32>
    %cst_14 = arith.constant 5.000000e-01 : f32
    %38 = vector.broadcast %cst_14 : f32 to vector<32x256xf32>
    %39 = arith.mulf %38, %37 : vector<32x256xf32>
    %cst_15 = arith.constant 1.41421354 : f32
    %40 = vector.broadcast %cst_15 : f32 to vector<32x256xf32>
    %41 = arith.divf %37, %40 : vector<32x256xf32>
    %cst_16 = arith.constant 0.000000e+00 : f32
    %42 = vector.broadcast %cst_16 : f32 to vector<32x256xf32>
    %43 = arith.cmpf oge, %41, %42 : vector<32x256xf32>
    %cst_17 = arith.constant 1.000000e+00 : f32
    %cst_18 = arith.constant -1.000000e+00 : f32
    %44 = vector.broadcast %cst_17 : f32 to vector<32x256xf32>
    %45 = vector.broadcast %cst_18 : f32 to vector<32x256xf32>
    %46 = arith.select %43, %44, %45 : vector<32x256xi1>, vector<32x256xf32>
    %47 = math.absf %41 : vector<32x256xf32>
    %cst_19 = arith.constant 0.327591091 : f32
    %48 = vector.broadcast %cst_19 : f32 to vector<32x256xf32>
    %49 = arith.mulf %48, %47 : vector<32x256xf32>
    %cst_20 = arith.constant 1.000000e+00 : f32
    %50 = vector.broadcast %cst_20 : f32 to vector<32x256xf32>
    %51 = arith.addf %50, %49 : vector<32x256xf32>
    %cst_21 = arith.constant 1.000000e+00 : f32
    %52 = vector.broadcast %cst_21 : f32 to vector<32x256xf32>
    %53 = arith.divf %52, %51 : vector<32x256xf32>
    %cst_22 = arith.constant 1.06140542 : f32
    %54 = vector.broadcast %cst_22 : f32 to vector<32x256xf32>
    %55 = arith.mulf %54, %53 : vector<32x256xf32>
    %cst_23 = arith.constant -1.45315206 : f32
    %56 = vector.broadcast %cst_23 : f32 to vector<32x256xf32>
    %57 = arith.addf %55, %56 : vector<32x256xf32>
    %58 = arith.mulf %57, %53 : vector<32x256xf32>
    %cst_24 = arith.constant 1.42141378 : f32
    %59 = vector.broadcast %cst_24 : f32 to vector<32x256xf32>
    %60 = arith.addf %58, %59 : vector<32x256xf32>
    %61 = arith.mulf %60, %53 : vector<32x256xf32>
    %cst_25 = arith.constant -0.284496725 : f32
    %62 = vector.broadcast %cst_25 : f32 to vector<32x256xf32>
    %63 = arith.addf %61, %62 : vector<32x256xf32>
    %64 = arith.mulf %63, %53 : vector<32x256xf32>
    %cst_26 = arith.constant 0.254829586 : f32
    %65 = vector.broadcast %cst_26 : f32 to vector<32x256xf32>
    %66 = arith.addf %64, %65 : vector<32x256xf32>
    %67 = arith.mulf %66, %53 : vector<32x256xf32>
    %cst_27 = arith.constant 0.000000e+00 : f32
    %68 = vector.broadcast %cst_27 : f32 to vector<32x256xf32>
    %69 = arith.subf %68, %47 : vector<32x256xf32>
    %70 = arith.mulf %69, %47 : vector<32x256xf32>
    %71 = math.exp %70 : vector<32x256xf32>
    %72 = arith.mulf %67, %71 : vector<32x256xf32>
    %cst_28 = arith.constant 1.000000e+00 : f32
    %73 = vector.broadcast %cst_28 : f32 to vector<32x256xf32>
    %74 = arith.subf %73, %72 : vector<32x256xf32>
    %75 = arith.mulf %46, %74 : vector<32x256xf32>
    %cst_29 = arith.constant 1.000000e+00 : f32
    %76 = vector.broadcast %cst_29 : f32 to vector<32x256xf32>
    %77 = arith.addf %76, %75 : vector<32x256xf32>
    %78 = arith.mulf %39, %77 : vector<32x256xf32>
    %79 = arith.truncf %78 : vector<32x256xf32> to vector<32x256xbf16>
    %c0_30 = arith.constant 0 : index
    %c0_31 = arith.constant 0 : index
    %80 = vector.load %arg5[%c0_30, %c0_31] : memref<256x768xbf16, #tpu.memory_space<vmem>>, vector<256x768xbf16>
    %cst_32 = arith.constant dense<0.000000e+00> : vector<32x768xf32>
    %81 = tpu.matmul %79, %80, %cst_32 {dimension_numbers = #tpu.dot_dimension_numbers<[1], [0], [0], [1], [0, 0, 1, 1], [], []>} : vector<32x256xbf16>, vector<256x768xbf16>, vector<32x768xf32> -> vector<32x768xf32>
    %82 = vector.extract_strided_slice %81 {offsets = [0, 0], sizes = [32, 256], strides = [1, 1]} : vector<32x768xf32> to vector<32x256xf32>
    %83 = vector.extract_strided_slice %81 {offsets = [0, 256], sizes = [32, 256], strides = [1, 1]} : vector<32x768xf32> to vector<32x256xf32>
    %84 = vector.extract_strided_slice %81 {offsets = [0, 512], sizes = [32, 256], strides = [1, 1]} : vector<32x768xf32> to vector<32x256xf32>
    %c1_i32_33 = arith.constant 1 : i32
    %85 = tpu.dynamic_rotate %82 by %c1_i32_33 dim 0 : vector<32x256xf32>, i32 -> vector<32x256xf32>
    %c31_i32 = arith.constant 31 : i32
    %86 = tpu.dynamic_rotate %84 by %c31_i32 dim 0 : vector<32x256xf32>, i32 -> vector<32x256xf32>
    %87 = tpu.iota {dimensions = array<i32: 0>} : vector<32x1xi32>
    %c16_i32 = arith.constant 16 : i32
    %c0_i32_34 = arith.constant 0 : i32
    %88 = arith.cmpi eq, %c16_i32, %c0_i32_34 : i32
    %c1_i32_35 = arith.constant 1 : i32
    %89 = arith.select %88, %c1_i32_35, %c16_i32 : i32
    %90 = vector.broadcast %89 : i32 to vector<32x1xi32>
    %91 = arith.remsi %87, %90 : vector<32x1xi32>
    %c0_i32_36 = arith.constant 0 : i32
    %92 = vector.broadcast %c0_i32_36 : i32 to vector<32x1xi32>
    %93 = arith.cmpi ne, %91, %92 : vector<32x1xi32>
    %c0_i32_37 = arith.constant 0 : i32
    %94 = vector.broadcast %c0_i32_37 : i32 to vector<32x1xi32>
    %95 = arith.cmpi slt, %91, %94 : vector<32x1xi32>
    %c0_i32_38 = arith.constant 0 : i32
    %96 = arith.cmpi slt, %89, %c0_i32_38 : i32
    %97 = vector.broadcast %96 : i1 to vector<32x1xi1>
    %98 = vector.broadcast %97 : vector<32x1xi1> to vector<32x1xi1>
    %99 = arith.xori %95, %98 : vector<32x1xi1>
    %100 = arith.andi %99, %93 : vector<32x1xi1>
    %101 = vector.broadcast %89 : i32 to vector<32x1xi32>
    %102 = arith.addi %91, %101 : vector<32x1xi32>
    %103 = arith.select %100, %102, %91 : vector<32x1xi1>, vector<32x1xi32>
    %c0_i32_39 = arith.constant 0 : i32
    %104 = vector.broadcast %c0_i32_39 : i32 to vector<32x1xi32>
    %105 = arith.cmpi eq, %103, %104 : vector<32x1xi32>
    %cst_40 = arith.constant 0.000000e+00 : f32
    %106 = vector.shape_cast %105 : vector<32x1xi1> to vector<32x1xi1>
    %107 = vector.broadcast %106 : vector<32x1xi1> to vector<32x256xi1>
    %108 = vector.broadcast %cst_40 : f32 to vector<32x256xf32>
    %109 = arith.select %107, %108, %85 : vector<32x256xi1>, vector<32x256xf32>
    %110 = arith.addf %109, %83 : vector<32x256xf32>
    %111 = arith.addf %110, %86 : vector<32x256xf32>
    %c0_41 = arith.constant 0 : index
    %c0_42 = arith.constant 0 : index
    %112 = vector.load %arg7[%c0_41, %c0_42] : memref<16x32xf32, #tpu.memory_space<vmem>>, vector<16x32xf32>
    %cst_43 = arith.constant dense<0.000000e+00> : vector<16x256xf32>
    %113 = tpu.matmul %112, %111, %cst_43 {dimension_numbers = #tpu.dot_dimension_numbers<[1], [0], [0], [1], [0, 0, 1, 1], [], []>} : vector<16x32xf32>, vector<32x256xf32>, vector<16x256xf32> -> vector<16x256xf32>
    %c0_44 = arith.constant 0 : index
    %c0_45 = arith.constant 0 : index
    %114 = vector.load %arg6[%c0_44, %c0_45] : memref<1x256xf32, #tpu.memory_space<vmem>>, vector<1x256xf32>
    %115 = vector.broadcast %114 : vector<1x256xf32> to vector<16x256xf32>
    %116 = arith.addf %113, %115 : vector<16x256xf32>
    %cst_46 = arith.constant 5.000000e-01 : f32
    %117 = vector.broadcast %cst_46 : f32 to vector<16x256xf32>
    %118 = arith.mulf %117, %116 : vector<16x256xf32>
    %cst_47 = arith.constant 1.41421354 : f32
    %119 = vector.broadcast %cst_47 : f32 to vector<16x256xf32>
    %120 = arith.divf %116, %119 : vector<16x256xf32>
    %cst_48 = arith.constant 0.000000e+00 : f32
    %121 = vector.broadcast %cst_48 : f32 to vector<16x256xf32>
    %122 = arith.cmpf oge, %120, %121 : vector<16x256xf32>
    %cst_49 = arith.constant 1.000000e+00 : f32
    %cst_50 = arith.constant -1.000000e+00 : f32
    %123 = vector.broadcast %cst_49 : f32 to vector<16x256xf32>
    %124 = vector.broadcast %cst_50 : f32 to vector<16x256xf32>
    %125 = arith.select %122, %123, %124 : vector<16x256xi1>, vector<16x256xf32>
    %126 = math.absf %120 : vector<16x256xf32>
    %cst_51 = arith.constant 0.327591091 : f32
    %127 = vector.broadcast %cst_51 : f32 to vector<16x256xf32>
    %128 = arith.mulf %127, %126 : vector<16x256xf32>
    %cst_52 = arith.constant 1.000000e+00 : f32
    %129 = vector.broadcast %cst_52 : f32 to vector<16x256xf32>
    %130 = arith.addf %129, %128 : vector<16x256xf32>
    %cst_53 = arith.constant 1.000000e+00 : f32
    %131 = vector.broadcast %cst_53 : f32 to vector<16x256xf32>
    %132 = arith.divf %131, %130 : vector<16x256xf32>
    %cst_54 = arith.constant 1.06140542 : f32
    %133 = vector.broadcast %cst_54 : f32 to vector<16x256xf32>
    %134 = arith.mulf %133, %132 : vector<16x256xf32>
    %cst_55 = arith.constant -1.45315206 : f32
    %135 = vector.broadcast %cst_55 : f32 to vector<16x256xf32>
    %136 = arith.addf %134, %135 : vector<16x256xf32>
    %137 = arith.mulf %136, %132 : vector<16x256xf32>
    %cst_56 = arith.constant 1.42141378 : f32
    %138 = vector.broadcast %cst_56 : f32 to vector<16x256xf32>
    %139 = arith.addf %137, %138 : vector<16x256xf32>
    %140 = arith.mulf %139, %132 : vector<16x256xf32>
    %cst_57 = arith.constant -0.284496725 : f32
    %141 = vector.broadcast %cst_57 : f32 to vector<16x256xf32>
    %142 = arith.addf %140, %141 : vector<16x256xf32>
    %143 = arith.mulf %142, %132 : vector<16x256xf32>
    %cst_58 = arith.constant 0.254829586 : f32
    %144 = vector.broadcast %cst_58 : f32 to vector<16x256xf32>
    %145 = arith.addf %143, %144 : vector<16x256xf32>
    %146 = arith.mulf %145, %132 : vector<16x256xf32>
    %cst_59 = arith.constant 0.000000e+00 : f32
    %147 = vector.broadcast %cst_59 : f32 to vector<16x256xf32>
    %148 = arith.subf %147, %126 : vector<16x256xf32>
    %149 = arith.mulf %148, %126 : vector<16x256xf32>
    %150 = math.exp %149 : vector<16x256xf32>
    %151 = arith.mulf %146, %150 : vector<16x256xf32>
    %cst_60 = arith.constant 1.000000e+00 : f32
    %152 = vector.broadcast %cst_60 : f32 to vector<16x256xf32>
    %153 = arith.subf %152, %151 : vector<16x256xf32>
    %154 = arith.mulf %125, %153 : vector<16x256xf32>
    %cst_61 = arith.constant 1.000000e+00 : f32
    %155 = vector.broadcast %cst_61 : f32 to vector<16x256xf32>
    %156 = arith.addf %155, %154 : vector<16x256xf32>
    %157 = arith.mulf %118, %156 : vector<16x256xf32>
    %158 = arith.truncf %157 : vector<16x256xf32> to vector<16x256xbf16>
    %c0_62 = arith.constant 0 : index
    %c0_63 = arith.constant 0 : index
    %159 = vector.load %arg8[%c0_62, %c0_63] : memref<256x768xbf16, #tpu.memory_space<vmem>>, vector<256x768xbf16>
    %cst_64 = arith.constant dense<0.000000e+00> : vector<16x768xf32>
    %160 = tpu.matmul %158, %159, %cst_64 {dimension_numbers = #tpu.dot_dimension_numbers<[1], [0], [0], [1], [0, 0, 1, 1], [], []>} : vector<16x256xbf16>, vector<256x768xbf16>, vector<16x768xf32> -> vector<16x768xf32>
    %161 = vector.extract_strided_slice %160 {offsets = [0, 0], sizes = [16, 256], strides = [1, 1]} : vector<16x768xf32> to vector<16x256xf32>
    %162 = vector.extract_strided_slice %160 {offsets = [0, 256], sizes = [16, 256], strides = [1, 1]} : vector<16x768xf32> to vector<16x256xf32>
    %163 = vector.extract_strided_slice %160 {offsets = [0, 512], sizes = [16, 256], strides = [1, 1]} : vector<16x768xf32> to vector<16x256xf32>
    %c1_i32_65 = arith.constant 1 : i32
    %164 = tpu.dynamic_rotate %161 by %c1_i32_65 dim 0 : vector<16x256xf32>, i32 -> vector<16x256xf32>
    %c15_i32 = arith.constant 15 : i32
    %165 = tpu.dynamic_rotate %163 by %c15_i32 dim 0 : vector<16x256xf32>, i32 -> vector<16x256xf32>
    %166 = tpu.iota {dimensions = array<i32: 0>} : vector<16x1xi32>
    %c8_i32 = arith.constant 8 : i32
    %c0_i32_66 = arith.constant 0 : i32
    %167 = arith.cmpi eq, %c8_i32, %c0_i32_66 : i32
    %c1_i32_67 = arith.constant 1 : i32
    %168 = arith.select %167, %c1_i32_67, %c8_i32 : i32
    %169 = vector.broadcast %168 : i32 to vector<16x1xi32>
    %170 = arith.remsi %166, %169 : vector<16x1xi32>
    %c0_i32_68 = arith.constant 0 : i32
    %171 = vector.broadcast %c0_i32_68 : i32 to vector<16x1xi32>
    %172 = arith.cmpi ne, %170, %171 : vector<16x1xi32>
    %c0_i32_69 = arith.constant 0 : i32
    %173 = vector.broadcast %c0_i32_69 : i32 to vector<16x1xi32>
    %174 = arith.cmpi slt, %170, %173 : vector<16x1xi32>
    %c0_i32_70 = arith.constant 0 : i32
    %175 = arith.cmpi slt, %168, %c0_i32_70 : i32
    %176 = vector.broadcast %175 : i1 to vector<16x1xi1>
    %177 = vector.broadcast %176 : vector<16x1xi1> to vector<16x1xi1>
    %178 = arith.xori %174, %177 : vector<16x1xi1>
    %179 = arith.andi %178, %172 : vector<16x1xi1>
    %180 = vector.broadcast %168 : i32 to vector<16x1xi32>
    %181 = arith.addi %170, %180 : vector<16x1xi32>
    %182 = arith.select %179, %181, %170 : vector<16x1xi1>, vector<16x1xi32>
    %c0_i32_71 = arith.constant 0 : i32
    %183 = vector.broadcast %c0_i32_71 : i32 to vector<16x1xi32>
    %184 = arith.cmpi eq, %182, %183 : vector<16x1xi32>
    %cst_72 = arith.constant 0.000000e+00 : f32
    %185 = vector.shape_cast %184 : vector<16x1xi1> to vector<16x1xi1>
    %186 = vector.broadcast %185 : vector<16x1xi1> to vector<16x256xi1>
    %187 = vector.broadcast %cst_72 : f32 to vector<16x256xf32>
    %188 = arith.select %186, %187, %164 : vector<16x256xi1>, vector<16x256xf32>
    %189 = arith.addf %188, %162 : vector<16x256xf32>
    %190 = arith.addf %189, %165 : vector<16x256xf32>
    %c0_73 = arith.constant 0 : index
    %c0_74 = arith.constant 0 : index
    %191 = vector.load %arg10[%c0_73, %c0_74] : memref<8x16xf32, #tpu.memory_space<vmem>>, vector<8x16xf32>
    %cst_75 = arith.constant dense<0.000000e+00> : vector<8x256xf32>
    %192 = tpu.matmul %191, %190, %cst_75 {dimension_numbers = #tpu.dot_dimension_numbers<[1], [0], [0], [1], [0, 0, 1, 1], [], []>} : vector<8x16xf32>, vector<16x256xf32>, vector<8x256xf32> -> vector<8x256xf32>
    %c0_76 = arith.constant 0 : index
    %c0_77 = arith.constant 0 : index
    %193 = vector.load %arg9[%c0_76, %c0_77] : memref<1x256xf32, #tpu.memory_space<vmem>>, vector<1x256xf32>
    %194 = vector.broadcast %193 : vector<1x256xf32> to vector<8x256xf32>
    %195 = arith.addf %192, %194 : vector<8x256xf32>
    %cst_78 = arith.constant 5.000000e-01 : f32
    %196 = vector.broadcast %cst_78 : f32 to vector<8x256xf32>
    %197 = arith.mulf %196, %195 : vector<8x256xf32>
    %cst_79 = arith.constant 1.41421354 : f32
    %198 = vector.broadcast %cst_79 : f32 to vector<8x256xf32>
    %199 = arith.divf %195, %198 : vector<8x256xf32>
    %cst_80 = arith.constant 0.000000e+00 : f32
    %200 = vector.broadcast %cst_80 : f32 to vector<8x256xf32>
    %201 = arith.cmpf oge, %199, %200 : vector<8x256xf32>
    %cst_81 = arith.constant 1.000000e+00 : f32
    %cst_82 = arith.constant -1.000000e+00 : f32
    %202 = vector.broadcast %cst_81 : f32 to vector<8x256xf32>
    %203 = vector.broadcast %cst_82 : f32 to vector<8x256xf32>
    %204 = arith.select %201, %202, %203 : vector<8x256xi1>, vector<8x256xf32>
    %205 = math.absf %199 : vector<8x256xf32>
    %cst_83 = arith.constant 0.327591091 : f32
    %206 = vector.broadcast %cst_83 : f32 to vector<8x256xf32>
    %207 = arith.mulf %206, %205 : vector<8x256xf32>
    %cst_84 = arith.constant 1.000000e+00 : f32
    %208 = vector.broadcast %cst_84 : f32 to vector<8x256xf32>
    %209 = arith.addf %208, %207 : vector<8x256xf32>
    %cst_85 = arith.constant 1.000000e+00 : f32
    %210 = vector.broadcast %cst_85 : f32 to vector<8x256xf32>
    %211 = arith.divf %210, %209 : vector<8x256xf32>
    %cst_86 = arith.constant 1.06140542 : f32
    %212 = vector.broadcast %cst_86 : f32 to vector<8x256xf32>
    %213 = arith.mulf %212, %211 : vector<8x256xf32>
    %cst_87 = arith.constant -1.45315206 : f32
    %214 = vector.broadcast %cst_87 : f32 to vector<8x256xf32>
    %215 = arith.addf %213, %214 : vector<8x256xf32>
    %216 = arith.mulf %215, %211 : vector<8x256xf32>
    %cst_88 = arith.constant 1.42141378 : f32
    %217 = vector.broadcast %cst_88 : f32 to vector<8x256xf32>
    %218 = arith.addf %216, %217 : vector<8x256xf32>
    %219 = arith.mulf %218, %211 : vector<8x256xf32>
    %cst_89 = arith.constant -0.284496725 : f32
    %220 = vector.broadcast %cst_89 : f32 to vector<8x256xf32>
    %221 = arith.addf %219, %220 : vector<8x256xf32>
    %222 = arith.mulf %221, %211 : vector<8x256xf32>
    %cst_90 = arith.constant 0.254829586 : f32
    %223 = vector.broadcast %cst_90 : f32 to vector<8x256xf32>
    %224 = arith.addf %222, %223 : vector<8x256xf32>
    %225 = arith.mulf %224, %211 : vector<8x256xf32>
    %cst_91 = arith.constant 0.000000e+00 : f32
    %226 = vector.broadcast %cst_91 : f32 to vector<8x256xf32>
    %227 = arith.subf %226, %205 : vector<8x256xf32>
    %228 = arith.mulf %227, %205 : vector<8x256xf32>
    %229 = math.exp %228 : vector<8x256xf32>
    %230 = arith.mulf %225, %229 : vector<8x256xf32>
    %cst_92 = arith.constant 1.000000e+00 : f32
    %231 = vector.broadcast %cst_92 : f32 to vector<8x256xf32>
    %232 = arith.subf %231, %230 : vector<8x256xf32>
    %233 = arith.mulf %204, %232 : vector<8x256xf32>
    %cst_93 = arith.constant 1.000000e+00 : f32
    %234 = vector.broadcast %cst_93 : f32 to vector<8x256xf32>
    %235 = arith.addf %234, %233 : vector<8x256xf32>
    %236 = arith.mulf %197, %235 : vector<8x256xf32>
    %237 = arith.truncf %236 : vector<8x256xf32> to vector<8x256xbf16>
    %c0_94 = arith.constant 0 : index
    %c0_95 = arith.constant 0 : index
    %238 = vector.load %arg11[%c0_94, %c0_95] : memref<256x768xbf16, #tpu.memory_space<vmem>>, vector<256x768xbf16>
    %cst_96 = arith.constant dense<0.000000e+00> : vector<8x768xf32>
    %239 = tpu.matmul %237, %238, %cst_96 {dimension_numbers = #tpu.dot_dimension_numbers<[1], [0], [0], [1], [0, 0, 1, 1], [], []>} : vector<8x256xbf16>, vector<256x768xbf16>, vector<8x768xf32> -> vector<8x768xf32>
    %240 = vector.extract_strided_slice %239 {offsets = [0, 0], sizes = [8, 256], strides = [1, 1]} : vector<8x768xf32> to vector<8x256xf32>
    %241 = vector.extract_strided_slice %239 {offsets = [0, 256], sizes = [8, 256], strides = [1, 1]} : vector<8x768xf32> to vector<8x256xf32>
    %242 = vector.extract_strided_slice %239 {offsets = [0, 512], sizes = [8, 256], strides = [1, 1]} : vector<8x768xf32> to vector<8x256xf32>
    %c1_i32_97 = arith.constant 1 : i32
    %243 = tpu.dynamic_rotate %240 by %c1_i32_97 dim 0 : vector<8x256xf32>, i32 -> vector<8x256xf32>
    %c7_i32 = arith.constant 7 : i32
    %244 = tpu.dynamic_rotate %242 by %c7_i32 dim 0 : vector<8x256xf32>, i32 -> vector<8x256xf32>
    %245 = tpu.iota {dimensions = array<i32: 0>} : vector<8x1xi32>
    %c4_i32 = arith.constant 4 : i32
    %c0_i32_98 = arith.constant 0 : i32
    %246 = arith.cmpi eq, %c4_i32, %c0_i32_98 : i32
    %c1_i32_99 = arith.constant 1 : i32
    %247 = arith.select %246, %c1_i32_99, %c4_i32 : i32
    %248 = vector.broadcast %247 : i32 to vector<8x1xi32>
    %249 = arith.remsi %245, %248 : vector<8x1xi32>
    %c0_i32_100 = arith.constant 0 : i32
    %250 = vector.broadcast %c0_i32_100 : i32 to vector<8x1xi32>
    %251 = arith.cmpi ne, %249, %250 : vector<8x1xi32>
    %c0_i32_101 = arith.constant 0 : i32
    %252 = vector.broadcast %c0_i32_101 : i32 to vector<8x1xi32>
    %253 = arith.cmpi slt, %249, %252 : vector<8x1xi32>
    %c0_i32_102 = arith.constant 0 : i32
    %254 = arith.cmpi slt, %247, %c0_i32_102 : i32
    %255 = vector.broadcast %254 : i1 to vector<8x1xi1>
    %256 = vector.broadcast %255 : vector<8x1xi1> to vector<8x1xi1>
    %257 = arith.xori %253, %256 : vector<8x1xi1>
    %258 = arith.andi %257, %251 : vector<8x1xi1>
    %259 = vector.broadcast %247 : i32 to vector<8x1xi32>
    %260 = arith.addi %249, %259 : vector<8x1xi32>
    %261 = arith.select %258, %260, %249 : vector<8x1xi1>, vector<8x1xi32>
    %c0_i32_103 = arith.constant 0 : i32
    %262 = vector.broadcast %c0_i32_103 : i32 to vector<8x1xi32>
    %263 = arith.cmpi eq, %261, %262 : vector<8x1xi32>
    %cst_104 = arith.constant 0.000000e+00 : f32
    %264 = vector.shape_cast %263 : vector<8x1xi1> to vector<8x1xi1>
    %265 = vector.broadcast %264 : vector<8x1xi1> to vector<8x256xi1>
    %266 = vector.broadcast %cst_104 : f32 to vector<8x256xf32>
    %267 = arith.select %265, %266, %243 : vector<8x256xi1>, vector<8x256xf32>
    %268 = arith.addf %267, %241 : vector<8x256xf32>
    %269 = arith.addf %268, %244 : vector<8x256xf32>
    %c0_105 = arith.constant 0 : index
    %c0_106 = arith.constant 0 : index
    %270 = vector.load %arg13[%c0_105, %c0_106] : memref<4x8xf32, #tpu.memory_space<vmem>>, vector<4x8xf32>
    %cst_107 = arith.constant dense<0.000000e+00> : vector<4x256xf32>
    %271 = tpu.matmul %270, %269, %cst_107 {dimension_numbers = #tpu.dot_dimension_numbers<[1], [0], [0], [1], [0, 0, 1, 1], [], []>} : vector<4x8xf32>, vector<8x256xf32>, vector<4x256xf32> -> vector<4x256xf32>
    %c0_108 = arith.constant 0 : index
    %c0_109 = arith.constant 0 : index
    %272 = vector.load %arg12[%c0_108, %c0_109] : memref<1x256xf32, #tpu.memory_space<vmem>>, vector<1x256xf32>
    %273 = vector.broadcast %272 : vector<1x256xf32> to vector<4x256xf32>
    %274 = arith.addf %271, %273 : vector<4x256xf32>
    %275 = vector.extract_strided_slice %274 {offsets = [0, 0], sizes = [2, 256], strides = [1, 1]} : vector<4x256xf32> to vector<2x256xf32>
    %c0_110 = arith.constant 0 : index
    %c0_111 = arith.constant 0 : index
    %c0_112 = arith.constant 0 : index
    %276 = vector.load %arg14[%c0_110, %c0_111, %c0_112] : memref<2x2x256xf32, #tpu.memory_space<vmem>>, vector<1x2x256xf32>
    %277 = vector.shape_cast %276 : vector<1x2x256xf32> to vector<2x256xf32>
    %278 = vector.shape_cast %275 : vector<2x256xf32> to vector<1x2x256xf32>
    tpu.vector_store %arg14[%c0_110, %c0_111, %c0_112], %278 {strides = array<i32>} : memref<2x2x256xf32, #tpu.memory_space<vmem>>, vector<1x2x256xf32>,
    %279 = vector.extract_strided_slice %274 {offsets = [2, 0], sizes = [2, 256], strides = [1, 1]} : vector<4x256xf32> to vector<2x256xf32>
    %c1 = arith.constant 1 : index
    %c0_113 = arith.constant 0 : index
    %c0_114 = arith.constant 0 : index
    %280 = vector.load %arg14[%c1, %c0_113, %c0_114] : memref<2x2x256xf32, #tpu.memory_space<vmem>>, vector<1x2x256xf32>
    %281 = vector.shape_cast %280 : vector<1x2x256xf32> to vector<2x256xf32>
    %282 = vector.shape_cast %279 : vector<2x256xf32> to vector<1x2x256xf32>
    tpu.vector_store %arg14[%c1, %c0_113, %c0_114], %282 {strides = array<i32>} : memref<2x2x256xf32, #tpu.memory_space<vmem>>, vector<1x2x256xf32>,
    return
  }
  func.func @transform_0(%arg0: i32) -> (i32, i32) {
    %c0_i32 = arith.constant 0 : i32
    %c0_i32_0 = arith.constant 0 : i32
    return %arg0, %c0_i32 : i32, i32
  }
  func.func @transform_1(%arg0: i32) -> (i32, i32) {
    %c0_i32 = arith.constant 0 : i32
    %c0_i32_0 = arith.constant 0 : i32
    %c0_i32_1 = arith.constant 0 : i32
    return %c0_i32, %c0_i32_0 : i32, i32
  }
  func.func @transform_2(%arg0: i32) -> (i32, i32) {
    %c0_i32 = arith.constant 0 : i32
    %c0_i32_0 = arith.constant 0 : i32
    %c0_i32_1 = arith.constant 0 : i32
    return %c0_i32, %c0_i32_0 : i32, i32
  }
  func.func @transform_3(%arg0: i32) -> (i32, i32) {
    %c0_i32 = arith.constant 0 : i32
    %c0_i32_0 = arith.constant 0 : i32
    %c0_i32_1 = arith.constant 0 : i32
    return %c0_i32, %c0_i32_0 : i32, i32
  }
  func.func @transform_4(%arg0: i32) -> (i32, i32) {
    %c0_i32 = arith.constant 0 : i32
    %c0_i32_0 = arith.constant 0 : i32
    %c0_i32_1 = arith.constant 0 : i32
    return %c0_i32, %c0_i32_0 : i32, i32
  }
  func.func @transform_5(%arg0: i32) -> (i32, i32) {
    %c0_i32 = arith.constant 0 : i32
    %c0_i32_0 = arith.constant 0 : i32
    %c0_i32_1 = arith.constant 0 : i32
    return %c0_i32, %c0_i32_0 : i32, i32
  }
  func.func @transform_6(%arg0: i32) -> (i32, i32) {
    %c0_i32 = arith.constant 0 : i32
    %c0_i32_0 = arith.constant 0 : i32
    %c0_i32_1 = arith.constant 0 : i32
    return %c0_i32, %c0_i32_0 : i32, i32
  }
  func.func @transform_7(%arg0: i32) -> (i32, i32) {
    %c0_i32 = arith.constant 0 : i32
    %c0_i32_0 = arith.constant 0 : i32
    %c0_i32_1 = arith.constant 0 : i32
    return %c0_i32, %c0_i32_0 : i32, i32
  }
  func.func @transform_8(%arg0: i32) -> (i32, i32) {
    %c0_i32 = arith.constant 0 : i32
    %c0_i32_0 = arith.constant 0 : i32
    %c0_i32_1 = arith.constant 0 : i32
    return %c0_i32, %c0_i32_0 : i32, i32
  }
  func.func @transform_9(%arg0: i32) -> (i32, i32) {
    %c0_i32 = arith.constant 0 : i32
    %c0_i32_0 = arith.constant 0 : i32
    %c0_i32_1 = arith.constant 0 : i32
    return %c0_i32, %c0_i32_0 : i32, i32
  }
  func.func @transform_10(%arg0: i32) -> (i32, i32) {
    %c0_i32 = arith.constant 0 : i32
    %c0_i32_0 = arith.constant 0 : i32
    %c0_i32_1 = arith.constant 0 : i32
    return %c0_i32, %c0_i32_0 : i32, i32
  }
  func.func @transform_11(%arg0: i32) -> (i32, i32) {
    %c0_i32 = arith.constant 0 : i32
    %c0_i32_0 = arith.constant 0 : i32
    %c0_i32_1 = arith.constant 0 : i32
    return %c0_i32, %c0_i32_0 : i32, i32
  }
  func.func @transform_12(%arg0: i32) -> (i32, i32) {
    %c0_i32 = arith.constant 0 : i32
    %c0_i32_0 = arith.constant 0 : i32
    %c0_i32_1 = arith.constant 0 : i32
    return %c0_i32, %c0_i32_0 : i32, i32
  }
  func.func @transform_13(%arg0: i32) -> (i32, i32, i32) {
    %c0_i32 = arith.constant 0 : i32
    %c0_i32_0 = arith.constant 0 : i32
    %c0_i32_1 = arith.constant 0 : i32
    return %arg0, %c0_i32, %c0_i32_0 : i32, i32, i32
  }
}

</mosaic_0001>

<bundles_post_ra>
// kernel: forward.1
= control target key start
LH: loop header
LB: loop body
LE: loop exit
PB: predicated region body
PF: predicated region fallthrough
CT: control target
= control target key end

     0   :  { %18 = vsyncpa [#allocation3], 0  ;;  %s6002_s0 = inlined_call_operand.vmem [shape: bf16[64,128], index: 0, kind: input, shape index: {}]   ;;  %s6003_s1 = inlined_call_operand.hbm [shape: bf16[128,768], index: 1, kind: input, shape index: {}]   ;;  %s6004_s2 = inlined_call_operand.vmem [shape: f32[1,256], index: 2, kind: input, shape index: {}]   ;;  %s6005_s3 = inlined_call_operand.vmem [shape: f32[32,64], index: 3, kind: input, shape index: {}]   ;;  %s6006_s4 = inlined_call_operand.vmem [shape: bf16[256,768], index: 4, kind: input, shape index: {}]   ;;  %s6007_s5 = inlined_call_operand.vmem [shape: f32[1,256], index: 5, kind: input, shape index: {}]   ;;  %s6008_s6 = inlined_call_operand.vmem [shape: f32[16,32], index: 6, kind: input, shape index: {}]   ;;  %s6009_s7 = inlined_call_operand.hbm [shape: bf16[256,768], index: 7, kind: input, shape index: {}]   ;;  %s6010_s8 = inlined_call_operand.vmem [shape: f32[1,256], index: 8, kind: input, shape index: {}]   ;;  %s6011_s9 = inlined_call_operand.vmem [shape: f32[8,16], index: 9, kind: input, shape index: {}]   ;;  %s6012_s10 = inlined_call_operand.hbm [shape: bf16[256,768], index: 10, kind: input, shape index: {}]   ;;  %s6013_s11 = inlined_call_operand.vmem [shape: f32[1,256], index: 11, kind: input, shape index: {}]   ;;  %s6014_s12 = inlined_call_operand.vmem [shape: f32[4,8], index: 12, kind: input, shape index: {}]   ;;  %s6015_s13 = inlined_call_operand.vmem [shape: f32[2,2,256], index: 13, kind: output, shape index: {}]  }
   0x1   :  { %19 = vsyncpa [#allocation5], 0  ;;  %s5028_s25 = smov [#allocation4]   ;;  %s5029_s27 = smov [#allocation2]  }
   0x2   :  { %s49_s26 = sshll.u32 %s5028_s25, 4  ;;  %s27_s28 = sshll.u32 %s5029_s27, 4  ;;  %s50_s26 = int_to_ptr.vmem [resolvable:$true] %s49_s26  ;;  %s5107_s28 = int_to_ptr.vmem [resolvable:$true] %s27_s28 }
   0x3   :  { %s4958_s14 = scalar_lea.hbm %s6009_s7, 12288 }
   0x4   :  { %p4959_p0 = scmp.ne.s32.totalorder %s6009_s7, %s4958_s14  ;;  %p4962_p1 = scmp.lt.u32.totalorder %s4958_s14, %s6009_s7 }
   0x6   :  { %p4964_p2 = pnand %p4962_p1, %p4959_p0 }
   0x8   :  { %4967 = shalt.err (!%p4964_p2)
}
   0x9   :  { %s4968_s19 = scalar_lea.vmem %s50_s26, 12288  ;;  %p4973_p4 = scmp.lt.s32.totalorder %s50_s26, %s50_s26 }
   0xa   :  { %p4969_p3 = scmp.ne.s32.totalorder %s50_s26, %s4968_s19  ;;  %p4974_p5 = scmp.lt.s32.totalorder %s4968_s19, %s4968_s19 }
   0xc   :  { %p4975_p6 = por %p4974_p5, %p4973_p4 }
   0xe   :  { %p4976_p7 = pnand %p4975_p6, %p4969_p3 }
  0x10   :  { %4979 = shalt.err (!%p4976_p7)
}
  0x11   :  { %s5030_s20 = smov 384   ;;  %s5031_s21 = smov 24  }
  0x12   :  { %55 = dma.hbm_to_vmem [thread:$0]  %s6009_s7, 12288, %s50_s26, [#allocation5], %s5030_s20, %s5030_s20, %s5031_s21  }
  0x13   :  { %s4980_s27 = scalar_lea.hbm %s6003_s1, 6144 }
  0x14   :  { %p4981_p8 = scmp.ne.s32.totalorder %s6003_s1, %s4980_s27  ;;  %p4984_p9 = scmp.lt.u32.totalorder %s4980_s27, %s6003_s1 }
  0x16   :  { %p4986_p10 = pnand %p4984_p9, %p4981_p8 }
  0x18   :  { %4989 = shalt.err (!%p4986_p10)
}
  0x19   :  { %s4990_s16 = scalar_lea.vmem %s5107_s28, 6144  ;;  %p4995_p12 = scmp.lt.s32.totalorder %s5107_s28, %s5107_s28 }
  0x1a   :  { %p4991_p11 = scmp.ne.s32.totalorder %s5107_s28, %s4990_s16  ;;  %p4996_p13 = scmp.lt.s32.totalorder %s4990_s16, %s4990_s16 }
  0x1c   :  { %p4997_p0 = por %p4996_p13, %p4995_p12 }
  0x1e   :  { %p4998_p1 = pnand %p4997_p0, %p4991_p11 }
  0x20   :  { %5001 = shalt.err (!%p4998_p1)
}
  0x21   :  { %33 = dma.hbm_to_vmem [thread:$0]  %s6003_s1, 6144, %s5107_s28, [#allocation3], %s5030_s20, %s5030_s20, %s5031_s21  }
  0x22   :  { %s5032_s17 = smov [#allocation6]   ;;  %s5002_s23 = scalar_lea.hbm %s6012_s10, 12288 }
  0x23   :  { %s65_s18 = sshll.u32 %s5032_s17, 4  ;;  %p5003_p2 = scmp.ne.s32.totalorder %s6012_s10, %s5002_s23  ;;  %s66_s18 = int_to_ptr.vmem [resolvable:$true] %s65_s18 }
  0x24   :  { %p5006_p3 = scmp.lt.u32.totalorder %s5002_s23, %s6012_s10 }
  0x26   :  { %p5008_p4 = pnand %p5006_p3, %p5003_p2 }
  0x28   :  { %5011 = shalt.err (!%p5008_p4)
}
  0x29   :  { %s5012_s30 = scalar_lea.vmem %s66_s18, 12288  ;;  %p5017_p6 = scmp.lt.s32.totalorder %s66_s18, %s66_s18 }
  0x2a   :  { %p5013_p5 = scmp.ne.s32.totalorder %s66_s18, %s5012_s30  ;;  %p5018_p7 = scmp.lt.s32.totalorder %s5012_s30, %s5012_s30 }
  0x2c   :  { %p5019_p8 = por %p5018_p7, %p5017_p6 }
  0x2e   :  { %p5020_p9 = pnand %p5019_p8, %p5013_p5 }
  0x30   :  { %5023 = shalt.err (!%p5020_p9)
}
  0x31   :  { %71 = dma.hbm_to_vmem [thread:$0]  %s6012_s10, 12288, %s66_s18, [#allocation5], %s5030_s20, %s5030_s20, %s5031_s21  }
  0x32   :  { %5024 = dma.done.wait [#allocation3], 6144  }
  0x33   :  { %5025 = vsyncadd [#allocation3], 4294961152 }
  0x34   :  { %5026 = dma.done.wait [#allocation5], 24576  }
  0x35   :  { %5027 = vsyncadd [#allocation5], 4294942720  ;;  %v5033_v0 = vmov 0   ;;  %v4394_v1 = vld [vmem:[#allocation2 + $0x4] ss:$24 sps:$4 sm:$0xff]   ;;  %v4449_v39 = vld [vmem:[%s6002_s0 + $0x8] sm:$0xff]   ;;  %v641_v58 = vlaneseq }
  0x36   :  { %438 = vmatprep.mubr.bf16.mxu1 %v5033_v0  ;;  %584 = vmatprep.mubr.bf16.mxu0 %v5033_v0  ;;  %v4396_v2 = vld [vmem:[#allocation2] ss:$24 sps:$4 sm:$0xff]   ;;  %v4397_v3 = vld [vmem:[#allocation2 + $0x14] ss:$24 sps:$4 sm:$0xff]   ;;  %v4399_v4 = vld [vmem:[#allocation2 + $0x10] ss:$24 sps:$4 sm:$0xff]  }
  0x37   :  { %406 = vmatprep.subr.bf16.mxu1 %v4394_v1  ;;  %v4400_v5 = vld [vmem:[#allocation2 + $0x34] ss:$24 sps:$4 sm:$0xff]   ;;  %v4402_v6 = vld [vmem:[#allocation2 + $0x30] ss:$24 sps:$4 sm:$0xff]   ;;  %552 = vmatprep.subr.bf16.mxu0 %v4397_v3  ;;  %v4403_v7 = vld [vmem:[#allocation2 + $0x44] ss:$24 sps:$4 sm:$0xff]  }
  0x38   :  { %407 = vmatpush1.bf16.msra.mxu1 %v4396_v2  ;;  %553 = vmatpush1.bf16.msra.mxu0 %v4399_v4  ;;  %v4405_v8 = vld [vmem:[#allocation2 + $0x40] ss:$24 sps:$4 sm:$0xff]   ;;  %v4406_v9 = vld [vmem:[#allocation2 + $0x64] ss:$24 sps:$4 sm:$0xff]   ;;  %v4409_v11 = vld [vmem:[#allocation2 + $0x74] ss:$24 sps:$4 sm:$0xff]  }
  0x39   :  { %408 = vmatprep.subr.bf16.mxu1 %v4400_v5  ;;  %554 = vmatprep.subr.bf16.mxu0 %v4403_v7  ;;  %v4408_v10 = vld [vmem:[#allocation2 + $0x60] ss:$24 sps:$4 sm:$0xff]   ;;  %v4412_v12 = vld [vmem:[#allocation2 + $0x94] ss:$24 sps:$4 sm:$0xff]   ;;  %v4411_v13 = vld [vmem:[#allocation2 + $0x70] ss:$24 sps:$4 sm:$0xff]  }
  0x3a   :  { %v4415_v14 = vld [vmem:[#allocation2 + $0xa4] ss:$24 sps:$4 sm:$0xff]   ;;  %v4414_v15 = vld [vmem:[#allocation2 + $0x90] ss:$24 sps:$4 sm:$0xff]   ;;  %v4417_v17 = vld [vmem:[#allocation2 + $0xa0] ss:$24 sps:$4 sm:$0xff]  }
  0x3b   :  { %v4418_v16 = vld [vmem:[#allocation2 + $0xc4] ss:$24 sps:$4 sm:$0xff]   ;;  %v4421_v18 = vld [vmem:[#allocation2 + $0xd4] ss:$24 sps:$4 sm:$0xff]   ;;  %v4420_v19 = vld [vmem:[#allocation2 + $0xc0] ss:$24 sps:$4 sm:$0xff]  }
  0x3c   :  { %409 = vmatpush1.bf16.msra.mxu1 %v4402_v6  ;;  %555 = vmatpush1.bf16.msra.mxu0 %v4405_v8  ;;  %v4424_v20 = vld [vmem:[#allocation2 + $0xf4] ss:$24 sps:$4 sm:$0xff]   ;;  %v4423_v21 = vld [vmem:[#allocation2 + $0xd0] ss:$24 sps:$4 sm:$0xff]   ;;  %v4427_v22 = vld [vmem:[#allocation2 + $0x104] ss:$24 sps:$4 sm:$0xff]  }
  0x3d   :  { %410 = vmatprep.subr.bf16.mxu1 %v4406_v9  ;;  %556 = vmatprep.subr.bf16.mxu0 %v4409_v11  ;;  %v4426_v23 = vld [vmem:[#allocation2 + $0xf0] ss:$24 sps:$4 sm:$0xff]   ;;  %v4430_v24 = vld [vmem:[#allocation2 + $0x124] ss:$24 sps:$4 sm:$0xff]   ;;  %v4429_v25 = vld [vmem:[#allocation2 + $0x100] ss:$24 sps:$4 sm:$0xff]  }
  0x3e   :  { %v4433_v26 = vld [vmem:[#allocation2 + $0x134] ss:$24 sps:$4 sm:$0xff]   ;;  %v4432_v27 = vld [vmem:[#allocation2 + $0x120] ss:$24 sps:$4 sm:$0xff]   ;;  %v4435_v29 = vld [vmem:[#allocation2 + $0x130] ss:$24 sps:$4 sm:$0xff]  }
  0x3f   :  { %v4436_v28 = vld [vmem:[#allocation2 + $0x154] ss:$24 sps:$4 sm:$0xff]   ;;  %v4439_v30 = vld [vmem:[#allocation2 + $0x164] ss:$24 sps:$4 sm:$0xff]   ;;  %v4438_v31 = vld [vmem:[#allocation2 + $0x150] ss:$24 sps:$4 sm:$0xff]  }
  0x40   :  { %411 = vmatpush1.bf16.msra.mxu1 %v4408_v10  ;;  %557 = vmatpush1.bf16.msra.mxu0 %v4411_v13  ;;  %v4445_v32 = vld [vmem:[#allocation2 + $0xc] ss:$24 sps:$4 sm:$0xff]   ;;  %v4441_v33 = vld [vmem:[#allocation2 + $0x160] ss:$24 sps:$4 sm:$0xff]   ;;  %v4448_v36 = vld [vmem:[#allocation2 + $0x3c] ss:$24 sps:$4 sm:$0xff]  }
  0x41   :  { %412 = vmatprep.subr.bf16.mxu1 %v4412_v12  ;;  %558 = vmatprep.subr.bf16.mxu0 %v4415_v14  ;;  %v4442_v34 = vld [vmem:[%s6002_s0] sm:$0xff]   ;;  %v4446_v37 = vld [vmem:[#allocation2 + $0x38] ss:$24 sps:$4 sm:$0xff]   ;;  %v4455_v41 = vld [vmem:[#allocation2 + $0x9c] ss:$24 sps:$4 sm:$0xff]   ;;  %v5034_v53 = vmov 0.0  }
  0x42   :  { %v4443_v35 = vld [vmem:[#allocation2 + $0x8] ss:$24 sps:$4 sm:$0xff]   ;;  %v4452_v38 = vld [vmem:[#allocation2 + $0x6c] ss:$24 sps:$4 sm:$0xff]   ;;  %v4453_v42 = vld [vmem:[#allocation2 + $0x98] ss:$24 sps:$4 sm:$0xff]  }
  0x43   :  { %v4450_v40 = vld [vmem:[#allocation2 + $0x68] ss:$24 sps:$4 sm:$0xff]   ;;  %v4459_v43 = vld [vmem:[#allocation2 + $0xcc] ss:$24 sps:$4 sm:$0xff]   ;;  %v4456_v44 = vld [vmem:[%s6002_s0 + $0x10] sm:$0xff]   ;;  %v5196_v59 = vshrl.u32 %v641_v58, 7 }
  0x44   :  { %413 = vmatpush1.bf16.msra.mxu1 %v4414_v15  ;;  %559 = vmatpush1.bf16.msra.mxu0 %v4417_v17  ;;  %v4457_v45 = vld [vmem:[#allocation2 + $0xc8] ss:$24 sps:$4 sm:$0xff]   ;;  %v4462_v46 = vld [vmem:[#allocation2 + $0xfc] ss:$24 sps:$4 sm:$0xff]   ;;  %v4460_v47 = vld [vmem:[#allocation2 + $0xf8] ss:$24 sps:$4 sm:$0xff]  }
  0x45   :  { %414 = vmatprep.subr.bf16.mxu1 %v4418_v16  ;;  %560 = vmatprep.subr.bf16.mxu0 %v4421_v18  ;;  %v4466_v48 = vld [vmem:[#allocation2 + $0x12c] ss:$24 sps:$4 sm:$0xff]   ;;  %v4463_v49 = vld [vmem:[%s6002_s0 + $0x18] sm:$0xff]   ;;  %v4464_v50 = vld [vmem:[#allocation2 + $0x128] ss:$24 sps:$4 sm:$0xff]   ;;  %vm643_vm0 = vcmp.lt.s32.totalorder %v5196_v59, 1 }
  0x46   :  { %v4469_v51 = vld [vmem:[#allocation2 + $0x15c] ss:$24 sps:$4 sm:$0xff]   ;;  %v4467_v52 = vld [vmem:[#allocation2 + $0x158] ss:$24 sps:$4 sm:$0xff]   ;;  %vm676_vm1 = vcmp.lt.s32.totalorder %v5196_v59, 7  ;;  %vm884_vm4 = vcmask 523264  }
  0x47   :  { %v4470_v54 = vld [vmem:[%s6006_s4] ss:$24 sps:$4 sm:$0xff]   ;;  %v4472_v55 = vld [vmem:[%s6006_s4 + $0x4] ss:$24 sps:$4 sm:$0xff]   ;;  %v4478_v56 = vld [vmem:[%s6006_s4 + $0x34] ss:$24 sps:$4 sm:$0xff]  }
  0x48   :  { %415 = vmatpush1.bf16.msra.mxu1 %v4420_v19  ;;  %561 = vmatpush1.bf16.msra.mxu0 %v4423_v21  ;;  %v4476_v57 = vld [vmem:[%s6006_s4 + $0x30] ss:$24 sps:$4 sm:$0xff]   ;;  %vm2072_vm15 = vcmask 261120  }
  0x49   :  { %416 = vmatprep.subr.bf16.mxu1 %v4424_v20  ;;  %562 = vmatprep.subr.bf16.mxu0 %v4427_v22 }
  0x4c   :  { %417 = vmatpush1.bf16.msra.mxu1 %v4426_v23  ;;  %563 = vmatpush1.bf16.msra.mxu0 %v4429_v25 }
  0x4d   :  { %418 = vmatprep.subr.bf16.mxu1 %v4430_v24  ;;  %564 = vmatprep.subr.bf16.mxu0 %v4433_v26 }
  0x50   :  { %419 = vmatpush1.bf16.msra.mxu1 %v4432_v27  ;;  %565 = vmatpush1.bf16.msra.mxu0 %v4435_v29 }
  0x51   :  { %420 = vmatprep.subr.bf16.mxu1 %v4436_v28  ;;  %566 = vmatprep.subr.bf16.mxu0 %v4439_v30 }
  0x54   :  { %421 = vmatpush1.bf16.msra.mxu1 %v4438_v31  ;;  %567 = vmatpush1.bf16.msra.mxu0 %v4441_v33 }
  0x55   :  { %479 = vmatprep.subr.bf16.mxu1 %v4445_v32  ;;  %1783 = vmatprep.subr.bf16.mxu0 %v4472_v55 }
  0x57   :  { %439 = vmatmul.mubr.bf16.vlgmr.msra.gmra.mrb[0].mxu1 %v4442_v34  ;;  %585 = vmatmul.mubr.bf16.vlgmr.msra.gmra.mrb[0].mxu0 %v4442_v34 }
  0x58   :  { %480 = vmatpush1.bf16.msra.mxu1 %v4443_v35  ;;  %448 = vmatprep.mubr.bf16.mxu1 %v5033_v0 }
  0x59   :  { %481 = vmatprep.subr.bf16.mxu1 %v4448_v36  ;;  %594 = vmatprep.mubr.bf16.mxu0 %v5033_v0 }
  0x5a   :  { %1784 = vmatpush1.bf16.msra.mxu0 %v4470_v54 }
  0x5b   :  { %1785 = vmatprep.subr.bf16.mxu0 %v4478_v56 }
  0x5c   :  { %482 = vmatpush1.bf16.msra.mxu1 %v4446_v37 }
  0x5d   :  { %483 = vmatprep.subr.bf16.mxu1 %v4452_v38 }
  0x5e   :  { %1786 = vmatpush1.bf16.msra.mxu0 %v4476_v57 }
  0x5f   :  { %449 = vmatmul.mubr.bf16.gmra.mrb[4].mxu1 %v4449_v39  ;;  %595 = vmatmul.mubr.bf16.gmra.mrb[4].mxu0 %v4449_v39 }
  0x60   :  { %484 = vmatpush1.bf16.msra.mxu1 %v4450_v40  ;;  %458 = vmatprep.mubr.bf16.mxu1 %v5033_v0 }
  0x61   :  { %485 = vmatprep.subr.bf16.mxu1 %v4455_v41  ;;  %604 = vmatprep.mubr.bf16.mxu0 %v5033_v0 }
  0x64   :  { %486 = vmatpush1.bf16.msra.mxu1 %v4453_v42 }
  0x65   :  { %487 = vmatprep.subr.bf16.mxu1 %v4459_v43 }
  0x67   :  { %459 = vmatmul.mubr.bf16.gmra.mrb[8].mxu1 %v4456_v44  ;;  %605 = vmatmul.mubr.bf16.gmra.mrb[8].mxu0 %v4456_v44 }
  0x68   :  { %488 = vmatpush1.bf16.msra.mxu1 %v4457_v45  ;;  %468 = vmatprep.mubr.bf16.mxu1 %v5033_v0 }
  0x69   :  { %489 = vmatprep.subr.bf16.mxu1 %v4462_v46  ;;  %614 = vmatprep.mubr.bf16.mxu0 %v5033_v0 }
  0x6c   :  { %490 = vmatpush1.bf16.msra.mxu1 %v4460_v47 }
  0x6d   :  { %491 = vmatprep.subr.bf16.mxu1 %v4466_v48 }
  0x6f   :  { %469 = vmatmul.mubr.bf16.gmra.mrb[12].mxu1 %v4463_v49  ;;  %615 = vmatmul.mubr.bf16.gmra.mrb[12].mxu0 %v4463_v49 }
  0x70   :  { %492 = vmatpush1.bf16.msra.mxu1 %v4464_v50  ;;  %511 = vmatprep.mubr.bf16.mxu1 %v5033_v0 }
  0x71   :  { %493 = vmatprep.subr.bf16.mxu1 %v4469_v51 }
  0x74   :  { %494 = vmatpush1.bf16.msra.mxu1 %v4467_v52 }
  0x77   :  { %512 = vmatmul.mubr.bf16.vlgmr.msra.gmra.mrb[16].mxu1 %v4442_v34 }
  0x78   :  { %521 = vmatprep.mubr.bf16.mxu1 %v5033_v0 }
  0x7f   :  { %522 = vmatmul.mubr.bf16.gmra.mrb[20].mxu1 %v4449_v39 }
  0x80   :  { %531 = vmatprep.mubr.bf16.mxu1 %v5033_v0 }
  0x87   :  { %532 = vmatmul.mubr.bf16.gmra.mrb[24].mxu1 %v4456_v44 }
  0x88   :  { %541 = vmatprep.mubr.bf16.mxu1 %v5033_v0 }
  0x8f   :  { %542 = vmatmul.mubr.bf16.gmra.mrb[28].mxu1 %v4463_v49 }
  0x90   :  { %961 = vmatprep.mubr.f32.mxu1 %v5034_v53 }
 0x12a   :  { %v5198_v60 = vpop.f32.mrb[0].mxu1  ;;  %v5202_v63 = vpop.f32.mrb[0].mxu0 }
 0x12b   :  { %v5200_v61 = vpop.f32.mrb[1].mxu1  ;;  %v625_v0 = vrot.slane %v5198_v60, 7  ;;  %v660_v3 = vrot.slane %v5202_v63, 1  ;;  %v5207_v4 = vpop.f32.mrb[1].mxu0 }
 0x12c   :  { %v444_v62 = vpop.f32.mrb[2].mxu1  ;;  %v626_v5 = vrot.slane %v5200_v61, 7  ;;  %v661_v7 = vrot.slane %v5207_v4, 1  ;;  %v590_v8 = vpop.f32.mrb[2].mxu0 }
 0x12d   :  { %v627_v1 = vrot.slane %v444_v62, 7  ;;  %v446_v2 = vpop.f32.mrb[3].mxu1  ;;  %v662_v9 = vrot.slane %v590_v8, 1  ;;  %v592_v10 = vpop.f32.mrb[3].mxu0 }
 0x12e   :  { %v628_v6 = vrot.slane %v446_v2, 7  ;;  %v663_v12 = vrot.slane %v592_v10, 1  ;;  %v704_v10 = vand.u32 31, %v5196_v59 }
 0x12f   :  { %v5216_v11 = vsel %vm643_vm0, %v625_v0, %v627_v1  ;;  %v5228_v14 = vsel %vm676_vm1, %v660_v3, %v662_v9 }
 0x130   :  { %v5222_v13 = vsel %vm643_vm0, %v626_v5, %v628_v6  ;;  %v5234_v16 = vsel %vm676_vm1, %v661_v7, %v663_v12  ;;  %vm5305_vm2 = vcmp.eq.s32.totalorder %v704_v10, 0 }
 0x132   :  { %v450_v15 = vpop.f32.mrb[4].mxu1  ;;  %v596_v21 = vpop.f32.mrb[4].mxu0 }
 0x133   :  { %v629_v17 = vrot.slane %v450_v15, 7  ;;  %v452_v18 = vpop.f32.mrb[5].mxu1  ;;  %v664_v24 = vrot.slane %v596_v21, 1  ;;  %v598_v25 = vpop.f32.mrb[5].mxu0 }
 0x134   :  { %v630_v19 = vrot.slane %v452_v18, 7  ;;  %v454_v20 = vpop.f32.mrb[6].mxu1  ;;  %v665_v28 = vrot.slane %v598_v25, 1  ;;  %v600_v29 = vpop.f32.mrb[6].mxu0 }
 0x135   :  { %v631_v22 = vrot.slane %v454_v20, 7  ;;  %v456_v23 = vpop.f32.mrb[7].mxu1  ;;  %v5238_v26 = vsel %vm643_vm0, %v627_v1, %v629_v17  ;;  %v666_v31 = vrot.slane %v600_v29, 1  ;;  %v602_v32 = vpop.f32.mrb[7].mxu0  ;;  %v5246_v33 = vsel %vm676_vm1, %v662_v9, %v664_v24 }
 0x136   :  { %v632_v27 = vrot.slane %v456_v23, 7  ;;  %v5242_v30 = vsel %vm643_vm0, %v628_v6, %v630_v19  ;;  %v667_v35 = vrot.slane %v602_v32, 1  ;;  %v5254_v36 = vsel %vm676_vm1, %v663_v12, %v665_v28 }
 0x137   :  { %v5250_v34 = vsel %vm643_vm0, %v629_v17, %v631_v22  ;;  %v5262_v38 = vsel %vm676_vm1, %v664_v24, %v666_v31 }
 0x138   :  { %v5258_v37 = vsel %vm643_vm0, %v630_v19, %v632_v27  ;;  %v5266_v40 = vsel %vm676_vm1, %v665_v28, %v667_v35 }
 0x13a   :  { %v460_v39 = vpop.f32.mrb[8].mxu1  ;;  %v606_v45 = vpop.f32.mrb[8].mxu0 }
 0x13b   :  { %v633_v41 = vrot.slane %v460_v39, 7  ;;  %v462_v42 = vpop.f32.mrb[9].mxu1  ;;  %v668_v48 = vrot.slane %v606_v45, 1  ;;  %v608_v49 = vpop.f32.mrb[9].mxu0 }
 0x13c   :  { %v634_v43 = vrot.slane %v462_v42, 7  ;;  %v464_v44 = vpop.f32.mrb[10].mxu1  ;;  %v669_v52 = vrot.slane %v608_v49, 1  ;;  %v610_v54 = vpop.f32.mrb[10].mxu0 }
 0x13d   :  { %v635_v46 = vrot.slane %v464_v44, 7  ;;  %v466_v47 = vpop.f32.mrb[11].mxu1  ;;  %v5270_v50 = vsel %vm643_vm0, %v631_v22, %v633_v41  ;;  %v670_v56 = vrot.slane %v610_v54, 1  ;;  %v612_v57 = vpop.f32.mrb[11].mxu0  ;;  %v5278_v58 = vsel %vm676_vm1, %v666_v31, %v668_v48 }
 0x13e   :  { %v636_v51 = vrot.slane %v466_v47, 7  ;;  %v5274_v55 = vsel %vm643_vm0, %v632_v27, %v634_v43  ;;  %v671_v1 = vrot.slane %v612_v57, 1  ;;  %v5286_v2 = vsel %vm676_vm1, %v667_v35, %v669_v52 }
 0x13f   :  { %v5282_v62 = vsel %vm643_vm0, %v633_v41, %v635_v46  ;;  %v5294_v8 = vsel %vm676_vm1, %v668_v48, %v670_v56 }
 0x140   :  { %v5290_v6 = vsel %vm643_vm0, %v634_v43, %v636_v51  ;;  %v5299_v12 = vsel %vm676_vm1, %v669_v52, %v671_v1 }
 0x142   :  { %v470_v9 = vpop.f32.mrb[12].mxu1  ;;  %v616_v20 = vpop.f32.mrb[12].mxu0 }
 0x143   :  { %v637_v15 = vrot.slane %v470_v9, 7  ;;  %v472_v17 = vpop.f32.mrb[13].mxu1  ;;  %v672_v22 = vrot.slane %v616_v20, 1  ;;  %v618_v24 = vpop.f32.mrb[13].mxu0 }
 0x144   :  { %v638_v18 = vrot.slane %v472_v17, 7  ;;  %v474_v19 = vpop.f32.mrb[14].mxu1  ;;  %v673_v28 = vrot.slane %v618_v24, 1  ;;  %v620_v29 = vpop.f32.mrb[14].mxu0 }
 0x145   :  { %v639_v21 = vrot.slane %v474_v19, 7  ;;  %v476_v23 = vpop.f32.mrb[15].mxu1  ;;  %v5303_v25 = vsel %vm643_vm0, %v635_v46, %v637_v15  ;;  %v674_v35 = vrot.slane %v620_v29, 1  ;;  %v622_v39 = vpop.f32.mrb[15].mxu0  ;;  %v679_v42 = vsel %vm676_vm1, %v670_v56, %v672_v22 }
 0x146   :  { %v640_v27 = vrot.slane %v476_v23, 7  ;;  %v5311_v32 = vsel %vm643_vm0, %v636_v51, %v638_v18  ;;  %v675_v44 = vrot.slane %v622_v39, 1  ;;  %v680_v46 = vsel %vm676_vm1, %v671_v1, %v673_v28 }
 0x147   :  { %v658_v41 = vsel %vm643_vm0, %v639_v21, %v625_v0  ;;  %v5321_v43 = vsel %vm643_vm0, %v637_v15, %v639_v21  ;;  %v5331_v60 = vsel %vm676_vm1, %v672_v22, %v674_v35  ;;  %v5337_v0 = vsel %vm676_vm1, %v674_v35, %v660_v3 }
 0x148   :  { %v659_v45 = vsel %vm643_vm0, %v640_v27, %v626_v5  ;;  %v5341_v47 = vsel %vm643_vm0, %v638_v18, %v640_v27  ;;  %v820_v5 = vsel %vm5305_vm2, 0.0, %v658_v41  ;;  %v5347_v48 = vsel %vm676_vm1, %v673_v28, %v675_v44 }
 0x149   :  { %v5353_v63 = vsel %vm676_vm1, %v675_v44, %v661_v7  ;;  %v821_v51 = vsel %vm5305_vm2, 0.0, %v659_v45  ;;  %v696_v7 = vadd.s32 32, %v5196_v59 }
 0x14a   :  { %v513_v61 = vpop.f32.mrb[16].mxu1 }
 0x14b   :  { %v836_v3 = vadd.f32 %v820_v5, %v513_v61  ;;  %v515_v49 = vpop.f32.mrb[17].mxu1 }
 0x14c   :  { %v837_v52 = vadd.f32 %v821_v51, %v515_v49  ;;  %v517_v54 = vpop.f32.mrb[18].mxu1 }
 0x14d   :  { %v852_v56 = vadd.f32 %v836_v3, %v5228_v14  ;;  %v838_v57 = vadd.f32 %v5216_v11, %v517_v54  ;;  %v519_v1 = vpop.f32.mrb[19].mxu1  ;;  %v732_v14 = vand.u32 31, %v696_v7  ;;  %v4488_v7 = vld [vmem:[%s6006_s4 + $0x90] ss:$24 sps:$4 sm:$0xff]  }
 0x14e   :  { %v853_v9 = vadd.f32 %v837_v52, %v5234_v16  ;;  %v839_v4 = vadd.f32 %v5222_v13, %v519_v1  ;;  %v4482_v1 = vld [vmem:[%s6006_s4 + $0x60] ss:$24 sps:$4 sm:$0xff]  }
 0x14f   :  { %v854_v10 = vadd.f32 %v838_v57, %v5246_v33  ;;  %vm800_vm3 = vcmp.eq.s32.totalorder %v732_v14, 0  ;;  %v4484_v57 = vld [vmem:[%s6006_s4 + $0x64] ss:$24 sps:$4 sm:$0xff]   ;;  %v4502_v14 = vld [vmem:[%s6006_s4 + $0xf4] ss:$24 sps:$4 sm:$0xff]  }
 0x150   :  { %v855_v15 = vadd.f32 %v839_v4, %v5254_v36  ;;  %1787 = vmatprep.subr.bf16.mxu0 %v4484_v57  ;;  %v4485_v4 = vld [vmem:[%s6006_s4 + $0x68] ss:$24 sps:$4 sm:$0xff]  }
 0x151   :  { %v4359_v17 = vpack.c.bf16 %v854_v10, %v852_v56  ;;  %v871_v56 = vld [vmem:[%s6005_s3 + $0x18] sm:$0xff]  ;;  %1788 = vmatpush1.bf16.msra.mxu0 %v4482_v1  ;;  %v4490_v10 = vld [vmem:[%s6006_s4 + $0x94] ss:$24 sps:$4 sm:$0xff]  }
 0x152   :  { %v523_v18 = vpop.f32.mrb[20].mxu1  ;;  %v4357_v19 = vpack.c.bf16 %v855_v15, %v853_v9  ;;  %v4487_v9 = vld [vmem:[%s6006_s4 + $0x6c] ss:$24 sps:$4 sm:$0xff]   ;;  %v4493_v15 = vld [vmem:[%s6006_s4 + $0x9c] ss:$24 sps:$4 sm:$0xff]   ;;  %1789 = vmatprep.subr.bf16.mxu0 %v4490_v10 }
 0x153   :  { %v840_v20 = vadd.f32 %v5238_v26, %v523_v18  ;;  %v525_v21 = vpop.f32.mrb[21].mxu1  ;;  %v4496_v18 = vld [vmem:[%s6006_s4 + $0xc4] ss:$24 sps:$4 sm:$0xff]  }
 0x154   :  { %v841_v11 = vadd.f32 %v5242_v30, %v525_v21  ;;  %v527_v22 = vpop.f32.mrb[22].mxu1  ;;  %4358 = vmatprep.subr.bf16.mxu1 %v4357_v19  ;;  %v828_v30 = vsel %vm800_vm3, 0.0, %v5270_v50  ;;  %v4494_v19 = vld [vmem:[%s6006_s4 + $0xc0] ss:$24 sps:$4 sm:$0xff]  }
 0x155   :  { %v856_v16 = vadd.f32 %v840_v20, %v5262_v38  ;;  %v842_v13 = vadd.f32 %v5250_v34, %v527_v22  ;;  %v529_v33 = vpop.f32.mrb[23].mxu1  ;;  %4360 = vmatpush1.bf16.msra.mxu1 %v4359_v17  ;;  %v829_v34 = vsel %vm800_vm3, 0.0, %v5274_v55  ;;  %v4491_v17 = vld [vmem:[%s6006_s4 + $0x98] ss:$24 sps:$4 sm:$0xff]   ;;  %1790 = vmatpush1.bf16.msra.mxu0 %v4488_v7  ;;  %v4499_v20 = vld [vmem:[%s6006_s4 + $0xcc] ss:$24 sps:$4 sm:$0xff]  }
 0x156   :  { %v857_v23 = vadd.f32 %v841_v11, %v5266_v40  ;;  %v843_v36 = vadd.f32 %v5258_v37, %v529_v33  ;;  %1791 = vmatprep.subr.bf16.mxu0 %v4496_v18  ;;  %v4497_v21 = vld [vmem:[%s6006_s4 + $0xc8] ss:$24 sps:$4 sm:$0xff]   ;;  %v4505_v22 = vld [vmem:[%s6006_s4 + $0xfc] ss:$24 sps:$4 sm:$0xff]  }
 0x157   :  { %v858_v24 = vadd.f32 %v842_v13, %v5278_v58  ;;  %v4500_v11 = vld [vmem:[%s6006_s4 + $0xf0] ss:$24 sps:$4 sm:$0xff]   ;;  %v4508_v13 = vld [vmem:[%s6006_s4 + $0x124] ss:$24 sps:$4 sm:$0xff]   ;;  %v4506_v33 = vld [vmem:[%s6006_s4 + $0x120] ss:$24 sps:$4 sm:$0xff]  }
 0x158   :  { %v859_v26 = vadd.f32 %v843_v36, %v5286_v2  ;;  %v4509_v36 = vld [vmem:[%s6006_s4 + $0x128] ss:$24 sps:$4 sm:$0xff]  }
 0x159   :  { %v4363_v27 = vpack.c.bf16 %v858_v24, %v856_v16  ;;  %1792 = vmatpush1.bf16.msra.mxu0 %v4494_v19  ;;  %v4503_v16 = vld [vmem:[%s6006_s4 + $0xf8] ss:$24 sps:$4 sm:$0xff]   ;;  %v4514_v24 = vld [vmem:[%s6006_s4 + $0x154] ss:$24 sps:$4 sm:$0xff]  }
 0x15a   :  { %v533_v28 = vpop.f32.mrb[24].mxu1  ;;  %v4361_v29 = vpack.c.bf16 %v859_v26, %v857_v23  ;;  %1793 = vmatprep.subr.bf16.mxu0 %v4502_v14  ;;  %v4511_v23 = vld [vmem:[%s6006_s4 + $0x12c] ss:$24 sps:$4 sm:$0xff]   ;;  %v4512_v26 = vld [vmem:[%s6006_s4 + $0x150] ss:$24 sps:$4 sm:$0xff]  }
 0x15b   :  { %v844_v31 = vadd.f32 %v828_v30, %v533_v28  ;;  %v535_v38 = vpop.f32.mrb[25].mxu1  ;;  %v4515_v28 = vld [vmem:[%s6006_s4 + $0x158] ss:$24 sps:$4 sm:$0xff]   ;;  %v4520_v30 = vld [vmem:[%s6006_s4 + $0x184] ss:$24 sps:$4 sm:$0xff]  }
 0x15c   :  { %v845_v35 = vadd.f32 %v829_v34, %v535_v38  ;;  %v537_v39 = vpop.f32.mrb[26].mxu1  ;;  %4362 = vmatprep.subr.bf16.mxu1 %v4361_v29  ;;  %v4518_v29 = vld [vmem:[%s6006_s4 + $0x180] ss:$24 sps:$4 sm:$0xff]   ;;  %v4526_v34 = vld [vmem:[%s6006_s4 + $0x1b4] ss:$24 sps:$4 sm:$0xff]  }
 0x15d   :  { %v860_v40 = vadd.f32 %v844_v31, %v5294_v8  ;;  %v846_v37 = vadd.f32 %v5282_v62, %v537_v39  ;;  %v539_v58 = vpop.f32.mrb[27].mxu1  ;;  %4364 = vmatpush1.bf16.msra.mxu1 %v4363_v27  ;;  %1794 = vmatpush1.bf16.msra.mxu0 %v4500_v11  ;;  %v4517_v27 = vld [vmem:[%s6006_s4 + $0x15c] ss:$24 sps:$4 sm:$0xff]   ;;  %v4523_v31 = vld [vmem:[%s6006_s4 + $0x18c] ss:$24 sps:$4 sm:$0xff]  }
 0x15e   :  { %v861_v2 = vadd.f32 %v845_v35, %v5299_v12  ;;  %v847_v41 = vadd.f32 %v5290_v6, %v539_v58  ;;  %1795 = vmatprep.subr.bf16.mxu0 %v4508_v13  ;;  %v4521_v38 = vld [vmem:[%s6006_s4 + $0x188] ss:$24 sps:$4 sm:$0xff]   ;;  %v4529_v39 = vld [vmem:[%s6006_s4 + $0x1bc] ss:$24 sps:$4 sm:$0xff]  }
 0x15f   :  { %v862_v44 = vadd.f32 %v846_v37, %v679_v42  ;;  %v4524_v35 = vld [vmem:[%s6006_s4 + $0x1b0] ss:$24 sps:$4 sm:$0xff]   ;;  %v4532_v37 = vld [vmem:[%s6006_s4 + $0x1e4] ss:$24 sps:$4 sm:$0xff]   ;;  %v4530_v58 = vld [vmem:[%s6006_s4 + $0x1e0] ss:$24 sps:$4 sm:$0xff]  }
 0x160   :  { %v863_v50 = vadd.f32 %v847_v41, %v680_v46  ;;  %v4533_v41 = vld [vmem:[%s6006_s4 + $0x1e8] ss:$24 sps:$4 sm:$0xff]  }
 0x161   :  { %v4367_v45 = vpack.c.bf16 %v862_v44, %v860_v40  ;;  %1796 = vmatpush1.bf16.msra.mxu0 %v4506_v33  ;;  %v4527_v40 = vld [vmem:[%s6006_s4 + $0x1b8] ss:$24 sps:$4 sm:$0xff]   ;;  %v4538_v44 = vld [vmem:[%s6006_s4 + $0x214] ss:$24 sps:$4 sm:$0xff]  }
 0x162   :  { %v543_v61 = vpop.f32.mrb[28].mxu1  ;;  %v4365_v5 = vpack.c.bf16 %v863_v50, %v861_v2  ;;  %1797 = vmatprep.subr.bf16.mxu0 %v4514_v24  ;;  %v4535_v2 = vld [vmem:[%s6006_s4 + $0x1ec] ss:$24 sps:$4 sm:$0xff]   ;;  %v4536_v50 = vld [vmem:[%s6006_s4 + $0x210] ss:$24 sps:$4 sm:$0xff]  }
 0x163   :  { %v848_v55 = vadd.f32 %v5303_v25, %v543_v61  ;;  %v545_v3 = vpop.f32.mrb[29].mxu1  ;;  %v4539_v61 = vld [vmem:[%s6006_s4 + $0x218] ss:$24 sps:$4 sm:$0xff]  }
 0x164   :  { %v849_v49 = vadd.f32 %v5311_v32, %v545_v3  ;;  %v547_v51 = vpop.f32.mrb[30].mxu1  ;;  %4366 = vmatprep.subr.bf16.mxu1 %v4365_v5  ;;  %v4475_v32 = vld [vmem:[%s6006_s4 + $0xc] ss:$24 sps:$4 sm:$0xff]  }
 0x165   :  { %v864_v62 = vadd.f32 %v848_v55, %v5331_v60  ;;  %v850_v8 = vadd.f32 %v5321_v43, %v547_v51  ;;  %v549_v52 = vpop.f32.mrb[31].mxu1  ;;  %4368 = vmatpush1.bf16.msra.mxu1 %v4367_v45  ;;  %v868_v43 = vld [vmem:[%s6005_s3] sm:$0xff]  ;;  %1798 = vmatpush1.bf16.msra.mxu0 %v4512_v26  ;;  %v4541_v45 = vld [vmem:[%s6006_s4 + $0x21c] ss:$24 sps:$4 sm:$0xff]  }
 0x166   :  { %v865_v6 = vadd.f32 %v849_v49, %v5347_v48  ;;  %v851_v12 = vadd.f32 %v5341_v47, %v549_v52  ;;  %v4473_v60 = vld [vmem:[%s6006_s4 + $0x8] ss:$24 sps:$4 sm:$0xff]   ;;  %v4479_v48 = vld [vmem:[%s6006_s4 + $0x38] ss:$24 sps:$4 sm:$0xff]   ;;  %1799 = vmatprep.subr.bf16.mxu0 %v4520_v30  ;;  %v4544_v5 = vld [vmem:[%s6006_s4 + $0x244] ss:$24 sps:$4 sm:$0xff]  }
 0x167   :  { %v866_v42 = vadd.f32 %v850_v8, %v5337_v0  ;;  %v4481_v0 = vld [vmem:[%s6006_s4 + $0x3c] ss:$24 sps:$4 sm:$0xff]   ;;  %v869_v47 = vld [vmem:[%s6005_s3 + $0x8] sm:$0xff]  ;;  %v4542_v55 = vld [vmem:[%s6006_s4 + $0x240] ss:$24 sps:$4 sm:$0xff]  }
 0x168   :  { %v867_v46 = vadd.f32 %v851_v12, %v5353_v63  ;;  %v870_v63 = vld [vmem:[%s6005_s3 + $0x10] sm:$0xff]  ;;  %v4547_v3 = vld [vmem:[%s6006_s4 + $0x24c] ss:$24 sps:$4 sm:$0xff]   ;;  %v4545_v49 = vld [vmem:[%s6006_s4 + $0x248] ss:$24 sps:$4 sm:$0xff]  }
 0x169   :  { %v4371_v25 = vpack.c.bf16 %v866_v42, %v864_v62  ;;  %1800 = vmatpush1.bf16.msra.mxu0 %v4518_v29  ;;  %v4550_v51 = vld [vmem:[%s6006_s4 + $0x274] ss:$24 sps:$4 sm:$0xff]   ;;  %v4548_v62 = vld [vmem:[%s6006_s4 + $0x270] ss:$24 sps:$4 sm:$0xff]   ;;  %v4554_v12 = vld [vmem:[%s6006_s4 + $0x2a0] ss:$24 sps:$4 sm:$0xff]  }
 0x16a   :  { %v4369_v54 = vpack.c.bf16 %v867_v46, %v865_v6  ;;  %1801 = vmatprep.subr.bf16.mxu0 %v4526_v34  ;;  %v4553_v8 = vld [vmem:[%s6006_s4 + $0x27c] ss:$24 sps:$4 sm:$0xff]   ;;  %v4551_v52 = vld [vmem:[%s6006_s4 + $0x278] ss:$24 sps:$4 sm:$0xff]   ;;  %v4559_v42 = vld [vmem:[%s6006_s4 + $0x2ac] ss:$24 sps:$4 sm:$0xff]  }
 0x16b   :  { %v4556_v6 = vld [vmem:[%s6006_s4 + $0x2a4] ss:$24 sps:$4 sm:$0xff]   ;;  %v4557_v46 = vld [vmem:[%s6006_s4 + $0x2a8] ss:$24 sps:$4 sm:$0xff]  }
 0x16c   :  { %4370 = vmatprep.subr.bf16.mxu1 %v4369_v54  ;;  %v4560_v54 = vld [vmem:[%s6006_s4 + $0x2d0] ss:$24 sps:$4 sm:$0xff]  }
 0x16d   :  { %4372 = vmatpush1.bf16.msra.mxu1 %v4371_v25  ;;  %1802 = vmatpush1.bf16.msra.mxu0 %v4524_v35  ;;  %v4562_v25 = vld [vmem:[%s6006_s4 + $0x2d4] ss:$24 sps:$4 sm:$0xff]  }
 0x16e   :  { %1836 = vmatprep.subr.bf16.mxu1 %v4475_v32  ;;  %1803 = vmatprep.subr.bf16.mxu0 %v4532_v37  ;;  %v4565_v32 = vld [vmem:[%s6006_s4 + $0x2dc] ss:$24 sps:$4 sm:$0xff]  }
 0x170   :  { %4059 = vmatmul.mubr.msk.f32.vlgmr.msra.gmra.mrb[32].mxu1 %vm884_vm4, %v868_v43  ;;  %v4563_v43 = vld [vmem:[%s6006_s4 + $0x2d8] ss:$24 sps:$4 sm:$0xff]  }
 0x171   :  { %967 = vmatprep.mubr.f32.mxu1 %v5034_v53  ;;  %1837 = vmatpush1.bf16.msra.mxu1 %v4473_v60  ;;  %v4568_v60 = vld [vmem:[%s6006_s4 + $0x14] ss:$24 sps:$4 sm:$0xff]  }
 0x172   :  { %1838 = vmatprep.subr.bf16.mxu1 %v4481_v0  ;;  %1804 = vmatpush1.bf16.msra.mxu0 %v4530_v58  ;;  %v5589_v0 = vsub.s32 0, %v5196_v59 }
 0x173   :  { %1805 = vmatprep.subr.bf16.mxu0 %v4538_v44 }
 0x174   :  { %4060 = vmatmul.mubr.msk.f32.gmra.mrb[34].mxu1 %vm884_vm4, %v869_v47  ;;  %v872_v47 = vld [vmem:[%s6004_s2] sm:$0x3] }
 0x175   :  { %973 = vmatprep.mubr.f32.mxu1 %v5034_v53  ;;  %1839 = vmatpush1.bf16.msra.mxu1 %v4479_v48  ;;  %v5595_v48 = vsub.s32 1, %v5196_v59 }
 0x176   :  { %1840 = vmatprep.subr.bf16.mxu1 %v4487_v9  ;;  %1806 = vmatpush1.bf16.msra.mxu0 %v4536_v50 }
 0x177   :  { %1807 = vmatprep.subr.bf16.mxu0 %v4544_v5 }
 0x178   :  { %4061 = vmatmul.mubr.msk.f32.gmra.mrb[36].mxu1 %vm884_vm4, %v870_v63  ;;  %v877_v63 = vrot.slane %v872_v47, %v5589_v0 }
 0x179   :  { %979 = vmatprep.mubr.f32.mxu1 %v5034_v53  ;;  %1841 = vmatpush1.bf16.msra.mxu1 %v4485_v4 }
 0x17a   :  { %1842 = vmatprep.subr.bf16.mxu1 %v4493_v15  ;;  %1808 = vmatpush1.bf16.msra.mxu0 %v4542_v55 }
 0x17b   :  { %1809 = vmatprep.subr.bf16.mxu0 %v4550_v51 }
 0x17c   :  { %4062 = vmatmul.mubr.msk.f32.gmra.mrb[38].mxu1 %vm884_vm4, %v871_v56  ;;  %v5599_v56 = vrot.slane %v872_v47, %v5595_v48 }
 0x17d   :  { %1843 = vmatpush1.bf16.msra.mxu1 %v4491_v17 }
 0x17e   :  { %1844 = vmatprep.subr.bf16.mxu1 %v4499_v20  ;;  %1810 = vmatpush1.bf16.msra.mxu0 %v4548_v62 }
 0x17f   :  { %1811 = vmatprep.subr.bf16.mxu0 %v4556_v6 }
 0x181   :  { %1845 = vmatpush1.bf16.msra.mxu1 %v4497_v21 }
 0x182   :  { %1846 = vmatprep.subr.bf16.mxu1 %v4505_v22  ;;  %1812 = vmatpush1.bf16.msra.mxu0 %v4554_v12 }
 0x183   :  { %1813 = vmatprep.subr.bf16.mxu0 %v4562_v25 }
 0x185   :  { %1847 = vmatpush1.bf16.msra.mxu1 %v4503_v16 }
 0x186   :  { %1848 = vmatprep.subr.bf16.mxu1 %v4511_v23  ;;  %1814 = vmatpush1.bf16.msra.mxu0 %v4560_v54 }
 0x187   :  { %1889 = vmatprep.subr.bf16.mxu0 %v4568_v60 }
 0x189   :  { %1849 = vmatpush1.bf16.msra.mxu1 %v4509_v36 }
 0x18a   :  { %1850 = vmatprep.subr.bf16.mxu1 %v4517_v27 }
 0x18d   :  { %1851 = vmatpush1.bf16.msra.mxu1 %v4515_v28 }
 0x18e   :  { %1852 = vmatprep.subr.bf16.mxu1 %v4523_v31 }
 0x191   :  { %1853 = vmatpush1.bf16.msra.mxu1 %v4521_v38 }
 0x192   :  { %1854 = vmatprep.subr.bf16.mxu1 %v4529_v39 }
 0x195   :  { %1855 = vmatpush1.bf16.msra.mxu1 %v4527_v40 }
 0x196   :  { %1856 = vmatprep.subr.bf16.mxu1 %v4535_v2 }
 0x199   :  { %1857 = vmatpush1.bf16.msra.mxu1 %v4533_v41 }
 0x19a   :  { %1858 = vmatprep.subr.bf16.mxu1 %v4541_v45 }
 0x19d   :  { %1859 = vmatpush1.bf16.msra.mxu1 %v4539_v61  ;;  %v5035_v61 = vmov -1.0  }
 0x19e   :  { %1860 = vmatprep.subr.bf16.mxu1 %v4547_v3 }
 0x1a1   :  { %1861 = vmatpush1.bf16.msra.mxu1 %v4545_v49 }
 0x1a2   :  { %1862 = vmatprep.subr.bf16.mxu1 %v4553_v8 }
 0x1a5   :  { %1863 = vmatpush1.bf16.msra.mxu1 %v4551_v52 }
 0x1a6   :  { %1864 = vmatprep.subr.bf16.mxu1 %v4559_v42 }
 0x1a9   :  { %1865 = vmatpush1.bf16.msra.mxu1 %v4557_v46 }
 0x1aa   :  { %1866 = vmatprep.subr.bf16.mxu1 %v4565_v32 }
 0x1ad   :  { %1867 = vmatpush1.bf16.msra.mxu1 %v4563_v43 }
 0x243   :  { %v963_v57 = vpop.f32.mrb[32].mxu1 }
 0x244   :  { %v964_v1 = vadd.f32 %v963_v57, %v877_v63  ;;  %v965_v9 = vpop.f32.mrb[33].mxu1 }
 0x245   :  { %v966_v4 = vadd.f32 %v965_v9, %v5599_v56 }
 0x246   :  { %v995_v10 = vmul.f32 0.70710677, %v964_v1  ;;  %v5608_v38 = vmul.f32 0.5, %v964_v1 }
 0x247   :  { %v996_v7 = vmul.f32 0.70710677, %v966_v4  ;;  %v969_v15 = vpop.f32.mrb[34].mxu1  ;;  %v5616_v37 = vmul.f32 0.5, %v966_v4 }
 0x248   :  { %v1019_v17 = vand.u32 2147483647, %v995_v10  ;;  %v970_v18 = vadd.f32 %v969_v15, %v877_v63  ;;  %v971_v19 = vpop.f32.mrb[35].mxu1  ;;  %vm1003_vm5 = vcmp.ge.f32.partialorder %v995_v10, 0.0 }
 0x249   :  { %v1020_v20 = vand.u32 2147483647, %v996_v7  ;;  %v972_v21 = vadd.f32 %v971_v19, %v5599_v56  ;;  %vm1004_vm6 = vcmp.ge.f32.partialorder %v996_v7, 0.0  ;;  %v5623_v5 = vsel %vm1003_vm5, 1.0, %v5035_v61 }
 0x24a   :  { %v1027_v14 = vmul.f32 0.3275911, %v1019_v17  ;;  %v997_v22 = vmul.f32 0.70710677, %v970_v18  ;;  %v1131_v28 = vsub.f32 0.0, %v1019_v17  ;;  %v5626_v55 = vsel %vm1004_vm6, 1.0, %v5035_v61 }
 0x24b   :  { %v1028_v11 = vmul.f32 0.3275911, %v1020_v20  ;;  %v5603_v13 = vmul.f32 0.70710677, %v972_v21  ;;  %v975_v33 = vpop.f32.mrb[36].mxu1  ;;  %v1132_v58 = vsub.f32 0.0, %v1020_v20 }
 0x24c   :  { %v1035_v16 = vadd.f32 1.0, %v1027_v14  ;;  %v1021_v36 = vand.u32 2147483647, %v997_v22  ;;  %v977_v24 = vpop.f32.mrb[37].mxu1  ;;  %v5606_v29 = vadd.f32 %v975_v33, %v877_v63  ;;  %v1139_v41 = vmul.f32 %v1131_v28, %v1019_v17 }
 0x24d   :  { %v1036_v23 = vadd.f32 1.0, %v1028_v11  ;;  %v1022_v30 = vand.u32 2147483647, %v5603_v13  ;;  %v5611_v35 = vadd.f32 %v977_v24, %v5599_v56  ;;  %vm1005_vm7 = vcmp.ge.f32.partialorder %v997_v22, 0.0 }
 0x24e   :  { %4902 = vrcp.f32 %v1035_v16  ;;  %v1029_v26 = vmul.f32 0.3275911, %v1021_v36  ;;  %v5614_v40 = vmul.f32 0.70710677, %v5606_v29  ;;  %v1133_v44 = vsub.f32 0.0, %v1021_v36 }
 0x24f   :  { %4904 = vrcp.f32 %v1036_v23  ;;  %v981_v27 = vpop.f32.mrb[38].mxu1  ;;  %v1030_v39 = vmul.f32 0.3275911, %v1022_v30  ;;  %v5619_v2 = vmul.f32 0.70710677, %v5611_v35  ;;  %v5629_v49 = vmul.f32 0.5, %v970_v18 }
 0x250   :  { %v983_v31 = vpop.f32.mrb[39].mxu1  ;;  %v1037_v34 = vadd.f32 1.0, %v1029_v26  ;;  %v1023_v45 = vand.u32 2147483647, %v5614_v40  ;;  %v5631_v51 = vmul.f32 0.5, %v972_v21  ;;  %v1140_v8 = vmul.f32 %v1132_v58, %v1020_v20 }
 0x251   :  { %v1038_v50 = vadd.f32 1.0, %v1030_v39  ;;  %v1024_v3 = vand.u32 2147483647, %v5619_v2  ;;  %v1134_v52 = vsub.f32 0.0, %v1022_v30  ;;  %v5633_v12 = vadd.f32 %v981_v27, %v877_v63 }
 0x252   :  { %4906 = vrcp.f32 %v1037_v34  ;;  %v1031_v62 = vmul.f32 0.3275911, %v1023_v45  ;;  %v1147_v46 = vmul.f32 1.442695, %v1139_v41  ;;  %v5638_v25 = vsel %vm1005_vm7, 1.0, %v5035_v61 }
 0x253   :  { %4908 = vrcp.f32 %v1038_v50  ;;  %v1032_v6 = vmul.f32 0.3275911, %v1024_v3  ;;  %v1141_v54 = vmul.f32 %v1133_v44, %v1021_v36  ;;  %v1135_v47 = vsub.f32 0.0, %v1023_v45 }
 0x254   :  { %v1039_v32 = vadd.f32 1.0, %v1031_v62  ;;  %v5644_v1 = vadd.f32 %v983_v31, %v5599_v56  ;;  %v1136_v9 = vsub.f32 0.0, %v1024_v3  ;;  %v5648_v4 = vmul.f32 0.70710677, %v5633_v12 }
 0x255   :  { %v1040_v57 = vadd.f32 1.0, %v1032_v6  ;;  %vm1006_vm8 = vcmp.ge.f32.partialorder %v5603_v13, 0.0  ;;  %v1142_v7 = vmul.f32 %v1134_v52, %v1022_v30  ;;  %v1149_v17 = vmul.f32 1.442695, %v1140_v8 }
 0x256   :  { %4910 = vrcp.f32 %v1039_v32  ;;  %v1025_v18 = vand.u32 2147483647, %v5648_v4  ;;  %v1151_v20 = vmul.f32 1.442695, %v1141_v54  ;;  %v1143_v21 = vmul.f32 %v1135_v47, %v1023_v45 }
 0x257   :  { %4912 = vrcp.f32 %v1040_v57  ;;  %v5656_v14 = vmul.f32 0.70710677, %v5644_v1  ;;  %v1144_v16 = vmul.f32 %v1136_v9, %v1024_v3  ;;  %v1153_v36 = vmul.f32 1.442695, %v1142_v7 }
 0x258   :  { %v5635_v42 = vpop.eup %4902  ;;  %v1033_v33 = vmul.f32 0.3275911, %v1025_v18  ;;  %4914 = vpow2.f32 %v1147_v46  ;;  %v1155_v39 = vmul.f32 1.442695, %v1143_v21  ;;  %v5670_v3 = vsel %vm1006_vm8, 1.0, %v5035_v61 }
 0x259   :  { %v5640_v43 = vpop.eup %4904  ;;  %v1059_v60 = vmul.f32 1.0614054, %v5635_v42  ;;  %v1026_v24 = vand.u32 2147483647, %v5656_v14  ;;  %4916 = vpow2.f32 %v1149_v17  ;;  %v1157_v50 = vmul.f32 1.442695, %v1144_v16 }
 0x25a   :  { %v1060_v63 = vmul.f32 1.0614054, %v5640_v43  ;;  %v1041_v30 = vadd.f32 1.0, %v1033_v33  ;;  %v1137_v54 = vsub.f32 0.0, %v1025_v18  ;;  %vm1007_vm9 = vcmp.ge.f32.partialorder %v5614_v40, 0.0 }
 0x25b   :  { %v1067_v10 = vadd.f32 -1.4531521, %v1059_v60  ;;  %v1034_v58 = vmul.f32 0.3275911, %v1026_v24  ;;  %vm1008_vm10 = vcmp.ge.f32.partialorder %v5619_v2, 0.0  ;;  %vm1009_vm11 = vcmp.ge.f32.partialorder %v5648_v4, 0.0 }
 0x25c   :  { %v1068_v15 = vadd.f32 -1.4531521, %v1060_v63  ;;  %v5652_v19 = vpop.eup %4906  ;;  %4918 = vrcp.f32 %v1041_v30  ;;  %v4566_v40 = vld [vmem:[%s6006_s4 + $0x10] ss:$24 sps:$4 sm:$0xff]   ;;  %vm1010_vm12 = vcmp.ge.f32.partialorder %v5656_v14, 0.0 }
 0x25d   :  { %v1075_v56 = vmul.f32 %v5635_v42, %v1067_v10  ;;  %v1061_v22 = vmul.f32 1.0614054, %v5652_v19  ;;  %v5661_v26 = vpop.eup %4908  ;;  %v1042_v8 = vadd.f32 1.0, %v1034_v58  ;;  %4920 = vpow2.f32 %v1151_v20  ;;  %v4574_v14 = vld [vmem:[%s6006_s4 + $0x74] ss:$24 sps:$4 sm:$0xff]  }
 0x25e   :  { %v1076_v11 = vmul.f32 %v5640_v43, %v1068_v15  ;;  %v1062_v34 = vmul.f32 1.0614054, %v5661_v26  ;;  %v1138_v10 = vsub.f32 0.0, %v1026_v24 }
 0x25f   :  { %v1083_v23 = vadd.f32 1.4214138, %v1075_v56  ;;  %v1069_v28 = vadd.f32 -1.4531521, %v1061_v22  ;;  %4922 = vrcp.f32 %v1042_v8 }
 0x260   :  { %v1084_v27 = vadd.f32 1.4214138, %v1076_v11  ;;  %v1070_v62 = vadd.f32 -1.4531521, %v1062_v34  ;;  %v5672_v52 = vpop.eup %4910  ;;  %4924 = vpow2.f32 %v1153_v36 }
 0x261   :  { %v1091_v31 = vmul.f32 %v5635_v42, %v1083_v23  ;;  %v1077_v44 = vmul.f32 %v5652_v19, %v1069_v28  ;;  %v5674_v32 = vpop.eup %4912  ;;  %v1063_v57 = vmul.f32 1.0614054, %v5672_v52  ;;  %4926 = vpow2.f32 %v1155_v39 }
 0x262   :  { %v1092_v41 = vmul.f32 %v5640_v43, %v1084_v27  ;;  %v1078_v47 = vmul.f32 %v5661_v26, %v1070_v62  ;;  %v1064_v9 = vmul.f32 1.0614054, %v5674_v32  ;;  %v4915_v11 = vpop.eup %4914  ;;  %4928 = vpow2.f32 %v1157_v50 }
 0x263   :  { %v1099_v45 = vadd.f32 -0.28449672, %v1091_v31  ;;  %v1085_v46 = vadd.f32 1.4214138, %v1077_v44  ;;  %v1071_v17 = vadd.f32 -1.4531521, %v1063_v57  ;;  %v4917_v23 = vpop.eup %4916  ;;  %v1145_v31 = vmul.f32 %v1137_v54, %v1025_v18 }
 0x264   :  { %v1100_v6 = vadd.f32 -0.28449672, %v1092_v41  ;;  %v1086_v15 = vadd.f32 1.4214138, %v1078_v47  ;;  %v1072_v21 = vadd.f32 -1.4531521, %v1064_v9  ;;  %v1146_v62 = vmul.f32 %v1138_v10, %v1026_v24 }
 0x265   :  { %v1107_v60 = vmul.f32 %v5635_v42, %v1099_v45  ;;  %v1093_v63 = vmul.f32 %v5652_v19, %v1085_v46  ;;  %v1079_v33 = vmul.f32 %v5672_v52, %v1071_v17  ;;  %v1159_v50 = vmul.f32 1.442695, %v1145_v31 }
 0x266   :  { %v1108_v13 = vmul.f32 %v5640_v43, %v1100_v6  ;;  %v1094_v16 = vmul.f32 %v5661_v26, %v1086_v15  ;;  %v1080_v30 = vmul.f32 %v5674_v32, %v1072_v21  ;;  %v5688_v41 = vpop.eup %4918 }
 0x267   :  { %v1115_v7 = vadd.f32 0.2548296, %v1107_v60  ;;  %v1101_v20 = vadd.f32 -0.28449672, %v1093_v63  ;;  %v1087_v36 = vadd.f32 1.4214138, %v1079_v33  ;;  %v4921_v46 = vpop.eup %4920  ;;  %4930 = vpow2.f32 %v1159_v50 }
 0x268   :  { %v1116_v56 = vadd.f32 0.2548296, %v1108_v13  ;;  %v1102_v58 = vadd.f32 -0.28449672, %v1094_v16  ;;  %v1088_v45 = vadd.f32 1.4214138, %v1080_v30 }
 0x269   :  { %v1123_v22 = vmul.f32 %v5635_v42, %v1115_v7  ;;  %v1109_v28 = vmul.f32 %v5652_v19, %v1101_v20  ;;  %v1065_v6 = vmul.f32 1.0614054, %v5688_v41  ;;  %v5695_v47 = vpop.eup %4922 }
 0x26a   :  { %v1124_v27 = vmul.f32 %v5640_v43, %v1116_v56  ;;  %v1110_v39 = vmul.f32 %v5661_v26, %v1102_v58  ;;  %v1095_v43 = vmul.f32 %v5672_v52, %v1087_v36  ;;  %v1096_v54 = vmul.f32 %v5674_v32, %v1088_v45  ;;  %v4925_v20 = vpop.eup %4924 }
 0x26b   :  { %v1163_v34 = vmul.f32 %v4915_v11, %v1123_v22  ;;  %v1117_v44 = vadd.f32 0.2548296, %v1109_v28  ;;  %v1073_v63 = vadd.f32 -1.4531521, %v1065_v6  ;;  %v1066_v7 = vmul.f32 1.0614054, %v5695_v47  ;;  %v4927_v16 = vpop.eup %4926 }
 0x26c   :  { %v1164_v42 = vmul.f32 %v4917_v23, %v1124_v27  ;;  %v1118_v57 = vadd.f32 0.2548296, %v1110_v39  ;;  %v1103_v13 = vadd.f32 -0.28449672, %v1095_v43  ;;  %v1104_v10 = vadd.f32 -0.28449672, %v1096_v54 }
 0x26d   :  { %v1171_v8 = vsub.f32 1.0, %v1163_v34  ;;  %v1125_v18 = vmul.f32 %v5652_v19, %v1117_v44  ;;  %v1081_v19 = vmul.f32 %v5688_v41, %v1073_v63  ;;  %v1161_v56 = vmul.f32 1.442695, %v1146_v62  ;;  %v4929_v34 = vpop.eup %4928 }
 0x26e   :  { %v1172_v60 = vsub.f32 1.0, %v1164_v42  ;;  %v1126_v15 = vmul.f32 %v5661_v26, %v1118_v57  ;;  %v1111_v17 = vmul.f32 %v5672_v52, %v1103_v13  ;;  %v1112_v11 = vmul.f32 %v5674_v32, %v1104_v10 }
 0x26f   :  { %v1179_v24 = vmul.f32 %v1171_v8, %v5623_v5  ;;  %v1165_v9 = vmul.f32 %v4921_v46, %v1125_v18  ;;  %v1074_v22 = vadd.f32 -1.4531521, %v1066_v7  ;;  %v1089_v27 = vadd.f32 1.4214138, %v1081_v19 }
 0x270   :  { %v1180_v5 = vmul.f32 %v1172_v60, %v5626_v55  ;;  %v1166_v33 = vmul.f32 %v4925_v20, %v1126_v15  ;;  %v1119_v23 = vadd.f32 0.2548296, %v1111_v17  ;;  %v1120_v30 = vadd.f32 0.2548296, %v1112_v11  ;;  %v4569_v11 = vld [vmem:[%s6006_s4 + $0x40] ss:$24 sps:$4 sm:$0xff]  }
 0x271   :  { %v1173_v21 = vsub.f32 1.0, %v1165_v9  ;;  %v1187_v28 = vadd.f32 1.0, %v1179_v24  ;;  %v1082_v31 = vmul.f32 %v5695_v47, %v1074_v22  ;;  %v1097_v42 = vmul.f32 %v5688_v41, %v1089_v27  ;;  %v4931_v13 = vpop.eup %4930 }
 0x272   :  { %v1174_v58 = vsub.f32 1.0, %v1166_v33  ;;  %v1127_v36 = vmul.f32 %v5672_v52, %v1119_v23  ;;  %4932 = vpow2.f32 %v1161_v56  ;;  %v1128_v55 = vmul.f32 %v5674_v32, %v1120_v30 }
 0x273   :  { %v1181_v26 = vmul.f32 %v1173_v21, %v5638_v25  ;;  %v1090_v45 = vadd.f32 1.4214138, %v1082_v31  ;;  %v1188_v62 = vadd.f32 1.0, %v1180_v5  ;;  %v1105_v39 = vadd.f32 -0.28449672, %v1097_v42 }
 0x274   :  { %v1182_v8 = vmul.f32 %v1174_v58, %v5670_v3  ;;  %v1167_v25 = vmul.f32 %v4927_v16, %v1127_v36  ;;  %v1195_v43 = vmul.f32 %v1187_v28, %v5608_v38  ;;  %v1168_v46 = vmul.f32 %v4929_v34, %v1128_v55  ;;  %v4575_v42 = vld [vmem:[%s6006_s4 + $0xa0] ss:$24 sps:$4 sm:$0xff]  }
 0x275   :  { %v1189_v44 = vadd.f32 1.0, %v1181_v26  ;;  %v1098_v52 = vmul.f32 %v5695_v47, %v1090_v45  ;;  %v1113_v54 = vmul.f32 %v5688_v41, %v1105_v39  ;;  %v1015_v3 = vsel %vm1007_vm9, 1.0, %v5035_v61  ;;  %v4572_v26 = vld [vmem:[%s6006_s4 + $0x70] ss:$24 sps:$4 sm:$0xff]  }
 0x276   :  { %v1190_v60 = vadd.f32 1.0, %v1182_v8  ;;  %v1175_v18 = vsub.f32 1.0, %v1167_v25  ;;  %v1196_v38 = vmul.f32 %v1188_v62, %v5616_v37  ;;  %v1016_v63 = vsel %vm1008_vm10, 1.0, %v5035_v61  ;;  %v4578_v45 = vld [vmem:[%s6006_s4 + $0xd0] ss:$24 sps:$4 sm:$0xff]  }
 0x277   :  { %v1197_v6 = vmul.f32 %v1189_v44, %v5629_v49  ;;  %v1106_v50 = vadd.f32 -0.28449672, %v1098_v52  ;;  %v1121_v57 = vadd.f32 0.2548296, %v1113_v54  ;;  %v1176_v24 = vsub.f32 1.0, %v1168_v46 }
 0x278   :  { %v1198_v49 = vmul.f32 %v1190_v60, %v5631_v51  ;;  %v1183_v9 = vmul.f32 %v1175_v18, %v1015_v3  ;;  %v4571_v51 = vld [vmem:[%s6006_s4 + $0x44] ss:$24 sps:$4 sm:$0xff]   ;;  %v1017_v56 = vsel %vm1009_vm11, 1.0, %v5035_v61  ;;  %v1018_v5 = vsel %vm1010_vm12, 1.0, %v5035_v61  ;;  %v4581_v8 = vld [vmem:[%s6006_s4 + $0x100] ss:$24 sps:$4 sm:$0xff]  }
 0x279   :  { %v5716_v32 = vpack.c.bf16 %v1197_v6, %v1195_v43  ;;  %v1114_v2 = vmul.f32 %v5695_v47, %v1106_v50  ;;  %v1129_v10 = vmul.f32 %v5688_v41, %v1121_v57  ;;  %v1184_v19 = vmul.f32 %v1176_v24, %v1016_v63  ;;  %v4583_v62 = vld [vmem:[%s6006_s4 + $0x104] ss:$24 sps:$4 sm:$0xff]   ;;  %v4586_v25 = vld [vmem:[%s6006_s4 + $0x134] ss:$24 sps:$4 sm:$0xff]   ;;  %v4584_v39 = vld [vmem:[%s6006_s4 + $0x130] ss:$24 sps:$4 sm:$0xff]  }
 0x27a   :  { %v1204_v7 = vpack.c.bf16 %v1198_v49, %v1196_v38  ;;  %v990_v41 = vmul.f32 0.5, %v5606_v29  ;;  %v1191_v20 = vadd.f32 1.0, %v1183_v9  ;;  %v991_v29 = vmul.f32 0.5, %v5611_v35  ;;  %v4589_v43 = vld [vmem:[%s6006_s4 + $0x164] ss:$24 sps:$4 sm:$0xff]  }
 0x27b   :  { %v1122_v37 = vadd.f32 0.2548296, %v1114_v2  ;;  %v1169_v17 = vmul.f32 %v4931_v13, %v1129_v10  ;;  %v1192_v33 = vadd.f32 1.0, %v1184_v19  ;;  %v993_v30 = vmul.f32 0.5, %v5644_v1  ;;  %v4580_v1 = vld [vmem:[%s6006_s4 + $0xd4] ss:$24 sps:$4 sm:$0xff]  }
 0x27c   :  { %v4933_v15 = vpop.eup %4932  ;;  %1815 = vmatprep.mubr.bf16.mxu0 %v1204_v7  ;;  %1868 = vmatprep.mubr.bf16.mxu1 %v1204_v7  ;;  %v1199_v27 = vmul.f32 %v1191_v20, %v990_v41  ;;  %v4587_v6 = vld [vmem:[%s6006_s4 + $0x160] ss:$24 sps:$4 sm:$0xff]   ;;  %v4592_v46 = vld [vmem:[%s6006_s4 + $0x194] ss:$24 sps:$4 sm:$0xff]   ;;  %v4590_v52 = vld [vmem:[%s6006_s4 + $0x190] ss:$24 sps:$4 sm:$0xff]  }
 0x27d   :  { %v1130_v4 = vmul.f32 %v5695_v47, %v1122_v37  ;;  %1816 = vmatmul.mubr.bf16.vlgmr.msra.gmra.mrb[16].mxu0 %v5716_v32  ;;  %1869 = vmatmul.mubr.bf16.vlgmr.msra.gmra.mrb[40].mxu1 %v5716_v32  ;;  %v1177_v21 = vsub.f32 1.0, %v1169_v17  ;;  %v992_v47 = vmul.f32 0.5, %v5633_v12  ;;  %v4577_v12 = vld [vmem:[%s6006_s4 + $0xa4] ss:$24 sps:$4 sm:$0xff]   ;;  %v1200_v58 = vmul.f32 %v1192_v33, %v991_v29  ;;  %v4593_v18 = vld [vmem:[%s6006_s4 + $0x1c0] ss:$24 sps:$4 sm:$0xff]  }
 0x27e   :  { %1890 = vmatpush1.bf16.msra.mxu0 %v4566_v40  ;;  %v4595_v60 = vld [vmem:[%s6006_s4 + $0x1c4] ss:$24 sps:$4 sm:$0xff]   ;;  %v4598_v54 = vld [vmem:[%s6006_s4 + $0x1f4] ss:$24 sps:$4 sm:$0xff]   ;;  %v4596_v3 = vld [vmem:[%s6006_s4 + $0x1f0] ss:$24 sps:$4 sm:$0xff]  }
 0x27f   :  { %v1170_v22 = vmul.f32 %v4933_v15, %v1130_v4  ;;  %1891 = vmatprep.subr.bf16.mxu0 %v4571_v51  ;;  %v1185_v16 = vmul.f32 %v1177_v21, %v1017_v56  ;;  %v4601_v50 = vld [vmem:[%s6006_s4 + $0x224] ss:$24 sps:$4 sm:$0xff]   ;;  %v4599_v38 = vld [vmem:[%s6006_s4 + $0x220] ss:$24 sps:$4 sm:$0xff]   ;;  %v4604_v49 = vld [vmem:[%s6006_s4 + $0x254] ss:$24 sps:$4 sm:$0xff]  }
 0x280   :  { %v4602_v57 = vld [vmem:[%s6006_s4 + $0x250] ss:$24 sps:$4 sm:$0xff]   ;;  %v4607_v13 = vld [vmem:[%s6006_s4 + $0x284] ss:$24 sps:$4 sm:$0xff]   ;;  %v4605_v63 = vld [vmem:[%s6006_s4 + $0x280] ss:$24 sps:$4 sm:$0xff]  }
 0x281   :  { %v1178_v23 = vsub.f32 1.0, %v1170_v22  ;;  %v1193_v28 = vadd.f32 1.0, %v1185_v16  ;;  %v4610_v24 = vld [vmem:[%s6006_s4 + $0x2b4] ss:$24 sps:$4 sm:$0xff]   ;;  %v4608_v2 = vld [vmem:[%s6006_s4 + $0x2b0] ss:$24 sps:$4 sm:$0xff]  }
 0x282   :  { %1892 = vmatpush1.bf16.msra.mxu0 %v4569_v11  ;;  %v4613_v9 = vld [vmem:[%s6006_s4 + $0x2e4] ss:$24 sps:$4 sm:$0xff]   ;;  %v4611_v10 = vld [vmem:[%s6006_s4 + $0x2e0] ss:$24 sps:$4 sm:$0xff]   ;;  %v694_v33 = vadd.s32 16, %v5196_v59  ;;  %vm3910_vm10 = vcmask 64512  }
 0x283   :  { %v1186_v31 = vmul.f32 %v1178_v23, %v1018_v5  ;;  %1893 = vmatprep.subr.bf16.mxu0 %v4574_v14  ;;  %v1201_v34 = vmul.f32 %v1193_v28, %v992_v47  ;;  %v4619_v40 = vld [vmem:[#allocation4 + $0xc] ss:$24 sps:$4 sm:$0xff]   ;;  %v4625_v37 = vld [vmem:[#allocation4 + $0x3c] ss:$24 sps:$4 sm:$0xff]   ;;  %v4623_v51 = vld [vmem:[#allocation4 + $0x38] ss:$24 sps:$4 sm:$0xff]  }
 0x284   :  { %v1992_v23 = vand.u32 15, %v694_v33 }
 0x285   :  { %v1194_v35 = vadd.f32 1.0, %v1186_v31  ;;  %v1205_v36 = vpack.c.bf16 %v1201_v34, %v1199_v27  ;;  %v1978_v27 = vand.u32 15, %v5196_v59 }
 0x286   :  { %1894 = vmatpush1.bf16.msra.mxu0 %v4572_v26  ;;  %vm5838_vm13 = vcmp.eq.s32.totalorder %v1992_v23, 0 }
 0x287   :  { %v1202_v44 = vmul.f32 %v1194_v35, %v993_v30  ;;  %1895 = vmatprep.subr.bf16.mxu0 %v4577_v12  ;;  %vm5844_vm14 = vcmp.eq.s32.totalorder %v1978_v27, 0 }
 0x289   :  { %v1206_v55 = vpack.c.bf16 %v1202_v44, %v1200_v58 }
 0x28a   :  { %1896 = vmatpush1.bf16.msra.mxu0 %v4575_v42 }
 0x28b   :  { %1825 = vmatprep.mubr.bf16.mxu0 %v1206_v55  ;;  %1878 = vmatprep.mubr.bf16.mxu1 %v1206_v55 }
 0x28c   :  { %1826 = vmatmul.mubr.bf16.gmra.mrb[20].mxu0 %v1205_v36  ;;  %1879 = vmatmul.mubr.bf16.gmra.mrb[44].mxu1 %v1205_v36 }
 0x28d   :  { %1921 = vmatprep.mubr.bf16.mxu0 %v1204_v7  ;;  %1897 = vmatprep.subr.bf16.mxu0 %v4580_v1  ;;  %v4617_v7 = vld [vmem:[#allocation4 + $0x8] ss:$24 sps:$4 sm:$0xff]  }
 0x28e   :  { %1898 = vmatpush1.bf16.msra.mxu0 %v4578_v45  ;;  %2143 = vmatprep.mubr.f32.mxu1 %v5034_v53 }
 0x28f   :  { %1899 = vmatprep.subr.bf16.mxu0 %v4583_v62 }
 0x292   :  { %1900 = vmatpush1.bf16.msra.mxu0 %v4581_v8 }
 0x293   :  { %1901 = vmatprep.subr.bf16.mxu0 %v4586_v25 }
 0x296   :  { %1902 = vmatpush1.bf16.msra.mxu0 %v4584_v39 }
 0x297   :  { %1903 = vmatprep.subr.bf16.mxu0 %v4589_v43 }
 0x29a   :  { %1904 = vmatpush1.bf16.msra.mxu0 %v4587_v6 }
 0x29b   :  { %1905 = vmatprep.subr.bf16.mxu0 %v4592_v46 }
 0x29e   :  { %1906 = vmatpush1.bf16.msra.mxu0 %v4590_v52 }
 0x29f   :  { %1907 = vmatprep.subr.bf16.mxu0 %v4595_v60 }
 0x2a2   :  { %1908 = vmatpush1.bf16.msra.mxu0 %v4593_v18 }
 0x2a3   :  { %1909 = vmatprep.subr.bf16.mxu0 %v4598_v54 }
 0x2a6   :  { %1910 = vmatpush1.bf16.msra.mxu0 %v4596_v3 }
 0x2a7   :  { %1911 = vmatprep.subr.bf16.mxu0 %v4601_v50 }
 0x2aa   :  { %1912 = vmatpush1.bf16.msra.mxu0 %v4599_v38 }
 0x2ab   :  { %1913 = vmatprep.subr.bf16.mxu0 %v4604_v49 }
 0x2ae   :  { %1914 = vmatpush1.bf16.msra.mxu0 %v4602_v57 }
 0x2af   :  { %1915 = vmatprep.subr.bf16.mxu0 %v4607_v13 }
 0x2b2   :  { %1916 = vmatpush1.bf16.msra.mxu0 %v4605_v63 }
 0x2b3   :  { %1917 = vmatprep.subr.bf16.mxu0 %v4610_v24 }
 0x2b6   :  { %1918 = vmatpush1.bf16.msra.mxu0 %v4608_v2 }
 0x2b7   :  { %1919 = vmatprep.subr.bf16.mxu0 %v4613_v9 }
 0x2ba   :  { %1920 = vmatpush1.bf16.msra.mxu0 %v4611_v10 }
 0x2bb   :  { %2885 = vmatprep.subr.bf16.mxu0 %v4619_v40 }
 0x2bd   :  { %1922 = vmatmul.mubr.bf16.vlgmr.msra.gmra.mrb[24].mxu0 %v5716_v32 }
 0x2be   :  { %1931 = vmatprep.mubr.bf16.mxu0 %v1206_v55  ;;  %2886 = vmatpush1.bf16.msra.mxu0 %v4617_v7  ;;  %v2059_v55 = vld [vmem:[%s6008_s6 + $0x8] sm:$0xff] }
 0x2bf   :  { %2887 = vmatprep.subr.bf16.mxu0 %v4625_v37 }
 0x2c2   :  { %2888 = vmatpush1.bf16.msra.mxu0 %v4623_v51 }
 0x2c5   :  { %1932 = vmatmul.mubr.bf16.gmra.mrb[28].mxu0 %v1205_v36 }
 0x350   :  { %v1817_v15 = vpop.f32.mrb[16].mxu0  ;;  %v1870_v17 = vpop.f32.mrb[40].mxu1 }
 0x351   :  { %v1819_v19 = vpop.f32.mrb[17].mxu0  ;;  %v1872_v56 = vpop.f32.mrb[41].mxu1  ;;  %v1942_v20 = vrot.slane %v1817_v15, 7 }
 0x352   :  { %v1821_v4 = vpop.f32.mrb[18].mxu0  ;;  %v1874_v41 = vpop.f32.mrb[42].mxu1  ;;  %v1943_v22 = vrot.slane %v1819_v19, 7 }
 0x353   :  { %v1944_v21 = vrot.slane %v1821_v4, 7  ;;  %v1823_v11 = vpop.f32.mrb[19].mxu0  ;;  %v1876_v32 = vpop.f32.mrb[43].mxu1 }
 0x354   :  { %v1945_v14 = vrot.slane %v1823_v11, 7 }
 0x355   :  { %v1954_v47 = vsel %vm643_vm0, %v1942_v20, %v1944_v21 }
 0x356   :  { %v2044_v16 = vadd.f32 %v1954_v47, %v1874_v41  ;;  %v1955_v5 = vsel %vm643_vm0, %v1943_v22, %v1945_v14 }
 0x357   :  { %v2045_v29 = vadd.f32 %v1955_v5, %v1876_v32 }
 0x35f   :  { %v1827_v28 = vpop.f32.mrb[20].mxu0  ;;  %v1880_v26 = vpop.f32.mrb[44].mxu1 }
 0x360   :  { %v1946_v30 = vrot.slane %v1827_v28, 7  ;;  %v1829_v12 = vpop.f32.mrb[21].mxu0  ;;  %v1882_v34 = vpop.f32.mrb[45].mxu1 }
 0x361   :  { %v1947_v58 = vrot.slane %v1829_v12, 7  ;;  %v1831_v35 = vpop.f32.mrb[22].mxu0  ;;  %v1884_v36 = vpop.f32.mrb[46].mxu1 }
 0x362   :  { %v1952_v42 = vsel %vm643_vm0, %v1944_v21, %v1946_v30  ;;  %v1948_v44 = vrot.slane %v1831_v35, 7  ;;  %v1833_v1 = vpop.f32.mrb[23].mxu0  ;;  %v1886_v45 = vpop.f32.mrb[47].mxu1 }
 0x363   :  { %v2038_v62 = vsel %vm5838_vm13, 0.0, %v1952_v42  ;;  %v1953_v8 = vsel %vm643_vm0, %v1945_v14, %v1947_v58  ;;  %v1949_v25 = vrot.slane %v1833_v1, 7  ;;  %v4614_v42 = vld [vmem:[#allocation4] ss:$24 sps:$4 sm:$0xff]   ;;  %v4620_v1 = vld [vmem:[#allocation4 + $0x30] ss:$24 sps:$4 sm:$0xff]  }
 0x364   :  { %v2046_v39 = vadd.f32 %v2038_v62, %v1880_v26  ;;  %v2039_v43 = vsel %vm5838_vm13, 0.0, %v1953_v8  ;;  %v1956_v6 = vsel %vm643_vm0, %v1948_v44, %v1942_v20  ;;  %v1950_v46 = vsel %vm643_vm0, %v1946_v30, %v1948_v44  ;;  %v4622_v44 = vld [vmem:[#allocation4 + $0x34] ss:$24 sps:$4 sm:$0xff]   ;;  %v4626_v62 = vld [vmem:[#allocation4 + $0x60] ss:$24 sps:$4 sm:$0xff]  }
 0x365   :  { %v2047_v52 = vadd.f32 %v2039_v43, %v1882_v34  ;;  %v2034_v60 = vsel %vm5844_vm14, 0.0, %v1956_v6  ;;  %v2048_v18 = vadd.f32 %v1950_v46, %v1884_v36  ;;  %v1957_v54 = vsel %vm643_vm0, %v1949_v25, %v1943_v22  ;;  %v4616_v36 = vld [vmem:[#allocation4 + $0x4] ss:$24 sps:$4 sm:$0xff]   ;;  %v4632_v43 = vld [vmem:[#allocation4 + $0x90] ss:$24 sps:$4 sm:$0xff]  }
 0x366   :  { %v2042_v3 = vadd.f32 %v2034_v60, %v1870_v17  ;;  %v2035_v50 = vsel %vm5844_vm14, 0.0, %v1957_v54  ;;  %v1951_v38 = vsel %vm643_vm0, %v1947_v58, %v1949_v25  ;;  %v4631_v8 = vld [vmem:[#allocation4 + $0x6c] ss:$24 sps:$4 sm:$0xff]   ;;  %v4629_v25 = vld [vmem:[#allocation4 + $0x68] ss:$24 sps:$4 sm:$0xff]  }
 0x367   :  { %v2043_v49 = vadd.f32 %v2035_v50, %v1872_v56  ;;  %v2049_v57 = vadd.f32 %v1951_v38, %v1886_v45  ;;  %v4628_v45 = vld [vmem:[#allocation4 + $0x64] ss:$24 sps:$4 sm:$0xff]   ;;  %2889 = vmatprep.subr.bf16.mxu0 %v4631_v8  ;;  %v4635_v46 = vld [vmem:[#allocation4 + $0x98] ss:$24 sps:$4 sm:$0xff]   ;;  %v4641_v54 = vld [vmem:[#allocation4 + $0xc8] ss:$24 sps:$4 sm:$0xff]  }
 0x368   :  { %2890 = vmatpush1.bf16.msra.mxu0 %v4629_v25  ;;  %v4637_v6 = vld [vmem:[#allocation4 + $0x9c] ss:$24 sps:$4 sm:$0xff]   ;;  %v4638_v60 = vld [vmem:[#allocation4 + $0xc0] ss:$24 sps:$4 sm:$0xff]   ;;  %v4644_v50 = vld [vmem:[#allocation4 + $0xf0] ss:$24 sps:$4 sm:$0xff]  }
 0x369   :  { %2891 = vmatprep.subr.bf16.mxu0 %v4637_v6  ;;  %v4649_v38 = vld [vmem:[#allocation4 + $0xfc] ss:$24 sps:$4 sm:$0xff]  }
 0x36c   :  { %2892 = vmatpush1.bf16.msra.mxu0 %v4635_v46 }
 0x390   :  { %v1923_v13 = vpop.f32.mrb[24].mxu0 }
 0x391   :  { %v1925_v63 = vpop.f32.mrb[25].mxu0  ;;  %v1958_v2 = vrot.slane %v1923_v13, 1  ;;  %v4650_v13 = vld [vmem:[#allocation4 + $0x120] ss:$24 sps:$4 sm:$0xff]  }
 0x392   :  { %v1927_v24 = vpop.f32.mrb[26].mxu0  ;;  %v1959_v7 = vrot.slane %v1925_v63, 1  ;;  %v4655_v63 = vld [vmem:[#allocation4 + $0x12c] ss:$24 sps:$4 sm:$0xff]  }
 0x393   :  { %v1960_v9 = vrot.slane %v1927_v24, 1  ;;  %v1929_v10 = vpop.f32.mrb[27].mxu0  ;;  %v4653_v24 = vld [vmem:[#allocation4 + $0x128] ss:$24 sps:$4 sm:$0xff]  }
 0x394   :  { %v1961_v40 = vrot.slane %v1929_v10, 1  ;;  %v4661_v10 = vld [vmem:[#allocation4 + $0x15c] ss:$24 sps:$4 sm:$0xff]  }
 0x395   :  { %v1970_v37 = vsel %vm676_vm1, %v1958_v2, %v1960_v9 }
 0x396   :  { %v2050_v51 = vadd.f32 %v2042_v3, %v1970_v37  ;;  %v1971_v15 = vsel %vm676_vm1, %v1959_v7, %v1961_v40  ;;  %v4646_v3 = vld [vmem:[#allocation4 + $0xf4] ss:$24 sps:$4 sm:$0xff]   ;;  %v4662_v37 = vld [vmem:[#allocation4 + $0x180] ss:$24 sps:$4 sm:$0xff]  }
 0x397   :  { %v2051_v17 = vadd.f32 %v2043_v49, %v1971_v15  ;;  %v4647_v49 = vld [vmem:[#allocation4 + $0xf8] ss:$24 sps:$4 sm:$0xff]   ;;  %v4665_v15 = vld [vmem:[#allocation4 + $0x188] ss:$24 sps:$4 sm:$0xff]  }
 0x398   :  { %v1933_v19 = vpop.f32.mrb[28].mxu0 }
 0x399   :  { %v1962_v4 = vrot.slane %v1933_v19, 1  ;;  %v1935_v56 = vpop.f32.mrb[29].mxu0  ;;  %v4668_v19 = vld [vmem:[#allocation4 + $0x1b0] ss:$24 sps:$4 sm:$0xff]  }
 0x39a   :  { %v1963_v41 = vrot.slane %v1935_v56, 1  ;;  %v1937_v20 = vpop.f32.mrb[30].mxu0  ;;  %v4671_v56 = vld [vmem:[#allocation4 + $0x1b8] ss:$24 sps:$4 sm:$0xff]  }
 0x39b   :  { %v1968_v21 = vsel %vm676_vm1, %v1960_v9, %v1962_v4  ;;  %v1964_v11 = vrot.slane %v1937_v20, 1  ;;  %v1939_v32 = vpop.f32.mrb[31].mxu0  ;;  %v4656_v9 = vld [vmem:[#allocation4 + $0x150] ss:$24 sps:$4 sm:$0xff]   ;;  %v4674_v20 = vld [vmem:[#allocation4 + $0x1e0] ss:$24 sps:$4 sm:$0xff]  }
 0x39c   :  { %v2052_v22 = vadd.f32 %v2044_v16, %v1968_v21  ;;  %v1969_v14 = vsel %vm676_vm1, %v1961_v40, %v1963_v41  ;;  %v1965_v47 = vrot.slane %v1939_v32, 1  ;;  %v4664_v40 = vld [vmem:[#allocation4 + $0x184] ss:$24 sps:$4 sm:$0xff]   ;;  %v4682_v32 = vld [vmem:[#allocation4 + $0x214] ss:$24 sps:$4 sm:$0xff]  }
 0x39d   :  { %v1966_v5 = vsel %vm676_vm1, %v1962_v4, %v1964_v11  ;;  %v1972_v33 = vsel %vm676_vm1, %v1964_v11, %v1958_v2  ;;  %v2053_v23 = vadd.f32 %v2045_v29, %v1969_v14  ;;  %v2058_v29 = vld [vmem:[%s6008_s6] sm:$0xff]  ;;  %v4658_v2 = vld [vmem:[#allocation4 + $0x154] ss:$24 sps:$4 sm:$0xff]  }
 0x39e   :  { %v2054_v27 = vadd.f32 %v2046_v39, %v1966_v5  ;;  %v2056_v28 = vadd.f32 %v2048_v18, %v1972_v33  ;;  %v1967_v26 = vsel %vm676_vm1, %v1963_v41, %v1965_v47  ;;  %v1973_v30 = vsel %vm676_vm1, %v1965_v47, %v1959_v7  ;;  %v4634_v39 = vld [vmem:[#allocation4 + $0x94] ss:$24 sps:$4 sm:$0xff]   ;;  %v4659_v7 = vld [vmem:[#allocation4 + $0x158] ss:$24 sps:$4 sm:$0xff]   ;;  %v4676_v41 = vld [vmem:[#allocation4 + $0x1e4] ss:$24 sps:$4 sm:$0xff]  }
 0x39f   :  { %v4373_v16 = vpack.c.bf16 %v2053_v23, %v2051_v17  ;;  %v4375_v31 = vpack.c.bf16 %v2052_v22, %v2050_v51  ;;  %v2055_v12 = vadd.f32 %v2047_v52, %v1967_v26  ;;  %v2057_v34 = vadd.f32 %v2049_v57, %v1973_v30  ;;  %v4640_v52 = vld [vmem:[#allocation4 + $0xc4] ss:$24 sps:$4 sm:$0xff]   ;;  %v4670_v17 = vld [vmem:[#allocation4 + $0x1b4] ss:$24 sps:$4 sm:$0xff]   ;;  %v4677_v11 = vld [vmem:[#allocation4 + $0x1e8] ss:$24 sps:$4 sm:$0xff]  }
 0x3a0   :  { %v4379_v58 = vpack.c.bf16 %v2056_v28, %v2054_v27  ;;  %v4643_v18 = vld [vmem:[#allocation4 + $0xcc] ss:$24 sps:$4 sm:$0xff]   ;;  %v4673_v4 = vld [vmem:[#allocation4 + $0x1bc] ss:$24 sps:$4 sm:$0xff]   ;;  %v4680_v22 = vld [vmem:[#allocation4 + $0x210] ss:$24 sps:$4 sm:$0xff]  }
 0x3a1   :  { %4374 = vmatprep.subr.bf16.mxu1 %v4373_v16  ;;  %v4377_v35 = vpack.c.bf16 %v2057_v34, %v2055_v12  ;;  %2893 = vmatprep.subr.bf16.mxu0 %v4643_v18  ;;  %v4652_v57 = vld [vmem:[#allocation4 + $0x124] ss:$24 sps:$4 sm:$0xff]   ;;  %v4683_v47 = vld [vmem:[#allocation4 + $0x218] ss:$24 sps:$4 sm:$0xff]   ;;  %v4689_v27 = vld [vmem:[#allocation4 + $0x248] ss:$24 sps:$4 sm:$0xff]  }
 0x3a2   :  { %4376 = vmatpush1.bf16.msra.mxu1 %v4375_v31  ;;  %2894 = vmatpush1.bf16.msra.mxu0 %v4641_v54  ;;  %v4667_v51 = vld [vmem:[#allocation4 + $0x18c] ss:$24 sps:$4 sm:$0xff]   ;;  %v4685_v14 = vld [vmem:[#allocation4 + $0x21c] ss:$24 sps:$4 sm:$0xff]   ;;  %v4686_v33 = vld [vmem:[#allocation4 + $0x240] ss:$24 sps:$4 sm:$0xff]  }
 0x3a3   :  { %4378 = vmatprep.subr.bf16.mxu1 %v4377_v35  ;;  %2895 = vmatprep.subr.bf16.mxu0 %v4649_v38  ;;  %v4679_v21 = vld [vmem:[#allocation4 + $0x1ec] ss:$24 sps:$4 sm:$0xff]   ;;  %v4692_v26 = vld [vmem:[#allocation4 + $0x270] ss:$24 sps:$4 sm:$0xff]   ;;  %v4697_v30 = vld [vmem:[#allocation4 + $0x27c] ss:$24 sps:$4 sm:$0xff]  }
 0x3a4   :  { %v4688_v5 = vld [vmem:[#allocation4 + $0x244] ss:$24 sps:$4 sm:$0xff]   ;;  %v4694_v28 = vld [vmem:[#allocation4 + $0x274] ss:$24 sps:$4 sm:$0xff]   ;;  %v4695_v16 = vld [vmem:[#allocation4 + $0x278] ss:$24 sps:$4 sm:$0xff]  }
 0x3a5   :  { %v4691_v23 = vld [vmem:[#allocation4 + $0x24c] ss:$24 sps:$4 sm:$0xff]   ;;  %v4698_v12 = vld [vmem:[#allocation4 + $0x2a0] ss:$24 sps:$4 sm:$0xff]  }
 0x3a6   :  { %4380 = vmatpush1.bf16.msra.mxu1 %v4379_v58  ;;  %2896 = vmatpush1.bf16.msra.mxu0 %v4647_v49  ;;  %v4700_v31 = vld [vmem:[#allocation4 + $0x2a4] ss:$24 sps:$4 sm:$0xff]   ;;  %v4701_v58 = vld [vmem:[#allocation4 + $0x2a8] ss:$24 sps:$4 sm:$0xff]   ;;  %v4706_v35 = vld [vmem:[#allocation4 + $0x2d4] ss:$24 sps:$4 sm:$0xff]  }
 0x3a7   :  { %2842 = vmatprep.subr.bf16.mxu1 %v4616_v36  ;;  %2897 = vmatprep.subr.bf16.mxu0 %v4655_v63  ;;  %v4703_v34 = vld [vmem:[#allocation4 + $0x2ac] ss:$24 sps:$4 sm:$0xff]   ;;  %v4704_v36 = vld [vmem:[#allocation4 + $0x2d0] ss:$24 sps:$4 sm:$0xff]  }
 0x3a9   :  { %4159 = vmatmul.mubr.msk.f32.vlgmr.msra.gmra.mrb[48].mxu1 %vm2072_vm15, %v2058_v29  ;;  %v4709_v29 = vld [vmem:[#allocation4 + $0x2dc] ss:$24 sps:$4 sm:$0xff]  }
 0x3aa   :  { %2149 = vmatprep.mubr.f32.mxu1 %v5034_v53  ;;  %2843 = vmatpush1.bf16.msra.mxu1 %v4614_v42  ;;  %v4707_v42 = vld [vmem:[#allocation4 + $0x2d8] ss:$24 sps:$4 sm:$0xff]  }
 0x3ab   :  { %2844 = vmatprep.subr.bf16.mxu1 %v4622_v44  ;;  %2898 = vmatpush1.bf16.msra.mxu0 %v4653_v24  ;;  %v4712_v44 = vld [vmem:[#allocation4 + $0x14] ss:$24 sps:$4 sm:$0xff]  }
 0x3ac   :  { %2899 = vmatprep.subr.bf16.mxu0 %v4661_v10 }
 0x3ad   :  { %4160 = vmatmul.mubr.msk.f32.gmra.mrb[50].mxu1 %vm2072_vm15, %v2059_v55  ;;  %v2060_v55 = vld [vmem:[%s6007_s5] sm:$0x3] }
 0x3ae   :  { %2845 = vmatpush1.bf16.msra.mxu1 %v4620_v1  ;;  %v2065_v1 = vrot.slane %v2060_v55, %v5589_v0 }
 0x3af   :  { %2846 = vmatprep.subr.bf16.mxu1 %v4628_v45  ;;  %2900 = vmatpush1.bf16.msra.mxu0 %v4659_v7  ;;  %v2069_v45 = vrot.slane %v2060_v55, %v5595_v48 }
 0x3b0   :  { %2901 = vmatprep.subr.bf16.mxu0 %v4667_v51 }
 0x3b2   :  { %2847 = vmatpush1.bf16.msra.mxu1 %v4626_v62 }
 0x3b3   :  { %2848 = vmatprep.subr.bf16.mxu1 %v4634_v39  ;;  %2902 = vmatpush1.bf16.msra.mxu0 %v4665_v15 }
 0x3b4   :  { %2903 = vmatprep.subr.bf16.mxu0 %v4673_v4 }
 0x3b6   :  { %2849 = vmatpush1.bf16.msra.mxu1 %v4632_v43 }
 0x3b7   :  { %2850 = vmatprep.subr.bf16.mxu1 %v4640_v52  ;;  %2904 = vmatpush1.bf16.msra.mxu0 %v4671_v56 }
 0x3b8   :  { %2905 = vmatprep.subr.bf16.mxu0 %v4679_v21 }
 0x3ba   :  { %2851 = vmatpush1.bf16.msra.mxu1 %v4638_v60 }
 0x3bb   :  { %2852 = vmatprep.subr.bf16.mxu1 %v4646_v3  ;;  %2906 = vmatpush1.bf16.msra.mxu0 %v4677_v11 }
 0x3bc   :  { %2907 = vmatprep.subr.bf16.mxu0 %v4685_v14 }
 0x3be   :  { %2853 = vmatpush1.bf16.msra.mxu1 %v4644_v50 }
 0x3bf   :  { %2854 = vmatprep.subr.bf16.mxu1 %v4652_v57  ;;  %2908 = vmatpush1.bf16.msra.mxu0 %v4683_v47 }
 0x3c0   :  { %2909 = vmatprep.subr.bf16.mxu0 %v4691_v23 }
 0x3c2   :  { %2855 = vmatpush1.bf16.msra.mxu1 %v4650_v13 }
 0x3c3   :  { %2856 = vmatprep.subr.bf16.mxu1 %v4658_v2  ;;  %2910 = vmatpush1.bf16.msra.mxu0 %v4689_v27 }
 0x3c4   :  { %2911 = vmatprep.subr.bf16.mxu0 %v4697_v30 }
 0x3c6   :  { %2857 = vmatpush1.bf16.msra.mxu1 %v4656_v9 }
 0x3c7   :  { %2858 = vmatprep.subr.bf16.mxu1 %v4664_v40  ;;  %2912 = vmatpush1.bf16.msra.mxu0 %v4695_v16 }
 0x3c8   :  { %2913 = vmatprep.subr.bf16.mxu0 %v4703_v34 }
 0x3ca   :  { %2859 = vmatpush1.bf16.msra.mxu1 %v4662_v37 }
 0x3cb   :  { %2860 = vmatprep.subr.bf16.mxu1 %v4670_v17  ;;  %2914 = vmatpush1.bf16.msra.mxu0 %v4701_v58 }
 0x3cc   :  { %2915 = vmatprep.subr.bf16.mxu0 %v4709_v29 }
 0x3ce   :  { %2861 = vmatpush1.bf16.msra.mxu1 %v4668_v19 }
 0x3cf   :  { %2862 = vmatprep.subr.bf16.mxu1 %v4676_v41  ;;  %2916 = vmatpush1.bf16.msra.mxu0 %v4707_v42 }
 0x3d2   :  { %2863 = vmatpush1.bf16.msra.mxu1 %v4674_v20 }
 0x3d3   :  { %2864 = vmatprep.subr.bf16.mxu1 %v4682_v32 }
 0x3d6   :  { %2865 = vmatpush1.bf16.msra.mxu1 %v4680_v22 }
 0x3d7   :  { %2866 = vmatprep.subr.bf16.mxu1 %v4688_v5 }
 0x3da   :  { %2867 = vmatpush1.bf16.msra.mxu1 %v4686_v33 }
 0x3db   :  { %2868 = vmatprep.subr.bf16.mxu1 %v4694_v28 }
 0x3de   :  { %2869 = vmatpush1.bf16.msra.mxu1 %v4692_v26 }
 0x3df   :  { %2870 = vmatprep.subr.bf16.mxu1 %v4700_v31 }
 0x3e2   :  { %2871 = vmatpush1.bf16.msra.mxu1 %v4698_v12 }
 0x3e3   :  { %2872 = vmatprep.subr.bf16.mxu1 %v4706_v35 }
 0x3e6   :  { %2873 = vmatpush1.bf16.msra.mxu1 %v4704_v36 }
 0x3e7   :  { %2928 = vmatprep.subr.bf16.mxu1 %v4712_v44 }
 0x47c   :  { %v2145_v62 = vpop.f32.mrb[48].mxu1 }
 0x47d   :  { %v5894_v8 = vadd.f32 %v2145_v62, %v2065_v1  ;;  %v2147_v25 = vpop.f32.mrb[49].mxu1 }
 0x47e   :  { %v5896_v39 = vadd.f32 %v2147_v25, %v2069_v45 }
 0x47f   :  { %v5899_v43 = vmul.f32 0.70710677, %v5894_v8 }
 0x480   :  { %v5902_v6 = vmul.f32 0.70710677, %v5896_v39  ;;  %v2151_v46 = vpop.f32.mrb[50].mxu1 }
 0x481   :  { %v2172_v52 = vand.u32 2147483647, %v5899_v43  ;;  %v5905_v60 = vadd.f32 %v2151_v46, %v2065_v1  ;;  %v2153_v18 = vpop.f32.mrb[51].mxu1  ;;  %vm2164_vm2 = vcmp.ge.f32.partialorder %v5899_v43, 0.0 }
 0x482   :  { %v2173_v54 = vand.u32 2147483647, %v5902_v6  ;;  %v5908_v3 = vadd.f32 %v2153_v18, %v2069_v45  ;;  %vm2165_vm3 = vcmp.ge.f32.partialorder %v5902_v6, 0.0 }
 0x483   :  { %v2176_v50 = vmul.f32 0.3275911, %v2172_v52  ;;  %v5911_v49 = vmul.f32 0.70710677, %v5905_v60  ;;  %v2228_v40 = vsub.f32 0.0, %v2172_v52  ;;  %v2169_v43 = vsel %vm2165_vm3, 1.0, %v5035_v61 }
 0x484   :  { %v2177_v38 = vmul.f32 0.3275911, %v2173_v54  ;;  %v5914_v13 = vmul.f32 0.70710677, %v5908_v3  ;;  %v2229_v51 = vsub.f32 0.0, %v2173_v54 }
 0x485   :  { %v2180_v57 = vadd.f32 1.0, %v2176_v50  ;;  %v2174_v24 = vand.u32 2147483647, %v5911_v49  ;;  %v2232_v17 = vmul.f32 %v2228_v40, %v2172_v52  ;;  %vm2166_vm4 = vcmp.ge.f32.partialorder %v5911_v49, 0.0 }
 0x486   :  { %v2181_v63 = vadd.f32 1.0, %v2177_v38  ;;  %v2175_v9 = vand.u32 2147483647, %v5914_v13  ;;  %v2233_v56 = vmul.f32 %v2229_v51, %v2173_v54  ;;  %vm2167_vm5 = vcmp.ge.f32.partialorder %v5914_v13, 0.0 }
 0x487   :  { %4934 = vrcp.f32 %v2180_v57  ;;  %v2178_v2 = vmul.f32 0.3275911, %v2174_v24  ;;  %v2230_v41 = vsub.f32 0.0, %v2174_v24  ;;  %v2236_v11 = vmul.f32 1.442695, %v2232_v17 }
 0x488   :  { %4936 = vrcp.f32 %v2181_v63  ;;  %v2179_v7 = vmul.f32 0.3275911, %v2175_v9  ;;  %v2231_v22 = vsub.f32 0.0, %v2175_v9  ;;  %v2238_v5 = vmul.f32 1.442695, %v2233_v56 }
 0x489   :  { %v2182_v10 = vadd.f32 1.0, %v2178_v2  ;;  %v2234_v33 = vmul.f32 %v2230_v41, %v2174_v24  ;;  %v2168_v41 = vsel %vm2164_vm2, 1.0, %v5035_v61 }
 0x48a   :  { %v2183_v37 = vadd.f32 1.0, %v2179_v7  ;;  %v2235_v31 = vmul.f32 %v2231_v22, %v2175_v9 }
 0x48b   :  { %4938 = vrcp.f32 %v2182_v10  ;;  %v2240_v34 = vmul.f32 1.442695, %v2234_v33 }
 0x48c   :  { %4940 = vrcp.f32 %v2183_v37  ;;  %v2242_v1 = vmul.f32 1.442695, %v2235_v31 }
 0x48d   :  { %4942 = vpow2.f32 %v2236_v11 }
 0x48e   :  { %4944 = vpow2.f32 %v2238_v5  ;;  %v2170_v5 = vsel %vm2166_vm4, 1.0, %v5035_v61 }
 0x48f   :  { %4946 = vpow2.f32 %v2240_v34  ;;  %v2157_v34 = vmul.f32 0.5, %v5896_v39  ;;  %v4718_v39 = vld [vmem:[#allocation4 + $0x74] ss:$24 sps:$4 sm:$0xff]  }
 0x490   :  { %4948 = vpow2.f32 %v2242_v1  ;;  %v4719_v1 = vld [vmem:[#allocation4 + $0xa0] ss:$24 sps:$4 sm:$0xff]  }
 0x491   :  { %v4935_v15 = vpop.eup %4934 }
 0x492   :  { %v4937_v19 = vpop.eup %4936  ;;  %v2192_v4 = vmul.f32 1.0614054, %v4935_v15 }
 0x493   :  { %v2193_v20 = vmul.f32 1.0614054, %v4937_v19 }
 0x494   :  { %v2196_v21 = vadd.f32 -1.4531521, %v2192_v4 }
 0x495   :  { %v2197_v32 = vadd.f32 -1.4531521, %v2193_v20  ;;  %v4939_v14 = vpop.eup %4938 }
 0x496   :  { %v2200_v47 = vmul.f32 %v4935_v15, %v2196_v21  ;;  %v2194_v27 = vmul.f32 1.0614054, %v4939_v14  ;;  %v4941_v26 = vpop.eup %4940 }
 0x497   :  { %v2201_v23 = vmul.f32 %v4937_v19, %v2197_v32  ;;  %v2195_v58 = vmul.f32 1.0614054, %v4941_v26  ;;  %v4943_v63 = vpop.eup %4942 }
 0x498   :  { %v2204_v28 = vadd.f32 1.4214138, %v2200_v47  ;;  %v2198_v16 = vadd.f32 -1.4531521, %v2194_v27  ;;  %v4945_v9 = vpop.eup %4944  ;;  %v2156_v27 = vmul.f32 0.5, %v5894_v8 }
 0x499   :  { %v2205_v30 = vadd.f32 1.4214138, %v2201_v23  ;;  %v2199_v42 = vadd.f32 -1.4531521, %v2195_v58  ;;  %v4947_v56 = vpop.eup %4946  ;;  %v2159_v58 = vmul.f32 0.5, %v5908_v3 }
 0x49a   :  { %v2208_v12 = vmul.f32 %v4935_v15, %v2204_v28  ;;  %v2202_v36 = vmul.f32 %v4939_v14, %v2198_v16  ;;  %v4949_v32 = vpop.eup %4948  ;;  %v2158_v28 = vmul.f32 0.5, %v5905_v60  ;;  %v4710_v8 = vld [vmem:[#allocation4 + $0x10] ss:$24 sps:$4 sm:$0xff]   ;;  %v4713_v60 = vld [vmem:[#allocation4 + $0x40] ss:$24 sps:$4 sm:$0xff]  }
 0x49b   :  { %v2209_v35 = vmul.f32 %v4937_v19, %v2205_v30  ;;  %v2203_v62 = vmul.f32 %v4941_v26, %v2199_v42  ;;  %v4716_v3 = vld [vmem:[#allocation4 + $0x70] ss:$24 sps:$4 sm:$0xff]  }
 0x49c   :  { %v2212_v29 = vadd.f32 -0.28449672, %v2208_v12  ;;  %v2206_v55 = vadd.f32 1.4214138, %v2202_v36 }
 0x49d   :  { %v2213_v44 = vadd.f32 -0.28449672, %v2209_v35  ;;  %v2207_v18 = vadd.f32 1.4214138, %v2203_v62  ;;  %v4722_v62 = vld [vmem:[#allocation4 + $0xd0] ss:$24 sps:$4 sm:$0xff]  }
 0x49e   :  { %v2216_v45 = vmul.f32 %v4935_v15, %v2212_v29  ;;  %v2210_v46 = vmul.f32 %v4939_v14, %v2206_v55  ;;  %v4721_v55 = vld [vmem:[#allocation4 + $0xa4] ss:$24 sps:$4 sm:$0xff]  }
 0x49f   :  { %v2217_v25 = vmul.f32 %v4937_v19, %v2213_v44  ;;  %v2211_v57 = vmul.f32 %v4941_v26, %v2207_v18  ;;  %v4715_v44 = vld [vmem:[#allocation4 + $0x44] ss:$24 sps:$4 sm:$0xff]   ;;  %v4728_v18 = vld [vmem:[#allocation4 + $0x130] ss:$24 sps:$4 sm:$0xff]  }
 0x4a0   :  { %v2220_v52 = vadd.f32 0.2548296, %v2216_v45  ;;  %v2214_v50 = vadd.f32 -0.28449672, %v2210_v46  ;;  %v4724_v45 = vld [vmem:[#allocation4 + $0xd4] ss:$24 sps:$4 sm:$0xff]  }
 0x4a1   :  { %v2221_v54 = vadd.f32 0.2548296, %v2217_v25  ;;  %v2215_v7 = vadd.f32 -0.28449672, %v2211_v57  ;;  %v4727_v25 = vld [vmem:[#allocation4 + $0x104] ss:$24 sps:$4 sm:$0xff]  }
 0x4a2   :  { %v2224_v38 = vmul.f32 %v4935_v15, %v2220_v52  ;;  %v2218_v2 = vmul.f32 %v4939_v14, %v2214_v50  ;;  %v4725_v46 = vld [vmem:[#allocation4 + $0x100] ss:$24 sps:$4 sm:$0xff]   ;;  %v4730_v52 = vld [vmem:[#allocation4 + $0x134] ss:$24 sps:$4 sm:$0xff]   ;;  %v4734_v57 = vld [vmem:[#allocation4 + $0x190] ss:$24 sps:$4 sm:$0xff]  }
 0x4a3   :  { %v2225_v24 = vmul.f32 %v4937_v19, %v2221_v54  ;;  %v2219_v17 = vmul.f32 %v4941_v26, %v2215_v7  ;;  %v4733_v54 = vld [vmem:[#allocation4 + $0x164] ss:$24 sps:$4 sm:$0xff]   ;;  %v4731_v50 = vld [vmem:[#allocation4 + $0x160] ss:$24 sps:$4 sm:$0xff]  }
 0x4a4   :  { %v2244_v10 = vmul.f32 %v4943_v63, %v2224_v38  ;;  %v2222_v37 = vadd.f32 0.2548296, %v2218_v2  ;;  %v4736_v38 = vld [vmem:[#allocation4 + $0x194] ss:$24 sps:$4 sm:$0xff]   ;;  %v4739_v63 = vld [vmem:[#allocation4 + $0x1c4] ss:$24 sps:$4 sm:$0xff]  }
 0x4a5   :  { %v2245_v40 = vmul.f32 %v4945_v9, %v2225_v24  ;;  %v2223_v20 = vadd.f32 0.2548296, %v2219_v17  ;;  %v4737_v24 = vld [vmem:[#allocation4 + $0x1c0] ss:$24 sps:$4 sm:$0xff]   ;;  %v4742_v2 = vld [vmem:[#allocation4 + $0x1f4] ss:$24 sps:$4 sm:$0xff]  }
 0x4a6   :  { %v2248_v51 = vsub.f32 1.0, %v2244_v10  ;;  %v2226_v4 = vmul.f32 %v4939_v14, %v2222_v37  ;;  %v4740_v9 = vld [vmem:[#allocation4 + $0x1f0] ss:$24 sps:$4 sm:$0xff]   ;;  %v4745_v10 = vld [vmem:[#allocation4 + $0x224] ss:$24 sps:$4 sm:$0xff]  }
 0x4a7   :  { %v2249_v15 = vsub.f32 1.0, %v2245_v40  ;;  %v2227_v11 = vmul.f32 %v4941_v26, %v2223_v20  ;;  %v2171_v26 = vsel %vm2167_vm5, 1.0, %v5035_v61  ;;  %v4743_v7 = vld [vmem:[#allocation4 + $0x220] ss:$24 sps:$4 sm:$0xff]   ;;  %v4748_v40 = vld [vmem:[#allocation4 + $0x254] ss:$24 sps:$4 sm:$0xff]  }
 0x4a8   :  { %v2252_v21 = vmul.f32 %v2248_v51, %v2168_v41  ;;  %v2246_v19 = vmul.f32 %v4947_v56, %v2226_v4  ;;  %v4746_v37 = vld [vmem:[#allocation4 + $0x250] ss:$24 sps:$4 sm:$0xff]   ;;  %v4751_v51 = vld [vmem:[#allocation4 + $0x284] ss:$24 sps:$4 sm:$0xff]   ;;  %v4749_v17 = vld [vmem:[#allocation4 + $0x280] ss:$24 sps:$4 sm:$0xff]  }
 0x4a9   :  { %v2253_v47 = vmul.f32 %v2249_v15, %v2169_v43  ;;  %v2247_v14 = vmul.f32 %v4949_v32, %v2227_v11  ;;  %v4754_v4 = vld [vmem:[#allocation4 + $0x2b4] ss:$24 sps:$4 sm:$0xff]   ;;  %v4752_v56 = vld [vmem:[#allocation4 + $0x2b0] ss:$24 sps:$4 sm:$0xff]   ;;  %v4757_v41 = vld [vmem:[#allocation4 + $0x2e4] ss:$24 sps:$4 sm:$0xff]  }
 0x4aa   :  { %v2250_v22 = vsub.f32 1.0, %v2246_v19  ;;  %v2256_v33 = vadd.f32 1.0, %v2252_v21  ;;  %v4755_v15 = vld [vmem:[#allocation4 + $0x2e0] ss:$24 sps:$4 sm:$0xff]   ;;  %v4763_v21 = vld [vmem:[#allocation6 + $0xc] ss:$24 sps:$4 sm:$0xff]  }
 0x4ab   :  { %v2251_v6 = vsub.f32 1.0, %v2247_v14  ;;  %v2257_v30 = vadd.f32 1.0, %v2253_v47  ;;  %v4761_v20 = vld [vmem:[#allocation6 + $0x8] ss:$24 sps:$4 sm:$0xff]   ;;  %v4767_v19 = vld [vmem:[#allocation6 + $0x38] ss:$24 sps:$4 sm:$0xff]  }
 0x4ac   :  { %v2254_v23 = vmul.f32 %v2250_v22, %v2170_v5  ;;  %v2260_v31 = vmul.f32 %v2256_v33, %v2156_v27  ;;  %v4769_v11 = vld [vmem:[#allocation6 + $0x3c] ss:$24 sps:$4 sm:$0xff]   ;;  %v4773_v32 = vld [vmem:[#allocation6 + $0x68] ss:$24 sps:$4 sm:$0xff]   ;;  %v4775_v43 = vld [vmem:[#allocation6 + $0x6c] ss:$24 sps:$4 sm:$0xff]  }
 0x4ad   :  { %v2255_v16 = vmul.f32 %v2251_v6, %v2171_v26  ;;  %v2261_v36 = vmul.f32 %v2257_v30, %v2157_v34  ;;  %v693_v22 = vadd.s32 8, %v5196_v59  ;;  %v2991_v47 = vand.u32 7, %v5196_v59  ;;  %v4802_v30 = vld [vmem:[#allocation6 + $0x154] ss:$24 sps:$4 sm:$0xff]  }
 0x4ae   :  { %v2258_v49 = vadd.f32 1.0, %v2254_v23 }
 0x4af   :  { %v2259_v13 = vadd.f32 1.0, %v2255_v16  ;;  %v2998_v5 = vand.u32 7, %v693_v22  ;;  %vm5938_vm6 = vcmp.eq.s32.totalorder %v2991_v47, 0  ;;  %v4782_v22 = vld [vmem:[#allocation6 + $0xc0] ss:$24 sps:$4 sm:$0xff]  }
 0x4b0   :  { %v2262_v12 = vmul.f32 %v2258_v49, %v2158_v28  ;;  %v4787_v47 = vld [vmem:[#allocation6 + $0xcc] ss:$24 sps:$4 sm:$0xff]   ;;  %v4800_v16 = vld [vmem:[#allocation6 + $0x150] ss:$24 sps:$4 sm:$0xff]  }
 0x4b1   :  { %v2263_v29 = vmul.f32 %v2259_v13, %v2159_v58  ;;  %vm5942_vm7 = vcmp.eq.s32.totalorder %v2998_v5, 0  ;;  %v4785_v5 = vld [vmem:[#allocation6 + $0xc8] ss:$24 sps:$4 sm:$0xff]  }
 0x4b2   :  { %v5930_v35 = vpack.c.bf16 %v2262_v12, %v2260_v31 }
 0x4b3   :  { %v2265_v42 = vpack.c.bf16 %v2263_v29, %v2261_v36 }
 0x4b5   :  { %2874 = vmatprep.mubr.bf16.mxu1 %v2265_v42  ;;  %2917 = vmatprep.mubr.bf16.mxu0 %v2265_v42 }
 0x4b6   :  { %2875 = vmatmul.mubr.bf16.vlgmr.msra.gmra.mrb[52].mxu1 %v5930_v35  ;;  %2918 = vmatmul.mubr.bf16.vlgmr.msra.gmra.mrb[32].mxu0 %v5930_v35 }
 0x4b7   :  { %2929 = vmatpush1.bf16.msra.mxu1 %v4710_v8  ;;  %2960 = vmatprep.mubr.bf16.mxu1 %v2265_v42 }
 0x4b8   :  { %2930 = vmatprep.subr.bf16.mxu1 %v4715_v44  ;;  %3110 = vmatprep.mubr.f32.mxu0 %v5034_v53 }
 0x4bb   :  { %2931 = vmatpush1.bf16.msra.mxu1 %v4713_v60 }
 0x4bc   :  { %2932 = vmatprep.subr.bf16.mxu1 %v4718_v39 }
 0x4bf   :  { %2933 = vmatpush1.bf16.msra.mxu1 %v4716_v3 }
 0x4c0   :  { %2934 = vmatprep.subr.bf16.mxu1 %v4721_v55 }
 0x4c3   :  { %2935 = vmatpush1.bf16.msra.mxu1 %v4719_v1 }
 0x4c4   :  { %2936 = vmatprep.subr.bf16.mxu1 %v4724_v45 }
 0x4c7   :  { %2937 = vmatpush1.bf16.msra.mxu1 %v4722_v62 }
 0x4c8   :  { %2938 = vmatprep.subr.bf16.mxu1 %v4727_v25 }
 0x4cb   :  { %2939 = vmatpush1.bf16.msra.mxu1 %v4725_v46 }
 0x4cc   :  { %2940 = vmatprep.subr.bf16.mxu1 %v4730_v52 }
 0x4cf   :  { %2941 = vmatpush1.bf16.msra.mxu1 %v4728_v18 }
 0x4d0   :  { %2942 = vmatprep.subr.bf16.mxu1 %v4733_v54 }
 0x4d3   :  { %2943 = vmatpush1.bf16.msra.mxu1 %v4731_v50 }
 0x4d4   :  { %2944 = vmatprep.subr.bf16.mxu1 %v4736_v38 }
 0x4d7   :  { %2945 = vmatpush1.bf16.msra.mxu1 %v4734_v57 }
 0x4d8   :  { %2946 = vmatprep.subr.bf16.mxu1 %v4739_v63 }
 0x4db   :  { %2947 = vmatpush1.bf16.msra.mxu1 %v4737_v24 }
 0x4dc   :  { %2948 = vmatprep.subr.bf16.mxu1 %v4742_v2 }
 0x4df   :  { %2949 = vmatpush1.bf16.msra.mxu1 %v4740_v9 }
 0x4e0   :  { %2950 = vmatprep.subr.bf16.mxu1 %v4745_v10 }
 0x4e3   :  { %2951 = vmatpush1.bf16.msra.mxu1 %v4743_v7 }
 0x4e4   :  { %2952 = vmatprep.subr.bf16.mxu1 %v4748_v40 }
 0x4e7   :  { %2953 = vmatpush1.bf16.msra.mxu1 %v4746_v37 }
 0x4e8   :  { %2954 = vmatprep.subr.bf16.mxu1 %v4751_v51  ;;  %v4760_v51 = vld [vmem:[#allocation6 + $0x4] ss:$24 sps:$4 sm:$0xff]  }
 0x4eb   :  { %2955 = vmatpush1.bf16.msra.mxu1 %v4749_v17  ;;  %v3029_v17 = vld [vmem:[%s6011_s9] sm:$0xff] }
 0x4ec   :  { %2956 = vmatprep.subr.bf16.mxu1 %v4754_v4  ;;  %v4758_v4 = vld [vmem:[#allocation6] ss:$24 sps:$4 sm:$0xff]  }
 0x4ef   :  { %2957 = vmatpush1.bf16.msra.mxu1 %v4752_v56  ;;  %v4766_v56 = vld [vmem:[#allocation6 + $0x34] ss:$24 sps:$4 sm:$0xff]  }
 0x4f0   :  { %2958 = vmatprep.subr.bf16.mxu1 %v4757_v41  ;;  %v4764_v41 = vld [vmem:[#allocation6 + $0x30] ss:$24 sps:$4 sm:$0xff]  }
 0x4f3   :  { %2959 = vmatpush1.bf16.msra.mxu1 %v4755_v15  ;;  %v4772_v15 = vld [vmem:[#allocation6 + $0x64] ss:$24 sps:$4 sm:$0xff]  }
 0x4f4   :  { %3790 = vmatprep.subr.bf16.mxu1 %v4763_v21  ;;  %v4778_v21 = vld [vmem:[#allocation6 + $0x94] ss:$24 sps:$4 sm:$0xff]  }
 0x4f6   :  { %2961 = vmatmul.mubr.bf16.vlgmr.msra.gmra.mrb[56].mxu1 %v5930_v35 }
 0x4f7   :  { %3791 = vmatpush1.bf16.msra.mxu1 %v4761_v20  ;;  %v4770_v20 = vld [vmem:[#allocation6 + $0x60] ss:$24 sps:$4 sm:$0xff]  }
 0x4f8   :  { %3792 = vmatprep.subr.bf16.mxu1 %v4769_v11  ;;  %v4781_v11 = vld [vmem:[#allocation6 + $0x9c] ss:$24 sps:$4 sm:$0xff]  }
 0x4fb   :  { %3793 = vmatpush1.bf16.msra.mxu1 %v4767_v19  ;;  %v4776_v19 = vld [vmem:[#allocation6 + $0x90] ss:$24 sps:$4 sm:$0xff]  }
 0x4fc   :  { %3794 = vmatprep.subr.bf16.mxu1 %v4775_v43  ;;  %v4784_v43 = vld [vmem:[#allocation6 + $0xc4] ss:$24 sps:$4 sm:$0xff]  }
 0x4ff   :  { %3795 = vmatpush1.bf16.msra.mxu1 %v4773_v32  ;;  %v4779_v32 = vld [vmem:[#allocation6 + $0x98] ss:$24 sps:$4 sm:$0xff]  }
 0x500   :  { %3796 = vmatprep.subr.bf16.mxu1 %v4781_v11 }
 0x503   :  { %3797 = vmatpush1.bf16.msra.mxu1 %v4779_v32 }
 0x504   :  { %3798 = vmatprep.subr.bf16.mxu1 %v4787_v47 }
 0x507   :  { %3799 = vmatpush1.bf16.msra.mxu1 %v4785_v5 }
 0x589   :  { %v2876_v14 = vpop.f32.mrb[52].mxu1  ;;  %v2919_v33 = vpop.f32.mrb[32].mxu0 }
 0x58a   :  { %v2878_v23 = vpop.f32.mrb[53].mxu1  ;;  %v2921_v6 = vpop.f32.mrb[33].mxu0  ;;  %v2971_v49 = vrot.slane %v2876_v14, 7  ;;  %v4790_v14 = vld [vmem:[#allocation6 + $0xf4] ss:$24 sps:$4 sm:$0xff]  }
 0x58b   :  { %v2880_v27 = vpop.f32.mrb[54].mxu1  ;;  %v2923_v28 = vpop.f32.mrb[34].mxu0  ;;  %v2972_v34 = vrot.slane %v2878_v23, 7  ;;  %v4793_v23 = vld [vmem:[#allocation6 + $0xfc] ss:$24 sps:$4 sm:$0xff]  }
 0x58c   :  { %v2973_v26 = vrot.slane %v2880_v27, 7  ;;  %v2882_v31 = vpop.f32.mrb[55].mxu1  ;;  %v2925_v12 = vpop.f32.mrb[35].mxu0  ;;  %3800 = vmatprep.subr.bf16.mxu1 %v4793_v23  ;;  %v4796_v27 = vld [vmem:[#allocation6 + $0x124] ss:$24 sps:$4 sm:$0xff]  }
 0x58d   :  { %v2974_v58 = vrot.slane %v2882_v31, 7  ;;  %v4805_v31 = vld [vmem:[#allocation6 + $0x15c] ss:$24 sps:$4 sm:$0xff]  }
 0x58e   :  { %v2977_v13 = vsel %vm643_vm0, %v2973_v26, %v2971_v49  ;;  %v2975_v35 = vsel %vm643_vm0, %v2971_v49, %v2973_v26  ;;  %v4799_v49 = vld [vmem:[#allocation6 + $0x12c] ss:$24 sps:$4 sm:$0xff]   ;;  %v4797_v26 = vld [vmem:[#allocation6 + $0x128] ss:$24 sps:$4 sm:$0xff]  }
 0x58f   :  { %v3017_v36 = vsel %vm5938_vm6, 0.0, %v2977_v13  ;;  %v3019_v29 = vsel %vm5942_vm7, 0.0, %v2975_v35  ;;  %v2978_v42 = vsel %vm643_vm0, %v2974_v58, %v2972_v34  ;;  %v2976_v8 = vsel %vm643_vm0, %v2972_v34, %v2974_v58  ;;  %v4808_v34 = vld [vmem:[#allocation6 + $0x184] ss:$24 sps:$4 sm:$0xff]   ;;  %v4806_v58 = vld [vmem:[#allocation6 + $0x180] ss:$24 sps:$4 sm:$0xff]  }
 0x590   :  { %v3021_v44 = vadd.f32 %v3017_v36, %v2919_v33  ;;  %v3023_v60 = vadd.f32 %v3019_v29, %v2923_v28  ;;  %v3018_v39 = vsel %vm5938_vm6, 0.0, %v2978_v42  ;;  %v3020_v3 = vsel %vm5942_vm7, 0.0, %v2976_v8  ;;  %v4788_v33 = vld [vmem:[#allocation6 + $0xf0] ss:$24 sps:$4 sm:$0xff]   ;;  %v4794_v28 = vld [vmem:[#allocation6 + $0x120] ss:$24 sps:$4 sm:$0xff]  }
 0x591   :  { %v3022_v55 = vadd.f32 %v3018_v39, %v2921_v6  ;;  %v3024_v1 = vadd.f32 %v3020_v3, %v2925_v12  ;;  %vm3042_vm0 = vcmask 130048   ;;  %v4791_v6 = vld [vmem:[#allocation6 + $0xf8] ss:$24 sps:$4 sm:$0xff]   ;;  %v4811_v13 = vld [vmem:[#allocation6 + $0x18c] ss:$24 sps:$4 sm:$0xff]  }
 0x592   :  { %3801 = vmatpush1.bf16.msra.mxu1 %v4791_v6  ;;  %v4803_v12 = vld [vmem:[#allocation6 + $0x158] ss:$24 sps:$4 sm:$0xff]   ;;  %v4809_v35 = vld [vmem:[#allocation6 + $0x188] ss:$24 sps:$4 sm:$0xff]   ;;  %v4814_v36 = vld [vmem:[#allocation6 + $0x1b4] ss:$24 sps:$4 sm:$0xff]  }
 0x593   :  { %3802 = vmatprep.subr.bf16.mxu1 %v4799_v49  ;;  %v4812_v29 = vld [vmem:[#allocation6 + $0x1b0] ss:$24 sps:$4 sm:$0xff]   ;;  %v4817_v42 = vld [vmem:[#allocation6 + $0x1bc] ss:$24 sps:$4 sm:$0xff]   ;;  %v4823_v39 = vld [vmem:[#allocation6 + $0x1ec] ss:$24 sps:$4 sm:$0xff]  }
 0x594   :  { %v4815_v8 = vld [vmem:[#allocation6 + $0x1b8] ss:$24 sps:$4 sm:$0xff]   ;;  %v4821_v3 = vld [vmem:[#allocation6 + $0x1e8] ss:$24 sps:$4 sm:$0xff]  }
 0x596   :  { %3803 = vmatpush1.bf16.msra.mxu1 %v4797_v26 }
 0x597   :  { %3804 = vmatprep.subr.bf16.mxu1 %v4805_v31 }
 0x59a   :  { %3805 = vmatpush1.bf16.msra.mxu1 %v4803_v12 }
 0x59b   :  { %3806 = vmatprep.subr.bf16.mxu1 %v4811_v13 }
 0x59e   :  { %3807 = vmatpush1.bf16.msra.mxu1 %v4809_v35 }
 0x59f   :  { %3808 = vmatprep.subr.bf16.mxu1 %v4817_v42 }
 0x5a2   :  { %3809 = vmatpush1.bf16.msra.mxu1 %v4815_v8 }
 0x5a3   :  { %3810 = vmatprep.subr.bf16.mxu1 %v4823_v39 }
 0x5a6   :  { %3811 = vmatpush1.bf16.msra.mxu1 %v4821_v3 }
 0x5c9   :  { %v2962_v45 = vpop.f32.mrb[56].mxu1 }
 0x5ca   :  { %v2964_v62 = vpop.f32.mrb[57].mxu1  ;;  %v2979_v46 = vrot.slane %v2962_v45, 1  ;;  %v4829_v45 = vld [vmem:[#allocation6 + $0x21c] ss:$24 sps:$4 sm:$0xff]  }
 0x5cb   :  { %v2966_v25 = vpop.f32.mrb[58].mxu1  ;;  %v2980_v54 = vrot.slane %v2964_v62, 1  ;;  %v4827_v62 = vld [vmem:[#allocation6 + $0x218] ss:$24 sps:$4 sm:$0xff]   ;;  %3812 = vmatprep.subr.bf16.mxu1 %v4829_v45 }
 0x5cc   :  { %v2981_v52 = vrot.slane %v2966_v25, 1  ;;  %v2968_v18 = vpop.f32.mrb[59].mxu1  ;;  %3813 = vmatpush1.bf16.msra.mxu1 %v4827_v62  ;;  %v4832_v25 = vld [vmem:[#allocation6 + $0x244] ss:$24 sps:$4 sm:$0xff]  }
 0x5cd   :  { %v2982_v50 = vrot.slane %v2968_v18, 1  ;;  %v4833_v18 = vld [vmem:[#allocation6 + $0x248] ss:$24 sps:$4 sm:$0xff]  }
 0x5ce   :  { %v2983_v38 = vsel %vm676_vm1, %v2979_v46, %v2981_v52  ;;  %v2985_v57 = vsel %vm676_vm1, %v2981_v52, %v2979_v46  ;;  %v4830_v46 = vld [vmem:[#allocation6 + $0x240] ss:$24 sps:$4 sm:$0xff]   ;;  %v4835_v52 = vld [vmem:[#allocation6 + $0x24c] ss:$24 sps:$4 sm:$0xff]  }
 0x5cf   :  { %v3025_v63 = vadd.f32 %v3021_v44, %v2983_v38  ;;  %v3027_v24 = vadd.f32 %v3023_v60, %v2985_v57  ;;  %v2984_v2 = vsel %vm676_vm1, %v2980_v54, %v2982_v50  ;;  %v2986_v9 = vsel %vm676_vm1, %v2982_v50, %v2980_v54  ;;  %v4820_v44 = vld [vmem:[#allocation6 + $0x1e4] ss:$24 sps:$4 sm:$0xff]   ;;  %v4818_v60 = vld [vmem:[#allocation6 + $0x1e0] ss:$24 sps:$4 sm:$0xff]   ;;  %3814 = vmatprep.subr.bf16.mxu1 %v4835_v52  ;;  %v4838_v54 = vld [vmem:[#allocation6 + $0x274] ss:$24 sps:$4 sm:$0xff]  }
 0x5d0   :  { %v3026_v10 = vadd.f32 %v3022_v55, %v2984_v2  ;;  %v3028_v7 = vadd.f32 %v3024_v1, %v2986_v9  ;;  %v4826_v55 = vld [vmem:[#allocation6 + $0x214] ss:$24 sps:$4 sm:$0xff]   ;;  %v4824_v1 = vld [vmem:[#allocation6 + $0x210] ss:$24 sps:$4 sm:$0xff]   ;;  %3815 = vmatpush1.bf16.msra.mxu1 %v4833_v18 }
 0x5d1   :  { %v4383_v40 = vpack.c.bf16 %v3027_v24, %v3025_v63  ;;  %v4836_v50 = vld [vmem:[#allocation6 + $0x270] ss:$24 sps:$4 sm:$0xff]   ;;  %v4841_v38 = vld [vmem:[#allocation6 + $0x27c] ss:$24 sps:$4 sm:$0xff]   ;;  %v4842_v24 = vld [vmem:[#allocation6 + $0x2a0] ss:$24 sps:$4 sm:$0xff]  }
 0x5d2   :  { %v4381_v37 = vpack.c.bf16 %v3028_v7, %v3026_v10  ;;  %v4839_v57 = vld [vmem:[#allocation6 + $0x278] ss:$24 sps:$4 sm:$0xff]   ;;  %3816 = vmatprep.subr.bf16.mxu1 %v4841_v38  ;;  %v4844_v63 = vld [vmem:[#allocation6 + $0x2a4] ss:$24 sps:$4 sm:$0xff]   ;;  %v4845_v9 = vld [vmem:[#allocation6 + $0x2a8] ss:$24 sps:$4 sm:$0xff]  }
 0x5d3   :  { %v4847_v2 = vld [vmem:[#allocation6 + $0x2ac] ss:$24 sps:$4 sm:$0xff]   ;;  %v4848_v10 = vld [vmem:[#allocation6 + $0x2d0] ss:$24 sps:$4 sm:$0xff]  }
 0x5d4   :  { %4382 = vmatprep.subr.bf16.mxu0 %v4381_v37  ;;  %3817 = vmatpush1.bf16.msra.mxu1 %v4839_v57  ;;  %v4850_v7 = vld [vmem:[#allocation6 + $0x2d4] ss:$24 sps:$4 sm:$0xff]  }
 0x5d5   :  { %4384 = vmatpush1.bf16.msra.mxu0 %v4383_v40  ;;  %3818 = vmatprep.subr.bf16.mxu1 %v4847_v2  ;;  %v4851_v40 = vld [vmem:[#allocation6 + $0x2d8] ss:$24 sps:$4 sm:$0xff]   ;;  %v4853_v37 = vld [vmem:[#allocation6 + $0x2dc] ss:$24 sps:$4 sm:$0xff]  }
 0x5d6   :  { %3749 = vmatprep.subr.bf16.mxu0 %v4760_v51  ;;  %v4856_v51 = vld [vmem:[#allocation6 + $0x14] ss:$24 sps:$4 sm:$0xff]  }
 0x5d8   :  { %4257 = vmatmul.mubr.msk.f32.vlgmr.msra.gmra.mrb[36].mxu0 %vm3042_vm0, %v3029_v17  ;;  %3819 = vmatpush1.bf16.msra.mxu1 %v4845_v9  ;;  %v3030_v17 = vld [vmem:[%s6010_s8] sm:$0x3] }
 0x5d9   :  { %3750 = vmatpush1.bf16.msra.mxu0 %v4758_v4  ;;  %3820 = vmatprep.subr.bf16.mxu1 %v4853_v37  ;;  %v3035_v4 = vrot.slane %v3030_v17, %v5589_v0 }
 0x5da   :  { %3751 = vmatprep.subr.bf16.mxu0 %v4766_v56  ;;  %v3039_v56 = vrot.slane %v3030_v17, %v5595_v48 }
 0x5dc   :  { %3821 = vmatpush1.bf16.msra.mxu1 %v4851_v40 }
 0x5dd   :  { %3752 = vmatpush1.bf16.msra.mxu0 %v4764_v41 }
 0x5de   :  { %3753 = vmatprep.subr.bf16.mxu0 %v4772_v15 }
 0x5e1   :  { %3754 = vmatpush1.bf16.msra.mxu0 %v4770_v20 }
 0x5e2   :  { %3755 = vmatprep.subr.bf16.mxu0 %v4778_v21 }
 0x5e5   :  { %3756 = vmatpush1.bf16.msra.mxu0 %v4776_v19 }
 0x5e6   :  { %3757 = vmatprep.subr.bf16.mxu0 %v4784_v43 }
 0x5e9   :  { %3758 = vmatpush1.bf16.msra.mxu0 %v4782_v22 }
 0x5ea   :  { %3759 = vmatprep.subr.bf16.mxu0 %v4790_v14 }
 0x5ed   :  { %3760 = vmatpush1.bf16.msra.mxu0 %v4788_v33 }
 0x5ee   :  { %3761 = vmatprep.subr.bf16.mxu0 %v4796_v27 }
 0x5f1   :  { %3762 = vmatpush1.bf16.msra.mxu0 %v4794_v28 }
 0x5f2   :  { %3763 = vmatprep.subr.bf16.mxu0 %v4802_v30 }
 0x5f5   :  { %3764 = vmatpush1.bf16.msra.mxu0 %v4800_v16 }
 0x5f6   :  { %3765 = vmatprep.subr.bf16.mxu0 %v4808_v34 }
 0x5f9   :  { %3766 = vmatpush1.bf16.msra.mxu0 %v4806_v58 }
 0x5fa   :  { %3767 = vmatprep.subr.bf16.mxu0 %v4814_v36 }
 0x5fd   :  { %3768 = vmatpush1.bf16.msra.mxu0 %v4812_v29 }
 0x5fe   :  { %3769 = vmatprep.subr.bf16.mxu0 %v4820_v44 }
 0x601   :  { %3770 = vmatpush1.bf16.msra.mxu0 %v4818_v60 }
 0x602   :  { %3771 = vmatprep.subr.bf16.mxu0 %v4826_v55 }
 0x605   :  { %3772 = vmatpush1.bf16.msra.mxu0 %v4824_v1 }
 0x606   :  { %3773 = vmatprep.subr.bf16.mxu0 %v4832_v25 }
 0x609   :  { %3774 = vmatpush1.bf16.msra.mxu0 %v4830_v46 }
 0x60a   :  { %3775 = vmatprep.subr.bf16.mxu0 %v4838_v54 }
 0x60d   :  { %3776 = vmatpush1.bf16.msra.mxu0 %v4836_v50 }
 0x60e   :  { %3777 = vmatprep.subr.bf16.mxu0 %v4844_v63 }
 0x611   :  { %3778 = vmatpush1.bf16.msra.mxu0 %v4842_v24 }
 0x612   :  { %3779 = vmatprep.subr.bf16.mxu0 %v4850_v7 }
 0x615   :  { %3780 = vmatpush1.bf16.msra.mxu0 %v4848_v10 }
 0x616   :  { %3831 = vmatprep.subr.bf16.mxu0 %v4856_v51  ;;  %v4854_v51 = vld [vmem:[#allocation6 + $0x10] ss:$24 sps:$4 sm:$0xff]  }
 0x6ab   :  { %v3112_v41 = vpop.f32.mrb[36].mxu0 }
 0x6ac   :  { %v3113_v15 = vadd.f32 %v3112_v41, %v3035_v4  ;;  %v3114_v20 = vpop.f32.mrb[37].mxu0  ;;  %v4859_v4 = vld [vmem:[#allocation6 + $0x44] ss:$24 sps:$4 sm:$0xff]   ;;  %v4860_v41 = vld [vmem:[#allocation6 + $0x70] ss:$24 sps:$4 sm:$0xff]  }
 0x6ad   :  { %v3115_v21 = vadd.f32 %v3114_v20, %v3039_v56  ;;  %v4862_v56 = vld [vmem:[#allocation6 + $0x74] ss:$24 sps:$4 sm:$0xff]   ;;  %v4863_v20 = vld [vmem:[#allocation6 + $0xa0] ss:$24 sps:$4 sm:$0xff]  }
 0x6ae   :  { %v3119_v19 = vmul.f32 0.70710677, %v3113_v15  ;;  %v3117_v24 = vmul.f32 0.5, %v3113_v15  ;;  %v4865_v15 = vld [vmem:[#allocation6 + $0xa4] ss:$24 sps:$4 sm:$0xff]  }
 0x6af   :  { %v3120_v11 = vmul.f32 0.70710677, %v3115_v21  ;;  %v3118_v9 = vmul.f32 0.5, %v3115_v21  ;;  %v4868_v21 = vld [vmem:[#allocation6 + $0xd4] ss:$24 sps:$4 sm:$0xff]  }
 0x6b0   :  { %v3125_v32 = vand.u32 2147483647, %v3119_v19  ;;  %vm3121_vm1 = vcmp.ge.f32.partialorder %v3119_v19, 0.0  ;;  %v4866_v19 = vld [vmem:[#allocation6 + $0xd0] ss:$24 sps:$4 sm:$0xff]  }
 0x6b1   :  { %v3126_v43 = vand.u32 2147483647, %v3120_v11  ;;  %vm3122_vm8 = vcmp.ge.f32.partialorder %v3120_v11, 0.0  ;;  %v3123_v54 = vsel %vm3121_vm1, 1.0, %v5035_v61  ;;  %v4871_v11 = vld [vmem:[#allocation6 + $0x104] ss:$24 sps:$4 sm:$0xff]  }
 0x6b2   :  { %v3127_v22 = vmul.f32 0.3275911, %v3125_v32  ;;  %v3153_v33 = vsub.f32 0.0, %v3125_v32  ;;  %v3124_v57 = vsel %vm3122_vm8, 1.0, %v5035_v61  ;;  %v4857_v61 = vld [vmem:[#allocation6 + $0x40] ss:$24 sps:$4 sm:$0xff]  }
 0x6b3   :  { %v3128_v47 = vmul.f32 0.3275911, %v3126_v43  ;;  %v3154_v23 = vsub.f32 0.0, %v3126_v43 }
 0x6b4   :  { %v3129_v5 = vadd.f32 1.0, %v3127_v22  ;;  %v3155_v27 = vmul.f32 %v3153_v33, %v3125_v32  ;;  %v4869_v32 = vld [vmem:[#allocation6 + $0x100] ss:$24 sps:$4 sm:$0xff]   ;;  %v4872_v22 = vld [vmem:[#allocation6 + $0x130] ss:$24 sps:$4 sm:$0xff]  }
 0x6b5   :  { %v3130_v14 = vadd.f32 1.0, %v3128_v47  ;;  %v3156_v26 = vmul.f32 %v3154_v23, %v3126_v43  ;;  %v4874_v43 = vld [vmem:[#allocation6 + $0x134] ss:$24 sps:$4 sm:$0xff]   ;;  %v4877_v47 = vld [vmem:[#allocation6 + $0x164] ss:$24 sps:$4 sm:$0xff]  }
 0x6b6   :  { %4950 = vrcp.f32 %v3129_v5  ;;  %v3157_v31 = vmul.f32 1.442695, %v3155_v27  ;;  %v4875_v5 = vld [vmem:[#allocation6 + $0x160] ss:$24 sps:$4 sm:$0xff]   ;;  %v4878_v33 = vld [vmem:[#allocation6 + $0x190] ss:$24 sps:$4 sm:$0xff]  }
 0x6b7   :  { %4952 = vrcp.f32 %v3130_v14  ;;  %v3159_v58 = vmul.f32 1.442695, %v3156_v26  ;;  %v4880_v14 = vld [vmem:[#allocation6 + $0x194] ss:$24 sps:$4 sm:$0xff]   ;;  %v4883_v23 = vld [vmem:[#allocation6 + $0x1c4] ss:$24 sps:$4 sm:$0xff]  }
 0x6b8   :  { %4954 = vpow2.f32 %v3157_v31  ;;  %v4886_v27 = vld [vmem:[#allocation6 + $0x1f4] ss:$24 sps:$4 sm:$0xff]   ;;  %v4887_v26 = vld [vmem:[#allocation6 + $0x220] ss:$24 sps:$4 sm:$0xff]   ;;  %v4895_v31 = vld [vmem:[#allocation6 + $0x284] ss:$24 sps:$4 sm:$0xff]  }
 0x6b9   :  { %4956 = vpow2.f32 %v3159_v58  ;;  %v4896_v58 = vld [vmem:[#allocation6 + $0x2b0] ss:$24 sps:$4 sm:$0xff]  }
 0x6c0   :  { %v4951_v6 = vpop.eup %4950 }
 0x6c1   :  { %v4953_v28 = vpop.eup %4952  ;;  %v3135_v49 = vmul.f32 1.0614054, %v4951_v6 }
 0x6c2   :  { %v3136_v30 = vmul.f32 1.0614054, %v4953_v28  ;;  %v4955_v45 = vpop.eup %4954 }
 0x6c3   :  { %v3137_v16 = vadd.f32 -1.4531521, %v3135_v49  ;;  %v4957_v25 = vpop.eup %4956  ;;  %v4889_v49 = vld [vmem:[#allocation6 + $0x224] ss:$24 sps:$4 sm:$0xff]  }
 0x6c4   :  { %v3138_v12 = vadd.f32 -1.4531521, %v3136_v30  ;;  %v4892_v30 = vld [vmem:[#allocation6 + $0x254] ss:$24 sps:$4 sm:$0xff]  }
 0x6c5   :  { %v3139_v34 = vmul.f32 %v4951_v6, %v3137_v16  ;;  %v4890_v16 = vld [vmem:[#allocation6 + $0x250] ss:$24 sps:$4 sm:$0xff]  }
 0x6c6   :  { %v3140_v13 = vmul.f32 %v4953_v28, %v3138_v12  ;;  %v4893_v12 = vld [vmem:[#allocation6 + $0x280] ss:$24 sps:$4 sm:$0xff]  }
 0x6c7   :  { %v3141_v35 = vadd.f32 1.4214138, %v3139_v34  ;;  %v4898_v34 = vld [vmem:[#allocation6 + $0x2b4] ss:$24 sps:$4 sm:$0xff]  }
 0x6c8   :  { %v3142_v36 = vadd.f32 1.4214138, %v3140_v13  ;;  %v4901_v13 = vld [vmem:[#allocation6 + $0x2e4] ss:$24 sps:$4 sm:$0xff]  }
 0x6c9   :  { %v3143_v29 = vmul.f32 %v4951_v6, %v3141_v35  ;;  %v4899_v35 = vld [vmem:[#allocation6 + $0x2e0] ss:$24 sps:$4 sm:$0xff]  }
 0x6ca   :  { %v3144_v42 = vmul.f32 %v4953_v28, %v3142_v36  ;;  %v3880_v36 = vand.u32 3, %v5196_v59 }
 0x6cb   :  { %v3145_v8 = vadd.f32 -0.28449672, %v3143_v29 }
 0x6cc   :  { %v3146_v44 = vadd.f32 -0.28449672, %v3144_v42  ;;  %vm3888_vm9 = vcmp.eq.s32.totalorder %v3880_v36, 0 }
 0x6cd   :  { %v3147_v60 = vmul.f32 %v4951_v6, %v3145_v8 }
 0x6ce   :  { %v3148_v39 = vmul.f32 %v4953_v28, %v3146_v44 }
 0x6cf   :  { %v3149_v3 = vadd.f32 0.2548296, %v3147_v60 }
 0x6d0   :  { %v3150_v55 = vadd.f32 0.2548296, %v3148_v39 }
 0x6d1   :  { %v3151_v1 = vmul.f32 %v4951_v6, %v3149_v3  ;;  %v4881_v6 = vld [vmem:[#allocation6 + $0x1c0] ss:$24 sps:$4 sm:$0xff]  }
 0x6d2   :  { %v3152_v62 = vmul.f32 %v4953_v28, %v3150_v55  ;;  %v4884_v28 = vld [vmem:[#allocation6 + $0x1f0] ss:$24 sps:$4 sm:$0xff]  }
 0x6d3   :  { %v3161_v46 = vmul.f32 %v4955_v45, %v3151_v1 }
 0x6d4   :  { %v3162_v52 = vmul.f32 %v4957_v25, %v3152_v62 }
 0x6d5   :  { %v3163_v18 = vsub.f32 1.0, %v3161_v46 }
 0x6d6   :  { %v3164_v50 = vsub.f32 1.0, %v3162_v52 }
 0x6d7   :  { %v3165_v38 = vmul.f32 %v3163_v18, %v3123_v54 }
 0x6d8   :  { %v3166_v63 = vmul.f32 %v3164_v50, %v3124_v57 }
 0x6d9   :  { %v3167_v2 = vadd.f32 1.0, %v3165_v38 }
 0x6da   :  { %v3168_v10 = vadd.f32 1.0, %v3166_v63 }
 0x6db   :  { %v3169_v7 = vmul.f32 %v3167_v2, %v3117_v24  ;;  %v3897_v2 = vld [vmem:[%s6014_s12] sm:$0xf] }
 0x6dc   :  { %v3170_v40 = vmul.f32 %v3168_v10, %v3118_v9  ;;  %v3898_v9 = vld [vmem:[%s6013_s11] sm:$0x3]  ;;  %v5036_v10 = vmov 1983009808  }
 0x6dd   :  { %v5980_v17 = vpack.c.bf16 %v3169_v7, %v3169_v7  ;;  %v3989_v7 = vunpack.c.l.s4 %v5036_v10 }
 0x6de   :  { %v3172_v37 = vpack.c.bf16 %v3170_v40, %v3170_v40  ;;  %v3903_v40 = vrot.slane %v3898_v9, %v5589_v0 }
 0x6e0   :  { %3781 = vmatprep.mubr.bf16.mxu0 %v3172_v37  ;;  %3822 = vmatprep.mubr.bf16.mxu1 %v3172_v37 }
 0x6e1   :  { %3782 = vmatmul.mubr.bf16.vlgmr.msra.gmra.mrb[40].mxu0 %v5980_v17  ;;  %3823 = vmatmul.mubr.bf16.vlgmr.msra.gmra.mrb[60].mxu1 %v5980_v17 }
 0x6e2   :  { %3832 = vmatpush1.bf16.msra.mxu0 %v4854_v51  ;;  %3863 = vmatprep.mubr.bf16.mxu0 %v3172_v37  ;;  %v3907_v37 = vrot.slane %v3898_v9, %v5595_v48  ;;  %v3990_v51 = vunpack.c.0.s8 %v3989_v7 }
 0x6e3   :  { %3833 = vmatprep.subr.bf16.mxu0 %v4859_v4 }
 0x6e6   :  { %3834 = vmatpush1.bf16.msra.mxu0 %v4857_v61 }
 0x6e7   :  { %3835 = vmatprep.subr.bf16.mxu0 %v4862_v56 }
 0x6ea   :  { %3836 = vmatpush1.bf16.msra.mxu0 %v4860_v41  ;;  %v3993_v41 = vsub.s32 %v3990_v51, %v5196_v59 }
 0x6eb   :  { %3837 = vmatprep.subr.bf16.mxu0 %v4865_v15 }
 0x6ee   :  { %3838 = vmatpush1.bf16.msra.mxu0 %v4863_v20 }
 0x6ef   :  { %3839 = vmatprep.subr.bf16.mxu0 %v4868_v21 }
 0x6f2   :  { %3840 = vmatpush1.bf16.msra.mxu0 %v4866_v19 }
 0x6f3   :  { %3841 = vmatprep.subr.bf16.mxu0 %v4871_v11 }
 0x6f6   :  { %3842 = vmatpush1.bf16.msra.mxu0 %v4869_v32 }
 0x6f7   :  { %3843 = vmatprep.subr.bf16.mxu0 %v4874_v43 }
 0x6fa   :  { %3844 = vmatpush1.bf16.msra.mxu0 %v4872_v22 }
 0x6fb   :  { %3845 = vmatprep.subr.bf16.mxu0 %v4877_v47 }
 0x6fe   :  { %3846 = vmatpush1.bf16.msra.mxu0 %v4875_v5 }
 0x6ff   :  { %3847 = vmatprep.subr.bf16.mxu0 %v4880_v14 }
 0x702   :  { %3848 = vmatpush1.bf16.msra.mxu0 %v4878_v33 }
 0x703   :  { %3849 = vmatprep.subr.bf16.mxu0 %v4883_v23 }
 0x706   :  { %3850 = vmatpush1.bf16.msra.mxu0 %v4881_v6 }
 0x707   :  { %3851 = vmatprep.subr.bf16.mxu0 %v4886_v27 }
 0x70a   :  { %3852 = vmatpush1.bf16.msra.mxu0 %v4884_v28 }
 0x70b   :  { %3853 = vmatprep.subr.bf16.mxu0 %v4889_v49 }
 0x70e   :  { %3854 = vmatpush1.bf16.msra.mxu0 %v4887_v26 }
 0x70f   :  { %3855 = vmatprep.subr.bf16.mxu0 %v4892_v30 }
 0x712   :  { %3856 = vmatpush1.bf16.msra.mxu0 %v4890_v16 }
 0x713   :  { %3857 = vmatprep.subr.bf16.mxu0 %v4895_v31 }
 0x716   :  { %3858 = vmatpush1.bf16.msra.mxu0 %v4893_v12 }
 0x717   :  { %3859 = vmatprep.subr.bf16.mxu0 %v4898_v34 }
 0x71a   :  { %3860 = vmatpush1.bf16.msra.mxu0 %v4896_v58 }
 0x71b   :  { %3861 = vmatprep.subr.bf16.mxu0 %v4901_v13 }
 0x71e   :  { %3862 = vmatpush1.bf16.msra.mxu0 %v4899_v35 }
 0x721   :  { %3864 = vmatmul.mubr.bf16.vlgmr.msra.gmra.mrb[44].mxu0 %v5980_v17 }
 0x722   :  { %3978 = vmatprep.mubr.f32.mxu0 %v5034_v53 }
 0x7b4   :  { %v3783_v29 = vpop.f32.mrb[40].mxu0  ;;  %v3824_v42 = vpop.f32.mrb[60].mxu1 }
 0x7b5   :  { %v3872_v8 = vrot.slane %v3783_v29, 7  ;;  %v3785_v44 = vpop.f32.mrb[41].mxu0  ;;  %v3826_v60 = vpop.f32.mrb[61].mxu1 }
 0x7b6   :  { %v3873_v39 = vrot.slane %v3785_v44, 7  ;;  %v3787_v3 = vpop.f32.mrb[42].mxu0  ;;  %v3828_v55 = vpop.f32.mrb[62].mxu1 }
 0x7b7   :  { %v3891_v1 = vsel %vm3888_vm9, 0.0, %v3872_v8  ;;  %v3788_v45 = vpop.f32.mrb[43].mxu0  ;;  %v3829_v62 = vpop.f32.mrb[63].mxu1 }
 0x7b8   :  { %v3893_v25 = vadd.f32 %v3891_v1, %v3824_v42  ;;  %v3892_v46 = vsel %vm3888_vm9, 0.0, %v3873_v39 }
 0x7b9   :  { %v3894_v52 = vadd.f32 %v3892_v46, %v3826_v60 }
 0x7f4   :  { %v3865_v18 = vpop.f32.mrb[44].mxu0 }
 0x7f5   :  { %v3874_v54 = vrot.slane %v3865_v18, 1  ;;  %v3867_v53 = vpop.f32.mrb[45].mxu0 }
 0x7f6   :  { %v3875_v50 = vrot.slane %v3867_v53, 1  ;;  %v3869_v38 = vpop.f32.mrb[46].mxu0 }
 0x7f7   :  { %v3895_v57 = vadd.f32 %v3893_v25, %v3874_v54  ;;  %v3870_v63 = vpop.f32.mrb[47].mxu0 }
 0x7f8   :  { %v3896_v24 = vadd.f32 %v3894_v52, %v3875_v50 }
 0x7fa   :  { %3914 = vmatprep.subr.mxu0 %v3896_v24 }
 0x7fb   :  { %3915 = vmatpush1.msra.mxu0 %v3895_v57 }
 0x7fc   :  { %4354 = vmatmul.mubr.msk.f32.vlgmr.msra.gmra.mrb[38].mxu0 %vm3910_vm10, %v3897_v2 }
 0x8cf   :  { %v3980_v17 = vpop.f32.mrb[38].mxu0 }
 0x8d0   :  { %v3981_v4 = vadd.f32 %v3980_v17, %v3903_v40  ;;  %v3982_v61 = vpop.f32.mrb[39].mxu0 }
 0x8d1   :  { %v3983_v56 = vadd.f32 %v3982_v61, %v3907_v37 }
 0x8d3   :  { %v3987_v15 = vcombine.low %v3981_v4, %v3983_v56 }
 0x8d5   :  { %v3994_v20 = vrot.slane %v3987_v15, %v3993_v41  ;;  %4355 = vst.sshfl [vmem:[%s6015_s13] sm:$0x33 pattern:$0x76325410] %v3987_v15 }
 0x8d7   :  { %v3997_v21 = vcombine.high %v3994_v20, %v3994_v20 }
 0x8d9   :  { %4356 = vst [vmem:[%s6015_s13 + $0x4] sm:$0xf] %v3997_v21 }
 0x8da   :  { %4005 = vsyncpa [#allocation3], 1 }
 0x8db   :  { %4006 = vsyncpa [#allocation5], 1 }

</bundles_post_ra>
